<compile_context>
chip_gen: v6e
topology: v6e:2x2x1
jax: 0.10.0
libtpu: 0.0.40
codegen_flags: <defaults>
</compile_context>

<pallas_src>
import functools

import jax
import jax.numpy as jnp
from jax import lax
from jax.experimental import pallas as pl
from jax.experimental.pallas import tpu as pltpu


def _round_up(n, m):
    return ((n + m - 1) // m) * m


def _csab_kernel(x_ref, w1_ref, w2_ref, wsp_ref, o_ref,
                 x1_ref, pad_ref, tall_ref, *, H, W):
    # x_ref   : (1, C, H*W) lane-dense input image
    # w1_ref  : (Cr, C)     channel-MLP 1x1 conv #1     w2_ref: (C, Cr) conv #2
    # wsp_ref : (98,) SMEM  7x7 spatial conv weights, flattened (2*7*7)
    # o_ref   : (1, C, H*W) output
    # x1_ref  : (C, H*W)    VMEM scratch (channel-attended input)
    # pad_ref : (2, L)      VMEM scratch (zero-padded flattened mean/max maps)
    # tall_ref: (1, span)   VMEM scratch (per-kh partial conv sums)
    HW = H * W
    x = x_ref[0]                                        # (C, HW)

    # ---------------- channel attention ----------------
    avg = jnp.mean(x, axis=1, keepdims=True)            # (C, 1) lane reduction
    mx = jnp.max(x, axis=1, keepdims=True)              # (C, 1)
    w1 = w1_ref[...]
    w2 = w2_ref[...]

    def mlp(v):                                         # shared 1x1-conv MLP
        h = jnp.maximum(jnp.dot(w1, v, preferred_element_type=jnp.float32), 0.0)
        return jnp.dot(w2, h, preferred_element_type=jnp.float32)

    ca = jax.nn.sigmoid(mlp(avg) + mlp(mx))             # (C, 1)
    x1 = x * ca                                         # (C, HW)
    x1_ref[...] = x1                                    # stays in VMEM, never HBM

    # -------- spatial-attention inputs: mean / max over channels --------
    m_mean = jnp.mean(x1, axis=0, keepdims=True)        # (1, HW)
    m_max = jnp.max(x1, axis=0, keepdims=True)          # (1, HW)

    # -------- 7x7 SAME conv on the flattened 2-channel map --------
    # With the map zero-padded by >= 3*W+3 on both sides, a spatial shift
    # (kh-3, kw-3) is a flat shift of (kh-3)*W + (kw-3); reads that wrap
    # across a row edge are zeroed by a per-kw lane mask.
    halo = 3 * W + 3
    zpl = _round_up(halo, 128)                          # lane-aligned interior store
    span = HW + 6 * W
    base = zpl - halo

    pad_ref[...] = jnp.zeros(pad_ref.shape, jnp.float32)
    pad_ref[0:1, zpl:zpl + HW] = m_mean
    pad_ref[1:2, zpl:zpl + HW] = m_max

    wpos = lax.broadcasted_iota(jnp.int32, (1, span), 1) % W
    # 14 hoisted kw-shifted (masked) views, reused across all 7 kh rows.
    cols = []
    for c in range(2):
        per_c = []
        for kw in range(7):
            start = base + kw
            view = pad_ref[c:c + 1, start:start + span]          # (1, span)
            valid = (wpos >= 3 - kw) & (wpos < W + 3 - kw)
            per_c.append(jnp.where(valid, view, 0.0))
        cols.append(per_c)

    conv = jnp.zeros((1, HW), jnp.float32)
    for kh in range(7):
        tall = jnp.zeros((1, span), jnp.float32)                 # row-kh partial sum
        for c in range(2):
            for kw in range(7):
                tall = tall + wsp_ref[c * 49 + kh * 7 + kw] * cols[c][kw]
        tall_ref[...] = tall
        conv = conv + tall_ref[0:1, kh * W:kh * W + HW]          # kh-row shift

    sa = jax.nn.sigmoid(conv)                                    # (1, HW)
    o_ref[0] = x1_ref[...] * sa                                  # lane-dense store


def csab_forward(x, w1, w2, wsp):
    B, C, H, W = x.shape
    Cr = w1.shape[0]
    HW = H * W
    f32 = jnp.float32

    halo = 3 * W + 3
    zpl = _round_up(halo, 128)
    pad_len = zpl + HW + halo
    span = HW + 6 * W

    x2 = x.reshape(B, C, HW).astype(f32)        # free reshape (merge trailing dims)
    wsp_flat = wsp.reshape(-1).astype(f32)      # (98,) scalars -> SMEM

    kernel = functools.partial(_csab_kernel, H=H, W=W)
    out2 = pl.pallas_call(
        kernel,
        out_shape=jax.ShapeDtypeStruct((B, C, HW), f32),
        grid=(B,),
        in_specs=[
            pl.BlockSpec((1, C, HW), lambda b: (b, 0, 0)),
            pl.BlockSpec((Cr, C), lambda b: (0, 0)),
            pl.BlockSpec((C, Cr), lambda b: (0, 0)),
            pl.BlockSpec(memory_space=pltpu.MemorySpace.SMEM),
        ],
        out_specs=pl.BlockSpec((1, C, HW), lambda b: (b, 0, 0)),
        scratch_shapes=[
            pltpu.VMEM((C, HW), f32),       # x1 (channel-attended input)
            pltpu.VMEM((2, pad_len), f32),  # zero-padded flattened mean/max maps
            pltpu.VMEM((1, span), f32),     # per-row partial conv sums
        ],
        compiler_params=pltpu.CompilerParams(
            dimension_semantics=("parallel",)),
    )(x2, w1.astype(f32), w2.astype(f32), wsp_flat)
    return out2.reshape(B, C, H, W)


def csab_reference(x, w1, w2, wsp):
    # pure-JAX reference matching the PyTorch forward
    avg = x.mean(axis=(2, 3))
    mx = x.max(axis=(2, 3))

    def fc(v):
        h = jnp.maximum(v @ w1.T, 0.0)
        return h @ w2.T

    ca = jax.nn.sigmoid(fc(avg) + fc(mx))[:, :, None, None]
    x1 = ca * x
    cat = jnp.concatenate([x1.mean(axis=1, keepdims=True),
                           x1.max(axis=1, keepdims=True)], axis=1)
    conv = lax.conv_general_dilated(
        cat, wsp[None, :, :, :], (1, 1), "SAME",
        dimension_numbers=("NCHW", "OIHW", "NCHW"))
    sa = jax.nn.sigmoid(conv)
    return sa * x1


if __name__ == "__main__":
    key = jax.random.PRNGKey(0)
    # in_planes must be >= 16 (module uses in_planes // 16 for the bottleneck)
    B, C, H, W = 2, 32, 16, 16
    Cr = C // 16

    k1, k2, k3, k4 = jax.random.split(key, 4)
    x = jax.random.normal(k1, (B, C, H, W), jnp.float32)
    # deterministic synthetic weights (Conv2d kernels, bias=False everywhere)
    w1 = jax.random.normal(k2, (Cr, C), jnp.float32) * 0.1    # fc conv1 (Cr,C,1,1)
    w2 = jax.random.normal(k3, (C, Cr), jnp.float32) * 0.1    # fc conv2 (C,Cr,1,1)
    wsp = jax.random.normal(k4, (2, 7, 7), jnp.float32) * 0.1  # spatial conv (1,2,7,7)

    out = jax.block_until_ready(csab_forward(x, w1, w2, wsp))
    ref = csab_reference(x, w1, w2, wsp)
    assert out.shape == (B, C, H, W)
    assert jnp.allclose(out, ref, atol=2e-4, rtol=2e-4), float(
        jnp.max(jnp.abs(out - ref)))
    print("KERNEL_OK")
</pallas_src>

<mosaic_0001>
module attributes {stable_mosaic.version = 11 : i64} {
  func.func @_csab_kernel(%arg0: i32, %arg1: memref<1x32x256xf32, #tpu.memory_space<vmem>>, %arg2: memref<2x32xf32, #tpu.memory_space<vmem>>, %arg3: memref<32x2xf32, #tpu.memory_space<vmem>>, %arg4: memref<98xf32, #tpu.memory_space<smem>>, %arg5: memref<1x32x256xf32, #tpu.memory_space<vmem>>, %arg6: memref<32x256xf32, #tpu.memory_space<vmem>>, %arg7: memref<2x435xf32, #tpu.memory_space<vmem>>, %arg8: memref<1x352xf32, #tpu.memory_space<vmem>>) attributes {dimension_semantics = [#tpu.dimension_semantics<parallel>], iteration_bounds = array<i64: 2>, scalar_prefetch = 0 : i64, scratch_operands = 3 : i64, tpu.core_type = #tpu.core_type<tc>, window_params = [{transform_indices = @transform_0, window_bounds = array<i64: 1, 32, 256>}, {pipeline_mode = #tpu.pipeline_mode<synchronous>, transform_indices = @transform_1, window_bounds = array<i64: 2, 32>}, {pipeline_mode = #tpu.pipeline_mode<synchronous>, transform_indices = @transform_2, window_bounds = array<i64: 32, 2>}, {transform_indices = @transform_3, window_bounds = array<i64: 98>}, {transform_indices = @transform_4, window_bounds = array<i64: 1, 32, 256>}]} {
    %c0 = arith.constant 0 : index
    %c0_0 = arith.constant 0 : index
    %c0_1 = arith.constant 0 : index
    %0 = vector.load %arg1[%c0, %c0_0, %c0_1] : memref<1x32x256xf32, #tpu.memory_space<vmem>>, vector<1x32x256xf32>
    %1 = vector.shape_cast %0 : vector<1x32x256xf32> to vector<32x256xf32>
    %cst = arith.constant dense<0.000000e+00> : vector<32xf32>
    %2 = vector.multi_reduction <add>, %1, %cst [1] : vector<32x256xf32> to vector<32xf32>
    %3 = vector.shape_cast %2 : vector<32xf32> to vector<32x1xf32>
    %cst_2 = arith.constant 2.560000e+02 : f32
    %4 = vector.broadcast %cst_2 : f32 to vector<32x1xf32>
    %5 = arith.divf %3, %4 : vector<32x1xf32>
    %cst_3 = arith.constant dense<0xFF800000> : vector<32xf32>
    %6 = vector.multi_reduction <maximumf>, %1, %cst_3 [1] : vector<32x256xf32> to vector<32xf32>
    %7 = vector.shape_cast %6 : vector<32xf32> to vector<32x1xf32>
    %c0_4 = arith.constant 0 : index
    %c0_5 = arith.constant 0 : index
    %8 = vector.load %arg2[%c0_4, %c0_5] : memref<2x32xf32, #tpu.memory_space<vmem>>, vector<2x32xf32>
    %c0_6 = arith.constant 0 : index
    %c0_7 = arith.constant 0 : index
    %9 = vector.load %arg3[%c0_6, %c0_7] : memref<32x2xf32, #tpu.memory_space<vmem>>, vector<32x2xf32>
    %cst_8 = arith.constant dense<0.000000e+00> : vector<2x1xf32>
    %10 = tpu.matmul %8, %5, %cst_8 {dimension_numbers = #tpu.dot_dimension_numbers<[1], [0], [0], [1], [0, 0, 1, 1], [], []>} : vector<2x32xf32>, vector<32x1xf32>, vector<2x1xf32> -> vector<2x1xf32>
    %cst_9 = arith.constant 0.000000e+00 : f32
    %11 = vector.broadcast %cst_9 : f32 to vector<2x1xf32>
    %12 = arith.maximumf %10, %11 : vector<2x1xf32>
    %cst_10 = arith.constant dense<0.000000e+00> : vector<32x1xf32>
    %13 = tpu.matmul %9, %12, %cst_10 {dimension_numbers = #tpu.dot_dimension_numbers<[1], [0], [0], [1], [0, 0, 1, 1], [], []>} : vector<32x2xf32>, vector<2x1xf32>, vector<32x1xf32> -> vector<32x1xf32>
    %cst_11 = arith.constant dense<0.000000e+00> : vector<2x1xf32>
    %14 = tpu.matmul %8, %7, %cst_11 {dimension_numbers = #tpu.dot_dimension_numbers<[1], [0], [0], [1], [0, 0, 1, 1], [], []>} : vector<2x32xf32>, vector<32x1xf32>, vector<2x1xf32> -> vector<2x1xf32>
    %cst_12 = arith.constant 0.000000e+00 : f32
    %15 = vector.broadcast %cst_12 : f32 to vector<2x1xf32>
    %16 = arith.maximumf %14, %15 : vector<2x1xf32>
    %cst_13 = arith.constant dense<0.000000e+00> : vector<32x1xf32>
    %17 = tpu.matmul %9, %16, %cst_13 {dimension_numbers = #tpu.dot_dimension_numbers<[1], [0], [0], [1], [0, 0, 1, 1], [], []>} : vector<32x2xf32>, vector<2x1xf32>, vector<32x1xf32> -> vector<32x1xf32>
    %18 = arith.addf %13, %17 : vector<32x1xf32>
    %19 = arith.negf %18 : vector<32x1xf32>
    %20 = math.exp %19 : vector<32x1xf32>
    %cst_14 = arith.constant 1.000000e+00 : f32
    %21 = vector.broadcast %cst_14 : f32 to vector<32x1xf32>
    %22 = arith.addf %21, %20 : vector<32x1xf32>
    %23 = arith.divf %21, %22 : vector<32x1xf32>
    %24 = vector.broadcast %23 : vector<32x1xf32> to vector<32x256xf32>
    %25 = arith.mulf %1, %24 : vector<32x256xf32>
    %c0_15 = arith.constant 0 : index
    %c0_16 = arith.constant 0 : index
    %26 = vector.load %arg6[%c0_15, %c0_16] : memref<32x256xf32, #tpu.memory_space<vmem>>, vector<32x256xf32>
    tpu.vector_store %arg6[%c0_15, %c0_16], %25 {strides = array<i32>} : memref<32x256xf32, #tpu.memory_space<vmem>>, vector<32x256xf32>,
    %cst_17 = arith.constant dense<0.000000e+00> : vector<256xf32>
    %27 = vector.multi_reduction <add>, %25, %cst_17 [0] : vector<32x256xf32> to vector<256xf32>
    %28 = vector.shape_cast %27 : vector<256xf32> to vector<1x256xf32>
    %cst_18 = arith.constant 3.200000e+01 : f32
    %29 = vector.broadcast %cst_18 : f32 to vector<1x256xf32>
    %30 = arith.divf %28, %29 : vector<1x256xf32>
    %cst_19 = arith.constant dense<0xFF800000> : vector<256xf32>
    %31 = vector.multi_reduction <maximumf>, %25, %cst_19 [0] : vector<32x256xf32> to vector<256xf32>
    %32 = vector.shape_cast %31 : vector<256xf32> to vector<1x256xf32>
    %cst_20 = arith.constant 0.000000e+00 : f32
    %33 = vector.broadcast %cst_20 : f32 to vector<2x435xf32>
    %c0_21 = arith.constant 0 : index
    %c0_22 = arith.constant 0 : index
    %34 = vector.load %arg7[%c0_21, %c0_22] : memref<2x435xf32, #tpu.memory_space<vmem>>, vector<2x435xf32>
    tpu.vector_store %arg7[%c0_21, %c0_22], %33 {strides = array<i32>} : memref<2x435xf32, #tpu.memory_space<vmem>>, vector<2x435xf32>,
    %c0_23 = arith.constant 0 : index
    %c128 = arith.constant 128 : index
    %35 = vector.load %arg7[%c0_23, %c128] : memref<2x435xf32, #tpu.memory_space<vmem>>, vector<1x256xf32>
    tpu.vector_store %arg7[%c0_23, %c128], %30 {strides = array<i32>} : memref<2x435xf32, #tpu.memory_space<vmem>>, vector<1x256xf32>,
    %c1 = arith.constant 1 : index
    %c128_24 = arith.constant 128 : index
    %36 = vector.load %arg7[%c1, %c128_24] : memref<2x435xf32, #tpu.memory_space<vmem>>, vector<1x256xf32>
    tpu.vector_store %arg7[%c1, %c128_24], %32 {strides = array<i32>} : memref<2x435xf32, #tpu.memory_space<vmem>>, vector<1x256xf32>,
    %37 = tpu.iota {dimensions = array<i32: 1>} : vector<1x352xi32>
    %c16_i32 = arith.constant 16 : i32
    %c0_i32 = arith.constant 0 : i32
    %38 = arith.cmpi eq, %c16_i32, %c0_i32 : i32
    %c1_i32 = arith.constant 1 : i32
    %39 = arith.select %38, %c1_i32, %c16_i32 : i32
    %40 = vector.broadcast %39 : i32 to vector<1x352xi32>
    %41 = arith.remsi %37, %40 : vector<1x352xi32>
    %c0_i32_25 = arith.constant 0 : i32
    %42 = vector.broadcast %c0_i32_25 : i32 to vector<1x352xi32>
    %43 = arith.cmpi ne, %41, %42 : vector<1x352xi32>
    %c0_i32_26 = arith.constant 0 : i32
    %44 = vector.broadcast %c0_i32_26 : i32 to vector<1x352xi32>
    %45 = arith.cmpi slt, %41, %44 : vector<1x352xi32>
    %c0_i32_27 = arith.constant 0 : i32
    %46 = arith.cmpi slt, %39, %c0_i32_27 : i32
    %47 = vector.broadcast %46 : i1 to vector<1x352xi1>
    %48 = vector.broadcast %47 : vector<1x352xi1> to vector<1x352xi1>
    %49 = arith.xori %45, %48 : vector<1x352xi1>
    %50 = arith.andi %49, %43 : vector<1x352xi1>
    %51 = vector.broadcast %39 : i32 to vector<1x352xi32>
    %52 = arith.addi %41, %51 : vector<1x352xi32>
    %53 = arith.select %50, %52, %41 : vector<1x352xi1>, vector<1x352xi32>
    %c0_28 = arith.constant 0 : index
    %c77 = arith.constant 77 : index
    %54 = vector.load %arg7[%c0_28, %c77] : memref<2x435xf32, #tpu.memory_space<vmem>>, vector<1x352xf32>
    %c3_i32 = arith.constant 3 : i32
    %55 = vector.broadcast %c3_i32 : i32 to vector<1x352xi32>
    %56 = arith.cmpi sge, %53, %55 : vector<1x352xi32>
    %c19_i32 = arith.constant 19 : i32
    %57 = vector.broadcast %c19_i32 : i32 to vector<1x352xi32>
    %58 = arith.cmpi slt, %53, %57 : vector<1x352xi32>
    %59 = arith.andi %56, %58 : vector<1x352xi1>
    %cst_29 = arith.constant 0.000000e+00 : f32
    %60 = vector.broadcast %cst_29 : f32 to vector<1x352xf32>
    %61 = arith.select %59, %54, %60 : vector<1x352xi1>, vector<1x352xf32>
    %c0_30 = arith.constant 0 : index
    %c78 = arith.constant 78 : index
    %62 = vector.load %arg7[%c0_30, %c78] : memref<2x435xf32, #tpu.memory_space<vmem>>, vector<1x352xf32>
    %c2_i32 = arith.constant 2 : i32
    %63 = vector.broadcast %c2_i32 : i32 to vector<1x352xi32>
    %64 = arith.cmpi sge, %53, %63 : vector<1x352xi32>
    %c18_i32 = arith.constant 18 : i32
    %65 = vector.broadcast %c18_i32 : i32 to vector<1x352xi32>
    %66 = arith.cmpi slt, %53, %65 : vector<1x352xi32>
    %67 = arith.andi %64, %66 : vector<1x352xi1>
    %cst_31 = arith.constant 0.000000e+00 : f32
    %68 = vector.broadcast %cst_31 : f32 to vector<1x352xf32>
    %69 = arith.select %67, %62, %68 : vector<1x352xi1>, vector<1x352xf32>
    %c0_32 = arith.constant 0 : index
    %c79 = arith.constant 79 : index
    %70 = vector.load %arg7[%c0_32, %c79] : memref<2x435xf32, #tpu.memory_space<vmem>>, vector<1x352xf32>
    %c1_i32_33 = arith.constant 1 : i32
    %71 = vector.broadcast %c1_i32_33 : i32 to vector<1x352xi32>
    %72 = arith.cmpi sge, %53, %71 : vector<1x352xi32>
    %c17_i32 = arith.constant 17 : i32
    %73 = vector.broadcast %c17_i32 : i32 to vector<1x352xi32>
    %74 = arith.cmpi slt, %53, %73 : vector<1x352xi32>
    %75 = arith.andi %72, %74 : vector<1x352xi1>
    %cst_34 = arith.constant 0.000000e+00 : f32
    %76 = vector.broadcast %cst_34 : f32 to vector<1x352xf32>
    %77 = arith.select %75, %70, %76 : vector<1x352xi1>, vector<1x352xf32>
    %c0_35 = arith.constant 0 : index
    %c80 = arith.constant 80 : index
    %78 = vector.load %arg7[%c0_35, %c80] : memref<2x435xf32, #tpu.memory_space<vmem>>, vector<1x352xf32>
    %c0_i32_36 = arith.constant 0 : i32
    %79 = vector.broadcast %c0_i32_36 : i32 to vector<1x352xi32>
    %80 = arith.cmpi sge, %53, %79 : vector<1x352xi32>
    %c16_i32_37 = arith.constant 16 : i32
    %81 = vector.broadcast %c16_i32_37 : i32 to vector<1x352xi32>
    %82 = arith.cmpi slt, %53, %81 : vector<1x352xi32>
    %83 = arith.andi %80, %82 : vector<1x352xi1>
    %cst_38 = arith.constant 0.000000e+00 : f32
    %84 = vector.broadcast %cst_38 : f32 to vector<1x352xf32>
    %85 = arith.select %83, %78, %84 : vector<1x352xi1>, vector<1x352xf32>
    %c0_39 = arith.constant 0 : index
    %c81 = arith.constant 81 : index
    %86 = vector.load %arg7[%c0_39, %c81] : memref<2x435xf32, #tpu.memory_space<vmem>>, vector<1x352xf32>
    %c-1_i32 = arith.constant -1 : i32
    %87 = vector.broadcast %c-1_i32 : i32 to vector<1x352xi32>
    %88 = arith.cmpi sge, %53, %87 : vector<1x352xi32>
    %c15_i32 = arith.constant 15 : i32
    %89 = vector.broadcast %c15_i32 : i32 to vector<1x352xi32>
    %90 = arith.cmpi slt, %53, %89 : vector<1x352xi32>
    %91 = arith.andi %88, %90 : vector<1x352xi1>
    %cst_40 = arith.constant 0.000000e+00 : f32
    %92 = vector.broadcast %cst_40 : f32 to vector<1x352xf32>
    %93 = arith.select %91, %86, %92 : vector<1x352xi1>, vector<1x352xf32>
    %c0_41 = arith.constant 0 : index
    %c82 = arith.constant 82 : index
    %94 = vector.load %arg7[%c0_41, %c82] : memref<2x435xf32, #tpu.memory_space<vmem>>, vector<1x352xf32>
    %c-2_i32 = arith.constant -2 : i32
    %95 = vector.broadcast %c-2_i32 : i32 to vector<1x352xi32>
    %96 = arith.cmpi sge, %53, %95 : vector<1x352xi32>
    %c14_i32 = arith.constant 14 : i32
    %97 = vector.broadcast %c14_i32 : i32 to vector<1x352xi32>
    %98 = arith.cmpi slt, %53, %97 : vector<1x352xi32>
    %99 = arith.andi %96, %98 : vector<1x352xi1>
    %cst_42 = arith.constant 0.000000e+00 : f32
    %100 = vector.broadcast %cst_42 : f32 to vector<1x352xf32>
    %101 = arith.select %99, %94, %100 : vector<1x352xi1>, vector<1x352xf32>
    %c0_43 = arith.constant 0 : index
    %c83 = arith.constant 83 : index
    %102 = vector.load %arg7[%c0_43, %c83] : memref<2x435xf32, #tpu.memory_space<vmem>>, vector<1x352xf32>
    %c-3_i32 = arith.constant -3 : i32
    %103 = vector.broadcast %c-3_i32 : i32 to vector<1x352xi32>
    %104 = arith.cmpi sge, %53, %103 : vector<1x352xi32>
    %c13_i32 = arith.constant 13 : i32
    %105 = vector.broadcast %c13_i32 : i32 to vector<1x352xi32>
    %106 = arith.cmpi slt, %53, %105 : vector<1x352xi32>
    %107 = arith.andi %104, %106 : vector<1x352xi1>
    %cst_44 = arith.constant 0.000000e+00 : f32
    %108 = vector.broadcast %cst_44 : f32 to vector<1x352xf32>
    %109 = arith.select %107, %102, %108 : vector<1x352xi1>, vector<1x352xf32>
    %c1_45 = arith.constant 1 : index
    %c77_46 = arith.constant 77 : index
    %110 = vector.load %arg7[%c1_45, %c77_46] : memref<2x435xf32, #tpu.memory_space<vmem>>, vector<1x352xf32>
    %c3_i32_47 = arith.constant 3 : i32
    %111 = vector.broadcast %c3_i32_47 : i32 to vector<1x352xi32>
    %112 = arith.cmpi sge, %53, %111 : vector<1x352xi32>
    %c19_i32_48 = arith.constant 19 : i32
    %113 = vector.broadcast %c19_i32_48 : i32 to vector<1x352xi32>
    %114 = arith.cmpi slt, %53, %113 : vector<1x352xi32>
    %115 = arith.andi %112, %114 : vector<1x352xi1>
    %cst_49 = arith.constant 0.000000e+00 : f32
    %116 = vector.broadcast %cst_49 : f32 to vector<1x352xf32>
    %117 = arith.select %115, %110, %116 : vector<1x352xi1>, vector<1x352xf32>
    %c1_50 = arith.constant 1 : index
    %c78_51 = arith.constant 78 : index
    %118 = vector.load %arg7[%c1_50, %c78_51] : memref<2x435xf32, #tpu.memory_space<vmem>>, vector<1x352xf32>
    %c2_i32_52 = arith.constant 2 : i32
    %119 = vector.broadcast %c2_i32_52 : i32 to vector<1x352xi32>
    %120 = arith.cmpi sge, %53, %119 : vector<1x352xi32>
    %c18_i32_53 = arith.constant 18 : i32
    %121 = vector.broadcast %c18_i32_53 : i32 to vector<1x352xi32>
    %122 = arith.cmpi slt, %53, %121 : vector<1x352xi32>
    %123 = arith.andi %120, %122 : vector<1x352xi1>
    %cst_54 = arith.constant 0.000000e+00 : f32
    %124 = vector.broadcast %cst_54 : f32 to vector<1x352xf32>
    %125 = arith.select %123, %118, %124 : vector<1x352xi1>, vector<1x352xf32>
    %c1_55 = arith.constant 1 : index
    %c79_56 = arith.constant 79 : index
    %126 = vector.load %arg7[%c1_55, %c79_56] : memref<2x435xf32, #tpu.memory_space<vmem>>, vector<1x352xf32>
    %c1_i32_57 = arith.constant 1 : i32
    %127 = vector.broadcast %c1_i32_57 : i32 to vector<1x352xi32>
    %128 = arith.cmpi sge, %53, %127 : vector<1x352xi32>
    %c17_i32_58 = arith.constant 17 : i32
    %129 = vector.broadcast %c17_i32_58 : i32 to vector<1x352xi32>
    %130 = arith.cmpi slt, %53, %129 : vector<1x352xi32>
    %131 = arith.andi %128, %130 : vector<1x352xi1>
    %cst_59 = arith.constant 0.000000e+00 : f32
    %132 = vector.broadcast %cst_59 : f32 to vector<1x352xf32>
    %133 = arith.select %131, %126, %132 : vector<1x352xi1>, vector<1x352xf32>
    %c1_60 = arith.constant 1 : index
    %c80_61 = arith.constant 80 : index
    %134 = vector.load %arg7[%c1_60, %c80_61] : memref<2x435xf32, #tpu.memory_space<vmem>>, vector<1x352xf32>
    %c0_i32_62 = arith.constant 0 : i32
    %135 = vector.broadcast %c0_i32_62 : i32 to vector<1x352xi32>
    %136 = arith.cmpi sge, %53, %135 : vector<1x352xi32>
    %c16_i32_63 = arith.constant 16 : i32
    %137 = vector.broadcast %c16_i32_63 : i32 to vector<1x352xi32>
    %138 = arith.cmpi slt, %53, %137 : vector<1x352xi32>
    %139 = arith.andi %136, %138 : vector<1x352xi1>
    %cst_64 = arith.constant 0.000000e+00 : f32
    %140 = vector.broadcast %cst_64 : f32 to vector<1x352xf32>
    %141 = arith.select %139, %134, %140 : vector<1x352xi1>, vector<1x352xf32>
    %c1_65 = arith.constant 1 : index
    %c81_66 = arith.constant 81 : index
    %142 = vector.load %arg7[%c1_65, %c81_66] : memref<2x435xf32, #tpu.memory_space<vmem>>, vector<1x352xf32>
    %c-1_i32_67 = arith.constant -1 : i32
    %143 = vector.broadcast %c-1_i32_67 : i32 to vector<1x352xi32>
    %144 = arith.cmpi sge, %53, %143 : vector<1x352xi32>
    %c15_i32_68 = arith.constant 15 : i32
    %145 = vector.broadcast %c15_i32_68 : i32 to vector<1x352xi32>
    %146 = arith.cmpi slt, %53, %145 : vector<1x352xi32>
    %147 = arith.andi %144, %146 : vector<1x352xi1>
    %cst_69 = arith.constant 0.000000e+00 : f32
    %148 = vector.broadcast %cst_69 : f32 to vector<1x352xf32>
    %149 = arith.select %147, %142, %148 : vector<1x352xi1>, vector<1x352xf32>
    %c1_70 = arith.constant 1 : index
    %c82_71 = arith.constant 82 : index
    %150 = vector.load %arg7[%c1_70, %c82_71] : memref<2x435xf32, #tpu.memory_space<vmem>>, vector<1x352xf32>
    %c-2_i32_72 = arith.constant -2 : i32
    %151 = vector.broadcast %c-2_i32_72 : i32 to vector<1x352xi32>
    %152 = arith.cmpi sge, %53, %151 : vector<1x352xi32>
    %c14_i32_73 = arith.constant 14 : i32
    %153 = vector.broadcast %c14_i32_73 : i32 to vector<1x352xi32>
    %154 = arith.cmpi slt, %53, %153 : vector<1x352xi32>
    %155 = arith.andi %152, %154 : vector<1x352xi1>
    %cst_74 = arith.constant 0.000000e+00 : f32
    %156 = vector.broadcast %cst_74 : f32 to vector<1x352xf32>
    %157 = arith.select %155, %150, %156 : vector<1x352xi1>, vector<1x352xf32>
    %c1_75 = arith.constant 1 : index
    %c83_76 = arith.constant 83 : index
    %158 = vector.load %arg7[%c1_75, %c83_76] : memref<2x435xf32, #tpu.memory_space<vmem>>, vector<1x352xf32>
    %c-3_i32_77 = arith.constant -3 : i32
    %159 = vector.broadcast %c-3_i32_77 : i32 to vector<1x352xi32>
    %160 = arith.cmpi sge, %53, %159 : vector<1x352xi32>
    %c13_i32_78 = arith.constant 13 : i32
    %161 = vector.broadcast %c13_i32_78 : i32 to vector<1x352xi32>
    %162 = arith.cmpi slt, %53, %161 : vector<1x352xi32>
    %163 = arith.andi %160, %162 : vector<1x352xi1>
    %cst_79 = arith.constant 0.000000e+00 : f32
    %164 = vector.broadcast %cst_79 : f32 to vector<1x352xf32>
    %165 = arith.select %163, %158, %164 : vector<1x352xi1>, vector<1x352xf32>
    %cst_80 = arith.constant 0.000000e+00 : f32
    %166 = vector.broadcast %cst_80 : f32 to vector<1x256xf32>
    %cst_81 = arith.constant 0.000000e+00 : f32
    %167 = vector.broadcast %cst_81 : f32 to vector<1x352xf32>
    %c0_82 = arith.constant 0 : index
    %168 = memref.load %arg4[%c0_82] : memref<98xf32, #tpu.memory_space<smem>>
    %169 = vector.broadcast %168 : f32 to vector<1x352xf32>
    %170 = arith.mulf %169, %61 : vector<1x352xf32>
    %171 = arith.addf %167, %170 : vector<1x352xf32>
    %c1_83 = arith.constant 1 : index
    %172 = memref.load %arg4[%c1_83] : memref<98xf32, #tpu.memory_space<smem>>
    %173 = vector.broadcast %172 : f32 to vector<1x352xf32>
    %174 = arith.mulf %173, %69 : vector<1x352xf32>
    %175 = arith.addf %171, %174 : vector<1x352xf32>
    %c2 = arith.constant 2 : index
    %176 = memref.load %arg4[%c2] : memref<98xf32, #tpu.memory_space<smem>>
    %177 = vector.broadcast %176 : f32 to vector<1x352xf32>
    %178 = arith.mulf %177, %77 : vector<1x352xf32>
    %179 = arith.addf %175, %178 : vector<1x352xf32>
    %c3 = arith.constant 3 : index
    %180 = memref.load %arg4[%c3] : memref<98xf32, #tpu.memory_space<smem>>
    %181 = vector.broadcast %180 : f32 to vector<1x352xf32>
    %182 = arith.mulf %181, %85 : vector<1x352xf32>
    %183 = arith.addf %179, %182 : vector<1x352xf32>
    %c4 = arith.constant 4 : index
    %184 = memref.load %arg4[%c4] : memref<98xf32, #tpu.memory_space<smem>>
    %185 = vector.broadcast %184 : f32 to vector<1x352xf32>
    %186 = arith.mulf %185, %93 : vector<1x352xf32>
    %187 = arith.addf %183, %186 : vector<1x352xf32>
    %c5 = arith.constant 5 : index
    %188 = memref.load %arg4[%c5] : memref<98xf32, #tpu.memory_space<smem>>
    %189 = vector.broadcast %188 : f32 to vector<1x352xf32>
    %190 = arith.mulf %189, %101 : vector<1x352xf32>
    %191 = arith.addf %187, %190 : vector<1x352xf32>
    %c6 = arith.constant 6 : index
    %192 = memref.load %arg4[%c6] : memref<98xf32, #tpu.memory_space<smem>>
    %193 = vector.broadcast %192 : f32 to vector<1x352xf32>
    %194 = arith.mulf %193, %109 : vector<1x352xf32>
    %195 = arith.addf %191, %194 : vector<1x352xf32>
    %c49 = arith.constant 49 : index
    %196 = memref.load %arg4[%c49] : memref<98xf32, #tpu.memory_space<smem>>
    %197 = vector.broadcast %196 : f32 to vector<1x352xf32>
    %198 = arith.mulf %197, %117 : vector<1x352xf32>
    %199 = arith.addf %195, %198 : vector<1x352xf32>
    %c50 = arith.constant 50 : index
    %200 = memref.load %arg4[%c50] : memref<98xf32, #tpu.memory_space<smem>>
    %201 = vector.broadcast %200 : f32 to vector<1x352xf32>
    %202 = arith.mulf %201, %125 : vector<1x352xf32>
    %203 = arith.addf %199, %202 : vector<1x352xf32>
    %c51 = arith.constant 51 : index
    %204 = memref.load %arg4[%c51] : memref<98xf32, #tpu.memory_space<smem>>
    %205 = vector.broadcast %204 : f32 to vector<1x352xf32>
    %206 = arith.mulf %205, %133 : vector<1x352xf32>
    %207 = arith.addf %203, %206 : vector<1x352xf32>
    %c52 = arith.constant 52 : index
    %208 = memref.load %arg4[%c52] : memref<98xf32, #tpu.memory_space<smem>>
    %209 = vector.broadcast %208 : f32 to vector<1x352xf32>
    %210 = arith.mulf %209, %141 : vector<1x352xf32>
    %211 = arith.addf %207, %210 : vector<1x352xf32>
    %c53 = arith.constant 53 : index
    %212 = memref.load %arg4[%c53] : memref<98xf32, #tpu.memory_space<smem>>
    %213 = vector.broadcast %212 : f32 to vector<1x352xf32>
    %214 = arith.mulf %213, %149 : vector<1x352xf32>
    %215 = arith.addf %211, %214 : vector<1x352xf32>
    %c54 = arith.constant 54 : index
    %216 = memref.load %arg4[%c54] : memref<98xf32, #tpu.memory_space<smem>>
    %217 = vector.broadcast %216 : f32 to vector<1x352xf32>
    %218 = arith.mulf %217, %157 : vector<1x352xf32>
    %219 = arith.addf %215, %218 : vector<1x352xf32>
    %c55 = arith.constant 55 : index
    %220 = memref.load %arg4[%c55] : memref<98xf32, #tpu.memory_space<smem>>
    %221 = vector.broadcast %220 : f32 to vector<1x352xf32>
    %222 = arith.mulf %221, %165 : vector<1x352xf32>
    %223 = arith.addf %219, %222 : vector<1x352xf32>
    %c0_84 = arith.constant 0 : index
    %c0_85 = arith.constant 0 : index
    %224 = vector.load %arg8[%c0_84, %c0_85] : memref<1x352xf32, #tpu.memory_space<vmem>>, vector<1x352xf32>
    tpu.vector_store %arg8[%c0_84, %c0_85], %223 {strides = array<i32>} : memref<1x352xf32, #tpu.memory_space<vmem>>, vector<1x352xf32>,
    %c0_86 = arith.constant 0 : index
    %c0_87 = arith.constant 0 : index
    %225 = vector.load %arg8[%c0_86, %c0_87] : memref<1x352xf32, #tpu.memory_space<vmem>>, vector<1x256xf32>
    %226 = arith.addf %166, %225 : vector<1x256xf32>
    %cst_88 = arith.constant 0.000000e+00 : f32
    %227 = vector.broadcast %cst_88 : f32 to vector<1x352xf32>
    %c7 = arith.constant 7 : index
    %228 = memref.load %arg4[%c7] : memref<98xf32, #tpu.memory_space<smem>>
    %229 = vector.broadcast %228 : f32 to vector<1x352xf32>
    %230 = arith.mulf %229, %61 : vector<1x352xf32>
    %231 = arith.addf %227, %230 : vector<1x352xf32>
    %c8 = arith.constant 8 : index
    %232 = memref.load %arg4[%c8] : memref<98xf32, #tpu.memory_space<smem>>
    %233 = vector.broadcast %232 : f32 to vector<1x352xf32>
    %234 = arith.mulf %233, %69 : vector<1x352xf32>
    %235 = arith.addf %231, %234 : vector<1x352xf32>
    %c9 = arith.constant 9 : index
    %236 = memref.load %arg4[%c9] : memref<98xf32, #tpu.memory_space<smem>>
    %237 = vector.broadcast %236 : f32 to vector<1x352xf32>
    %238 = arith.mulf %237, %77 : vector<1x352xf32>
    %239 = arith.addf %235, %238 : vector<1x352xf32>
    %c10 = arith.constant 10 : index
    %240 = memref.load %arg4[%c10] : memref<98xf32, #tpu.memory_space<smem>>
    %241 = vector.broadcast %240 : f32 to vector<1x352xf32>
    %242 = arith.mulf %241, %85 : vector<1x352xf32>
    %243 = arith.addf %239, %242 : vector<1x352xf32>
    %c11 = arith.constant 11 : index
    %244 = memref.load %arg4[%c11] : memref<98xf32, #tpu.memory_space<smem>>
    %245 = vector.broadcast %244 : f32 to vector<1x352xf32>
    %246 = arith.mulf %245, %93 : vector<1x352xf32>
    %247 = arith.addf %243, %246 : vector<1x352xf32>
    %c12 = arith.constant 12 : index
    %248 = memref.load %arg4[%c12] : memref<98xf32, #tpu.memory_space<smem>>
    %249 = vector.broadcast %248 : f32 to vector<1x352xf32>
    %250 = arith.mulf %249, %101 : vector<1x352xf32>
    %251 = arith.addf %247, %250 : vector<1x352xf32>
    %c13 = arith.constant 13 : index
    %252 = memref.load %arg4[%c13] : memref<98xf32, #tpu.memory_space<smem>>
    %253 = vector.broadcast %252 : f32 to vector<1x352xf32>
    %254 = arith.mulf %253, %109 : vector<1x352xf32>
    %255 = arith.addf %251, %254 : vector<1x352xf32>
    %c56 = arith.constant 56 : index
    %256 = memref.load %arg4[%c56] : memref<98xf32, #tpu.memory_space<smem>>
    %257 = vector.broadcast %256 : f32 to vector<1x352xf32>
    %258 = arith.mulf %257, %117 : vector<1x352xf32>
    %259 = arith.addf %255, %258 : vector<1x352xf32>
    %c57 = arith.constant 57 : index
    %260 = memref.load %arg4[%c57] : memref<98xf32, #tpu.memory_space<smem>>
    %261 = vector.broadcast %260 : f32 to vector<1x352xf32>
    %262 = arith.mulf %261, %125 : vector<1x352xf32>
    %263 = arith.addf %259, %262 : vector<1x352xf32>
    %c58 = arith.constant 58 : index
    %264 = memref.load %arg4[%c58] : memref<98xf32, #tpu.memory_space<smem>>
    %265 = vector.broadcast %264 : f32 to vector<1x352xf32>
    %266 = arith.mulf %265, %133 : vector<1x352xf32>
    %267 = arith.addf %263, %266 : vector<1x352xf32>
    %c59 = arith.constant 59 : index
    %268 = memref.load %arg4[%c59] : memref<98xf32, #tpu.memory_space<smem>>
    %269 = vector.broadcast %268 : f32 to vector<1x352xf32>
    %270 = arith.mulf %269, %141 : vector<1x352xf32>
    %271 = arith.addf %267, %270 : vector<1x352xf32>
    %c60 = arith.constant 60 : index
    %272 = memref.load %arg4[%c60] : memref<98xf32, #tpu.memory_space<smem>>
    %273 = vector.broadcast %272 : f32 to vector<1x352xf32>
    %274 = arith.mulf %273, %149 : vector<1x352xf32>
    %275 = arith.addf %271, %274 : vector<1x352xf32>
    %c61 = arith.constant 61 : index
    %276 = memref.load %arg4[%c61] : memref<98xf32, #tpu.memory_space<smem>>
    %277 = vector.broadcast %276 : f32 to vector<1x352xf32>
    %278 = arith.mulf %277, %157 : vector<1x352xf32>
    %279 = arith.addf %275, %278 : vector<1x352xf32>
    %c62 = arith.constant 62 : index
    %280 = memref.load %arg4[%c62] : memref<98xf32, #tpu.memory_space<smem>>
    %281 = vector.broadcast %280 : f32 to vector<1x352xf32>
    %282 = arith.mulf %281, %165 : vector<1x352xf32>
    %283 = arith.addf %279, %282 : vector<1x352xf32>
    %c0_89 = arith.constant 0 : index
    %c0_90 = arith.constant 0 : index
    %284 = vector.load %arg8[%c0_89, %c0_90] : memref<1x352xf32, #tpu.memory_space<vmem>>, vector<1x352xf32>
    tpu.vector_store %arg8[%c0_89, %c0_90], %283 {strides = array<i32>} : memref<1x352xf32, #tpu.memory_space<vmem>>, vector<1x352xf32>,
    %c0_91 = arith.constant 0 : index
    %c16 = arith.constant 16 : index
    %285 = vector.load %arg8[%c0_91, %c16] : memref<1x352xf32, #tpu.memory_space<vmem>>, vector<1x256xf32>
    %286 = arith.addf %226, %285 : vector<1x256xf32>
    %cst_92 = arith.constant 0.000000e+00 : f32
    %287 = vector.broadcast %cst_92 : f32 to vector<1x352xf32>
    %c14 = arith.constant 14 : index
    %288 = memref.load %arg4[%c14] : memref<98xf32, #tpu.memory_space<smem>>
    %289 = vector.broadcast %288 : f32 to vector<1x352xf32>
    %290 = arith.mulf %289, %61 : vector<1x352xf32>
    %291 = arith.addf %287, %290 : vector<1x352xf32>
    %c15 = arith.constant 15 : index
    %292 = memref.load %arg4[%c15] : memref<98xf32, #tpu.memory_space<smem>>
    %293 = vector.broadcast %292 : f32 to vector<1x352xf32>
    %294 = arith.mulf %293, %69 : vector<1x352xf32>
    %295 = arith.addf %291, %294 : vector<1x352xf32>
    %c16_93 = arith.constant 16 : index
    %296 = memref.load %arg4[%c16_93] : memref<98xf32, #tpu.memory_space<smem>>
    %297 = vector.broadcast %296 : f32 to vector<1x352xf32>
    %298 = arith.mulf %297, %77 : vector<1x352xf32>
    %299 = arith.addf %295, %298 : vector<1x352xf32>
    %c17 = arith.constant 17 : index
    %300 = memref.load %arg4[%c17] : memref<98xf32, #tpu.memory_space<smem>>
    %301 = vector.broadcast %300 : f32 to vector<1x352xf32>
    %302 = arith.mulf %301, %85 : vector<1x352xf32>
    %303 = arith.addf %299, %302 : vector<1x352xf32>
    %c18 = arith.constant 18 : index
    %304 = memref.load %arg4[%c18] : memref<98xf32, #tpu.memory_space<smem>>
    %305 = vector.broadcast %304 : f32 to vector<1x352xf32>
    %306 = arith.mulf %305, %93 : vector<1x352xf32>
    %307 = arith.addf %303, %306 : vector<1x352xf32>
    %c19 = arith.constant 19 : index
    %308 = memref.load %arg4[%c19] : memref<98xf32, #tpu.memory_space<smem>>
    %309 = vector.broadcast %308 : f32 to vector<1x352xf32>
    %310 = arith.mulf %309, %101 : vector<1x352xf32>
    %311 = arith.addf %307, %310 : vector<1x352xf32>
    %c20 = arith.constant 20 : index
    %312 = memref.load %arg4[%c20] : memref<98xf32, #tpu.memory_space<smem>>
    %313 = vector.broadcast %312 : f32 to vector<1x352xf32>
    %314 = arith.mulf %313, %109 : vector<1x352xf32>
    %315 = arith.addf %311, %314 : vector<1x352xf32>
    %c63 = arith.constant 63 : index
    %316 = memref.load %arg4[%c63] : memref<98xf32, #tpu.memory_space<smem>>
    %317 = vector.broadcast %316 : f32 to vector<1x352xf32>
    %318 = arith.mulf %317, %117 : vector<1x352xf32>
    %319 = arith.addf %315, %318 : vector<1x352xf32>
    %c64 = arith.constant 64 : index
    %320 = memref.load %arg4[%c64] : memref<98xf32, #tpu.memory_space<smem>>
    %321 = vector.broadcast %320 : f32 to vector<1x352xf32>
    %322 = arith.mulf %321, %125 : vector<1x352xf32>
    %323 = arith.addf %319, %322 : vector<1x352xf32>
    %c65 = arith.constant 65 : index
    %324 = memref.load %arg4[%c65] : memref<98xf32, #tpu.memory_space<smem>>
    %325 = vector.broadcast %324 : f32 to vector<1x352xf32>
    %326 = arith.mulf %325, %133 : vector<1x352xf32>
    %327 = arith.addf %323, %326 : vector<1x352xf32>
    %c66 = arith.constant 66 : index
    %328 = memref.load %arg4[%c66] : memref<98xf32, #tpu.memory_space<smem>>
    %329 = vector.broadcast %328 : f32 to vector<1x352xf32>
    %330 = arith.mulf %329, %141 : vector<1x352xf32>
    %331 = arith.addf %327, %330 : vector<1x352xf32>
    %c67 = arith.constant 67 : index
    %332 = memref.load %arg4[%c67] : memref<98xf32, #tpu.memory_space<smem>>
    %333 = vector.broadcast %332 : f32 to vector<1x352xf32>
    %334 = arith.mulf %333, %149 : vector<1x352xf32>
    %335 = arith.addf %331, %334 : vector<1x352xf32>
    %c68 = arith.constant 68 : index
    %336 = memref.load %arg4[%c68] : memref<98xf32, #tpu.memory_space<smem>>
    %337 = vector.broadcast %336 : f32 to vector<1x352xf32>
    %338 = arith.mulf %337, %157 : vector<1x352xf32>
    %339 = arith.addf %335, %338 : vector<1x352xf32>
    %c69 = arith.constant 69 : index
    %340 = memref.load %arg4[%c69] : memref<98xf32, #tpu.memory_space<smem>>
    %341 = vector.broadcast %340 : f32 to vector<1x352xf32>
    %342 = arith.mulf %341, %165 : vector<1x352xf32>
    %343 = arith.addf %339, %342 : vector<1x352xf32>
    %c0_94 = arith.constant 0 : index
    %c0_95 = arith.constant 0 : index
    %344 = vector.load %arg8[%c0_94, %c0_95] : memref<1x352xf32, #tpu.memory_space<vmem>>, vector<1x352xf32>
    tpu.vector_store %arg8[%c0_94, %c0_95], %343 {strides = array<i32>} : memref<1x352xf32, #tpu.memory_space<vmem>>, vector<1x352xf32>,
    %c0_96 = arith.constant 0 : index
    %c32 = arith.constant 32 : index
    %345 = vector.load %arg8[%c0_96, %c32] : memref<1x352xf32, #tpu.memory_space<vmem>>, vector<1x256xf32>
    %346 = arith.addf %286, %345 : vector<1x256xf32>
    %cst_97 = arith.constant 0.000000e+00 : f32
    %347 = vector.broadcast %cst_97 : f32 to vector<1x352xf32>
    %c21 = arith.constant 21 : index
    %348 = memref.load %arg4[%c21] : memref<98xf32, #tpu.memory_space<smem>>
    %349 = vector.broadcast %348 : f32 to vector<1x352xf32>
    %350 = arith.mulf %349, %61 : vector<1x352xf32>
    %351 = arith.addf %347, %350 : vector<1x352xf32>
    %c22 = arith.constant 22 : index
    %352 = memref.load %arg4[%c22] : memref<98xf32, #tpu.memory_space<smem>>
    %353 = vector.broadcast %352 : f32 to vector<1x352xf32>
    %354 = arith.mulf %353, %69 : vector<1x352xf32>
    %355 = arith.addf %351, %354 : vector<1x352xf32>
    %c23 = arith.constant 23 : index
    %356 = memref.load %arg4[%c23] : memref<98xf32, #tpu.memory_space<smem>>
    %357 = vector.broadcast %356 : f32 to vector<1x352xf32>
    %358 = arith.mulf %357, %77 : vector<1x352xf32>
    %359 = arith.addf %355, %358 : vector<1x352xf32>
    %c24 = arith.constant 24 : index
    %360 = memref.load %arg4[%c24] : memref<98xf32, #tpu.memory_space<smem>>
    %361 = vector.broadcast %360 : f32 to vector<1x352xf32>
    %362 = arith.mulf %361, %85 : vector<1x352xf32>
    %363 = arith.addf %359, %362 : vector<1x352xf32>
    %c25 = arith.constant 25 : index
    %364 = memref.load %arg4[%c25] : memref<98xf32, #tpu.memory_space<smem>>
    %365 = vector.broadcast %364 : f32 to vector<1x352xf32>
    %366 = arith.mulf %365, %93 : vector<1x352xf32>
    %367 = arith.addf %363, %366 : vector<1x352xf32>
    %c26 = arith.constant 26 : index
    %368 = memref.load %arg4[%c26] : memref<98xf32, #tpu.memory_space<smem>>
    %369 = vector.broadcast %368 : f32 to vector<1x352xf32>
    %370 = arith.mulf %369, %101 : vector<1x352xf32>
    %371 = arith.addf %367, %370 : vector<1x352xf32>
    %c27 = arith.constant 27 : index
    %372 = memref.load %arg4[%c27] : memref<98xf32, #tpu.memory_space<smem>>
    %373 = vector.broadcast %372 : f32 to vector<1x352xf32>
    %374 = arith.mulf %373, %109 : vector<1x352xf32>
    %375 = arith.addf %371, %374 : vector<1x352xf32>
    %c70 = arith.constant 70 : index
    %376 = memref.load %arg4[%c70] : memref<98xf32, #tpu.memory_space<smem>>
    %377 = vector.broadcast %376 : f32 to vector<1x352xf32>
    %378 = arith.mulf %377, %117 : vector<1x352xf32>
    %379 = arith.addf %375, %378 : vector<1x352xf32>
    %c71 = arith.constant 71 : index
    %380 = memref.load %arg4[%c71] : memref<98xf32, #tpu.memory_space<smem>>
    %381 = vector.broadcast %380 : f32 to vector<1x352xf32>
    %382 = arith.mulf %381, %125 : vector<1x352xf32>
    %383 = arith.addf %379, %382 : vector<1x352xf32>
    %c72 = arith.constant 72 : index
    %384 = memref.load %arg4[%c72] : memref<98xf32, #tpu.memory_space<smem>>
    %385 = vector.broadcast %384 : f32 to vector<1x352xf32>
    %386 = arith.mulf %385, %133 : vector<1x352xf32>
    %387 = arith.addf %383, %386 : vector<1x352xf32>
    %c73 = arith.constant 73 : index
    %388 = memref.load %arg4[%c73] : memref<98xf32, #tpu.memory_space<smem>>
    %389 = vector.broadcast %388 : f32 to vector<1x352xf32>
    %390 = arith.mulf %389, %141 : vector<1x352xf32>
    %391 = arith.addf %387, %390 : vector<1x352xf32>
    %c74 = arith.constant 74 : index
    %392 = memref.load %arg4[%c74] : memref<98xf32, #tpu.memory_space<smem>>
    %393 = vector.broadcast %392 : f32 to vector<1x352xf32>
    %394 = arith.mulf %393, %149 : vector<1x352xf32>
    %395 = arith.addf %391, %394 : vector<1x352xf32>
    %c75 = arith.constant 75 : index
    %396 = memref.load %arg4[%c75] : memref<98xf32, #tpu.memory_space<smem>>
    %397 = vector.broadcast %396 : f32 to vector<1x352xf32>
    %398 = arith.mulf %397, %157 : vector<1x352xf32>
    %399 = arith.addf %395, %398 : vector<1x352xf32>
    %c76 = arith.constant 76 : index
    %400 = memref.load %arg4[%c76] : memref<98xf32, #tpu.memory_space<smem>>
    %401 = vector.broadcast %400 : f32 to vector<1x352xf32>
    %402 = arith.mulf %401, %165 : vector<1x352xf32>
    %403 = arith.addf %399, %402 : vector<1x352xf32>
    %c0_98 = arith.constant 0 : index
    %c0_99 = arith.constant 0 : index
    %404 = vector.load %arg8[%c0_98, %c0_99] : memref<1x352xf32, #tpu.memory_space<vmem>>, vector<1x352xf32>
    tpu.vector_store %arg8[%c0_98, %c0_99], %403 {strides = array<i32>} : memref<1x352xf32, #tpu.memory_space<vmem>>, vector<1x352xf32>,
    %c0_100 = arith.constant 0 : index
    %c48 = arith.constant 48 : index
    %405 = vector.load %arg8[%c0_100, %c48] : memref<1x352xf32, #tpu.memory_space<vmem>>, vector<1x256xf32>
    %406 = arith.addf %346, %405 : vector<1x256xf32>
    %cst_101 = arith.constant 0.000000e+00 : f32
    %407 = vector.broadcast %cst_101 : f32 to vector<1x352xf32>
    %c28 = arith.constant 28 : index
    %408 = memref.load %arg4[%c28] : memref<98xf32, #tpu.memory_space<smem>>
    %409 = vector.broadcast %408 : f32 to vector<1x352xf32>
    %410 = arith.mulf %409, %61 : vector<1x352xf32>
    %411 = arith.addf %407, %410 : vector<1x352xf32>
    %c29 = arith.constant 29 : index
    %412 = memref.load %arg4[%c29] : memref<98xf32, #tpu.memory_space<smem>>
    %413 = vector.broadcast %412 : f32 to vector<1x352xf32>
    %414 = arith.mulf %413, %69 : vector<1x352xf32>
    %415 = arith.addf %411, %414 : vector<1x352xf32>
    %c30 = arith.constant 30 : index
    %416 = memref.load %arg4[%c30] : memref<98xf32, #tpu.memory_space<smem>>
    %417 = vector.broadcast %416 : f32 to vector<1x352xf32>
    %418 = arith.mulf %417, %77 : vector<1x352xf32>
    %419 = arith.addf %415, %418 : vector<1x352xf32>
    %c31 = arith.constant 31 : index
    %420 = memref.load %arg4[%c31] : memref<98xf32, #tpu.memory_space<smem>>
    %421 = vector.broadcast %420 : f32 to vector<1x352xf32>
    %422 = arith.mulf %421, %85 : vector<1x352xf32>
    %423 = arith.addf %419, %422 : vector<1x352xf32>
    %c32_102 = arith.constant 32 : index
    %424 = memref.load %arg4[%c32_102] : memref<98xf32, #tpu.memory_space<smem>>
    %425 = vector.broadcast %424 : f32 to vector<1x352xf32>
    %426 = arith.mulf %425, %93 : vector<1x352xf32>
    %427 = arith.addf %423, %426 : vector<1x352xf32>
    %c33 = arith.constant 33 : index
    %428 = memref.load %arg4[%c33] : memref<98xf32, #tpu.memory_space<smem>>
    %429 = vector.broadcast %428 : f32 to vector<1x352xf32>
    %430 = arith.mulf %429, %101 : vector<1x352xf32>
    %431 = arith.addf %427, %430 : vector<1x352xf32>
    %c34 = arith.constant 34 : index
    %432 = memref.load %arg4[%c34] : memref<98xf32, #tpu.memory_space<smem>>
    %433 = vector.broadcast %432 : f32 to vector<1x352xf32>
    %434 = arith.mulf %433, %109 : vector<1x352xf32>
    %435 = arith.addf %431, %434 : vector<1x352xf32>
    %c77_103 = arith.constant 77 : index
    %436 = memref.load %arg4[%c77_103] : memref<98xf32, #tpu.memory_space<smem>>
    %437 = vector.broadcast %436 : f32 to vector<1x352xf32>
    %438 = arith.mulf %437, %117 : vector<1x352xf32>
    %439 = arith.addf %435, %438 : vector<1x352xf32>
    %c78_104 = arith.constant 78 : index
    %440 = memref.load %arg4[%c78_104] : memref<98xf32, #tpu.memory_space<smem>>
    %441 = vector.broadcast %440 : f32 to vector<1x352xf32>
    %442 = arith.mulf %441, %125 : vector<1x352xf32>
    %443 = arith.addf %439, %442 : vector<1x352xf32>
    %c79_105 = arith.constant 79 : index
    %444 = memref.load %arg4[%c79_105] : memref<98xf32, #tpu.memory_space<smem>>
    %445 = vector.broadcast %444 : f32 to vector<1x352xf32>
    %446 = arith.mulf %445, %133 : vector<1x352xf32>
    %447 = arith.addf %443, %446 : vector<1x352xf32>
    %c80_106 = arith.constant 80 : index
    %448 = memref.load %arg4[%c80_106] : memref<98xf32, #tpu.memory_space<smem>>
    %449 = vector.broadcast %448 : f32 to vector<1x352xf32>
    %450 = arith.mulf %449, %141 : vector<1x352xf32>
    %451 = arith.addf %447, %450 : vector<1x352xf32>
    %c81_107 = arith.constant 81 : index
    %452 = memref.load %arg4[%c81_107] : memref<98xf32, #tpu.memory_space<smem>>
    %453 = vector.broadcast %452 : f32 to vector<1x352xf32>
    %454 = arith.mulf %453, %149 : vector<1x352xf32>
    %455 = arith.addf %451, %454 : vector<1x352xf32>
    %c82_108 = arith.constant 82 : index
    %456 = memref.load %arg4[%c82_108] : memref<98xf32, #tpu.memory_space<smem>>
    %457 = vector.broadcast %456 : f32 to vector<1x352xf32>
    %458 = arith.mulf %457, %157 : vector<1x352xf32>
    %459 = arith.addf %455, %458 : vector<1x352xf32>
    %c83_109 = arith.constant 83 : index
    %460 = memref.load %arg4[%c83_109] : memref<98xf32, #tpu.memory_space<smem>>
    %461 = vector.broadcast %460 : f32 to vector<1x352xf32>
    %462 = arith.mulf %461, %165 : vector<1x352xf32>
    %463 = arith.addf %459, %462 : vector<1x352xf32>
    %c0_110 = arith.constant 0 : index
    %c0_111 = arith.constant 0 : index
    %464 = vector.load %arg8[%c0_110, %c0_111] : memref<1x352xf32, #tpu.memory_space<vmem>>, vector<1x352xf32>
    tpu.vector_store %arg8[%c0_110, %c0_111], %463 {strides = array<i32>} : memref<1x352xf32, #tpu.memory_space<vmem>>, vector<1x352xf32>,
    %c0_112 = arith.constant 0 : index
    %c64_113 = arith.constant 64 : index
    %465 = vector.load %arg8[%c0_112, %c64_113] : memref<1x352xf32, #tpu.memory_space<vmem>>, vector<1x256xf32>
    %466 = arith.addf %406, %465 : vector<1x256xf32>
    %cst_114 = arith.constant 0.000000e+00 : f32
    %467 = vector.broadcast %cst_114 : f32 to vector<1x352xf32>
    %c35 = arith.constant 35 : index
    %468 = memref.load %arg4[%c35] : memref<98xf32, #tpu.memory_space<smem>>
    %469 = vector.broadcast %468 : f32 to vector<1x352xf32>
    %470 = arith.mulf %469, %61 : vector<1x352xf32>
    %471 = arith.addf %467, %470 : vector<1x352xf32>
    %c36 = arith.constant 36 : index
    %472 = memref.load %arg4[%c36] : memref<98xf32, #tpu.memory_space<smem>>
    %473 = vector.broadcast %472 : f32 to vector<1x352xf32>
    %474 = arith.mulf %473, %69 : vector<1x352xf32>
    %475 = arith.addf %471, %474 : vector<1x352xf32>
    %c37 = arith.constant 37 : index
    %476 = memref.load %arg4[%c37] : memref<98xf32, #tpu.memory_space<smem>>
    %477 = vector.broadcast %476 : f32 to vector<1x352xf32>
    %478 = arith.mulf %477, %77 : vector<1x352xf32>
    %479 = arith.addf %475, %478 : vector<1x352xf32>
    %c38 = arith.constant 38 : index
    %480 = memref.load %arg4[%c38] : memref<98xf32, #tpu.memory_space<smem>>
    %481 = vector.broadcast %480 : f32 to vector<1x352xf32>
    %482 = arith.mulf %481, %85 : vector<1x352xf32>
    %483 = arith.addf %479, %482 : vector<1x352xf32>
    %c39 = arith.constant 39 : index
    %484 = memref.load %arg4[%c39] : memref<98xf32, #tpu.memory_space<smem>>
    %485 = vector.broadcast %484 : f32 to vector<1x352xf32>
    %486 = arith.mulf %485, %93 : vector<1x352xf32>
    %487 = arith.addf %483, %486 : vector<1x352xf32>
    %c40 = arith.constant 40 : index
    %488 = memref.load %arg4[%c40] : memref<98xf32, #tpu.memory_space<smem>>
    %489 = vector.broadcast %488 : f32 to vector<1x352xf32>
    %490 = arith.mulf %489, %101 : vector<1x352xf32>
    %491 = arith.addf %487, %490 : vector<1x352xf32>
    %c41 = arith.constant 41 : index
    %492 = memref.load %arg4[%c41] : memref<98xf32, #tpu.memory_space<smem>>
    %493 = vector.broadcast %492 : f32 to vector<1x352xf32>
    %494 = arith.mulf %493, %109 : vector<1x352xf32>
    %495 = arith.addf %491, %494 : vector<1x352xf32>
    %c84 = arith.constant 84 : index
    %496 = memref.load %arg4[%c84] : memref<98xf32, #tpu.memory_space<smem>>
    %497 = vector.broadcast %496 : f32 to vector<1x352xf32>
    %498 = arith.mulf %497, %117 : vector<1x352xf32>
    %499 = arith.addf %495, %498 : vector<1x352xf32>
    %c85 = arith.constant 85 : index
    %500 = memref.load %arg4[%c85] : memref<98xf32, #tpu.memory_space<smem>>
    %501 = vector.broadcast %500 : f32 to vector<1x352xf32>
    %502 = arith.mulf %501, %125 : vector<1x352xf32>
    %503 = arith.addf %499, %502 : vector<1x352xf32>
    %c86 = arith.constant 86 : index
    %504 = memref.load %arg4[%c86] : memref<98xf32, #tpu.memory_space<smem>>
    %505 = vector.broadcast %504 : f32 to vector<1x352xf32>
    %506 = arith.mulf %505, %133 : vector<1x352xf32>
    %507 = arith.addf %503, %506 : vector<1x352xf32>
    %c87 = arith.constant 87 : index
    %508 = memref.load %arg4[%c87] : memref<98xf32, #tpu.memory_space<smem>>
    %509 = vector.broadcast %508 : f32 to vector<1x352xf32>
    %510 = arith.mulf %509, %141 : vector<1x352xf32>
    %511 = arith.addf %507, %510 : vector<1x352xf32>
    %c88 = arith.constant 88 : index
    %512 = memref.load %arg4[%c88] : memref<98xf32, #tpu.memory_space<smem>>
    %513 = vector.broadcast %512 : f32 to vector<1x352xf32>
    %514 = arith.mulf %513, %149 : vector<1x352xf32>
    %515 = arith.addf %511, %514 : vector<1x352xf32>
    %c89 = arith.constant 89 : index
    %516 = memref.load %arg4[%c89] : memref<98xf32, #tpu.memory_space<smem>>
    %517 = vector.broadcast %516 : f32 to vector<1x352xf32>
    %518 = arith.mulf %517, %157 : vector<1x352xf32>
    %519 = arith.addf %515, %518 : vector<1x352xf32>
    %c90 = arith.constant 90 : index
    %520 = memref.load %arg4[%c90] : memref<98xf32, #tpu.memory_space<smem>>
    %521 = vector.broadcast %520 : f32 to vector<1x352xf32>
    %522 = arith.mulf %521, %165 : vector<1x352xf32>
    %523 = arith.addf %519, %522 : vector<1x352xf32>
    %c0_115 = arith.constant 0 : index
    %c0_116 = arith.constant 0 : index
    %524 = vector.load %arg8[%c0_115, %c0_116] : memref<1x352xf32, #tpu.memory_space<vmem>>, vector<1x352xf32>
    tpu.vector_store %arg8[%c0_115, %c0_116], %523 {strides = array<i32>} : memref<1x352xf32, #tpu.memory_space<vmem>>, vector<1x352xf32>,
    %c0_117 = arith.constant 0 : index
    %c80_118 = arith.constant 80 : index
    %525 = vector.load %arg8[%c0_117, %c80_118] : memref<1x352xf32, #tpu.memory_space<vmem>>, vector<1x256xf32>
    %526 = arith.addf %466, %525 : vector<1x256xf32>
    %cst_119 = arith.constant 0.000000e+00 : f32
    %527 = vector.broadcast %cst_119 : f32 to vector<1x352xf32>
    %c42 = arith.constant 42 : index
    %528 = memref.load %arg4[%c42] : memref<98xf32, #tpu.memory_space<smem>>
    %529 = vector.broadcast %528 : f32 to vector<1x352xf32>
    %530 = arith.mulf %529, %61 : vector<1x352xf32>
    %531 = arith.addf %527, %530 : vector<1x352xf32>
    %c43 = arith.constant 43 : index
    %532 = memref.load %arg4[%c43] : memref<98xf32, #tpu.memory_space<smem>>
    %533 = vector.broadcast %532 : f32 to vector<1x352xf32>
    %534 = arith.mulf %533, %69 : vector<1x352xf32>
    %535 = arith.addf %531, %534 : vector<1x352xf32>
    %c44 = arith.constant 44 : index
    %536 = memref.load %arg4[%c44] : memref<98xf32, #tpu.memory_space<smem>>
    %537 = vector.broadcast %536 : f32 to vector<1x352xf32>
    %538 = arith.mulf %537, %77 : vector<1x352xf32>
    %539 = arith.addf %535, %538 : vector<1x352xf32>
    %c45 = arith.constant 45 : index
    %540 = memref.load %arg4[%c45] : memref<98xf32, #tpu.memory_space<smem>>
    %541 = vector.broadcast %540 : f32 to vector<1x352xf32>
    %542 = arith.mulf %541, %85 : vector<1x352xf32>
    %543 = arith.addf %539, %542 : vector<1x352xf32>
    %c46 = arith.constant 46 : index
    %544 = memref.load %arg4[%c46] : memref<98xf32, #tpu.memory_space<smem>>
    %545 = vector.broadcast %544 : f32 to vector<1x352xf32>
    %546 = arith.mulf %545, %93 : vector<1x352xf32>
    %547 = arith.addf %543, %546 : vector<1x352xf32>
    %c47 = arith.constant 47 : index
    %548 = memref.load %arg4[%c47] : memref<98xf32, #tpu.memory_space<smem>>
    %549 = vector.broadcast %548 : f32 to vector<1x352xf32>
    %550 = arith.mulf %549, %101 : vector<1x352xf32>
    %551 = arith.addf %547, %550 : vector<1x352xf32>
    %c48_120 = arith.constant 48 : index
    %552 = memref.load %arg4[%c48_120] : memref<98xf32, #tpu.memory_space<smem>>
    %553 = vector.broadcast %552 : f32 to vector<1x352xf32>
    %554 = arith.mulf %553, %109 : vector<1x352xf32>
    %555 = arith.addf %551, %554 : vector<1x352xf32>
    %c91 = arith.constant 91 : index
    %556 = memref.load %arg4[%c91] : memref<98xf32, #tpu.memory_space<smem>>
    %557 = vector.broadcast %556 : f32 to vector<1x352xf32>
    %558 = arith.mulf %557, %117 : vector<1x352xf32>
    %559 = arith.addf %555, %558 : vector<1x352xf32>
    %c92 = arith.constant 92 : index
    %560 = memref.load %arg4[%c92] : memref<98xf32, #tpu.memory_space<smem>>
    %561 = vector.broadcast %560 : f32 to vector<1x352xf32>
    %562 = arith.mulf %561, %125 : vector<1x352xf32>
    %563 = arith.addf %559, %562 : vector<1x352xf32>
    %c93 = arith.constant 93 : index
    %564 = memref.load %arg4[%c93] : memref<98xf32, #tpu.memory_space<smem>>
    %565 = vector.broadcast %564 : f32 to vector<1x352xf32>
    %566 = arith.mulf %565, %133 : vector<1x352xf32>
    %567 = arith.addf %563, %566 : vector<1x352xf32>
    %c94 = arith.constant 94 : index
    %568 = memref.load %arg4[%c94] : memref<98xf32, #tpu.memory_space<smem>>
    %569 = vector.broadcast %568 : f32 to vector<1x352xf32>
    %570 = arith.mulf %569, %141 : vector<1x352xf32>
    %571 = arith.addf %567, %570 : vector<1x352xf32>
    %c95 = arith.constant 95 : index
    %572 = memref.load %arg4[%c95] : memref<98xf32, #tpu.memory_space<smem>>
    %573 = vector.broadcast %572 : f32 to vector<1x352xf32>
    %574 = arith.mulf %573, %149 : vector<1x352xf32>
    %575 = arith.addf %571, %574 : vector<1x352xf32>
    %c96 = arith.constant 96 : index
    %576 = memref.load %arg4[%c96] : memref<98xf32, #tpu.memory_space<smem>>
    %577 = vector.broadcast %576 : f32 to vector<1x352xf32>
    %578 = arith.mulf %577, %157 : vector<1x352xf32>
    %579 = arith.addf %575, %578 : vector<1x352xf32>
    %c97 = arith.constant 97 : index
    %580 = memref.load %arg4[%c97] : memref<98xf32, #tpu.memory_space<smem>>
    %581 = vector.broadcast %580 : f32 to vector<1x352xf32>
    %582 = arith.mulf %581, %165 : vector<1x352xf32>
    %583 = arith.addf %579, %582 : vector<1x352xf32>
    %c0_121 = arith.constant 0 : index
    %c0_122 = arith.constant 0 : index
    %584 = vector.load %arg8[%c0_121, %c0_122] : memref<1x352xf32, #tpu.memory_space<vmem>>, vector<1x352xf32>
    tpu.vector_store %arg8[%c0_121, %c0_122], %583 {strides = array<i32>} : memref<1x352xf32, #tpu.memory_space<vmem>>, vector<1x352xf32>,
    %c0_123 = arith.constant 0 : index
    %c96_124 = arith.constant 96 : index
    %585 = vector.load %arg8[%c0_123, %c96_124] : memref<1x352xf32, #tpu.memory_space<vmem>>, vector<1x256xf32>
    %586 = arith.addf %526, %585 : vector<1x256xf32>
    %587 = arith.negf %586 : vector<1x256xf32>
    %588 = math.exp %587 : vector<1x256xf32>
    %cst_125 = arith.constant 1.000000e+00 : f32
    %589 = vector.broadcast %cst_125 : f32 to vector<1x256xf32>
    %590 = arith.addf %589, %588 : vector<1x256xf32>
    %591 = arith.divf %589, %590 : vector<1x256xf32>
    %c0_126 = arith.constant 0 : index
    %c0_127 = arith.constant 0 : index
    %592 = vector.load %arg6[%c0_126, %c0_127] : memref<32x256xf32, #tpu.memory_space<vmem>>, vector<32x256xf32>
    %593 = vector.broadcast %591 : vector<1x256xf32> to vector<32x256xf32>
    %594 = arith.mulf %592, %593 : vector<32x256xf32>
    %c0_128 = arith.constant 0 : index
    %c0_129 = arith.constant 0 : index
    %c0_130 = arith.constant 0 : index
    %595 = vector.load %arg5[%c0_128, %c0_129, %c0_130] : memref<1x32x256xf32, #tpu.memory_space<vmem>>, vector<1x32x256xf32>
    %596 = vector.shape_cast %595 : vector<1x32x256xf32> to vector<32x256xf32>
    %597 = vector.shape_cast %594 : vector<32x256xf32> to vector<1x32x256xf32>
    tpu.vector_store %arg5[%c0_128, %c0_129, %c0_130], %597 {strides = array<i32>} : memref<1x32x256xf32, #tpu.memory_space<vmem>>, vector<1x32x256xf32>,
    return
  }
  func.func @transform_0(%arg0: i32) -> (i32, i32, i32) {
    %c0_i32 = arith.constant 0 : i32
    %c0_i32_0 = arith.constant 0 : i32
    %c0_i32_1 = arith.constant 0 : i32
    return %arg0, %c0_i32, %c0_i32_0 : i32, i32, i32
  }
  func.func @transform_1(%arg0: i32) -> (i32, i32) {
    %c0_i32 = arith.constant 0 : i32
    %c0_i32_0 = arith.constant 0 : i32
    %c0_i32_1 = arith.constant 0 : i32
    return %c0_i32, %c0_i32_0 : i32, i32
  }
  func.func @transform_2(%arg0: i32) -> (i32, i32) {
    %c0_i32 = arith.constant 0 : i32
    %c0_i32_0 = arith.constant 0 : i32
    %c0_i32_1 = arith.constant 0 : i32
    return %c0_i32, %c0_i32_0 : i32, i32
  }
  func.func @transform_3(%arg0: i32) -> i32 {
    %c0_i32 = arith.constant 0 : i32
    %c0_i32_0 = arith.constant 0 : i32
    return %c0_i32 : i32
  }
  func.func @transform_4(%arg0: i32) -> (i32, i32, i32) {
    %c0_i32 = arith.constant 0 : i32
    %c0_i32_0 = arith.constant 0 : i32
    %c0_i32_1 = arith.constant 0 : i32
    return %arg0, %c0_i32, %c0_i32_0 : i32, i32, i32
  }
}

</mosaic_0001>

<bundles_post_ra>
// kernel: tpu_custom_call.1
= control target key start
LH: loop header
LB: loop body
LE: loop exit
PB: predicated region body
PF: predicated region fallthrough
CT: control target
= control target key end

     0   :  { %s4797_s0 = inlined_call_operand.hbm [shape: f32[2,32,256], index: 0, kind: input, shape index: {}]   ;;  %s4798_s1 = inlined_call_operand.vmem [shape: f32[2,32], index: 1, kind: input, shape index: {}]   ;;  %s4799_s2 = inlined_call_operand.vmem [shape: f32[32,2], index: 2, kind: input, shape index: {}]   ;;  %s4800_s3 = inlined_call_operand.vmem [shape: f32[98], index: 3, kind: input, shape index: {}]   ;;  %s4801_s4 = inlined_call_operand.hbm [shape: f32[2,32,256], index: 4, kind: output, shape index: {}]  }
   0x1   :  { %4894 = sst [smem:[#allocation226_spill]] %s4797_s0 }
   0x2   :  { %4895 = sst [smem:[#allocation227_spill]] %s4798_s1 }
   0x3   :  { %4896 = sst [smem:[#allocation228_spill]] %s4799_s2 }
   0x4   :  { %4897 = sst [smem:[#allocation229_spill]] %s4800_s3 }
   0x5   :  { %4898 = sst [smem:[#allocation230_spill]] %s4801_s4 }
   0x6   :  { %9 = vsyncpa [#allocation6], 0 }
   0x7   :  { %11 = vsyncpa [#allocation6 + $0x1], 0 }
   0x8   :  { %12 = vsyncpa [#allocation8], 0 }
   0x9   :  { %13 = vsyncpa [#allocation7], 0 }
   0xa   :  { %15 = vsyncpa [#allocation7 + $0x1], 0  ;;  %s2769_s15 = smov 0   ;;  %s2771_s16 = smov 0  }
   0xb   :  { %s2773_s17 = smov 0   ;;  %s2775_s18 = smov 0  }
   0xc LB: > { %4899 = sst [smem:[#allocation14_spill]] %s2707_s15  ;;  %s2790_s19 = sadd.s32 4294967295, %s2719_s18   ;;  %s2719_s18 = sphi %s2775_s18, %s5377_s18   ;;  %s2715_s17 = sphi %s2773_s17, %s5380_s17   ;;  %s2711_s16 = sphi %s2771_s16, %s5379_s16   ;;  %s2707_s15 = sphi %s2769_s15, %s5378_s15  }
   0xd   : > { %4900 = sst [smem:[#allocation15_spill]] %s2711_s16  ;;  %s2319_s20 = sadd.s32 4294967294, %s2719_s18  }
   0xe   : > { %4901 = sst [smem:[#allocation16_spill]] %s2715_s17  ;;  %s2794_s21 = sadd.s32 1, %s2719_s18  }
   0xf   : > { %4902 = sst [smem:[#allocation17_spill]] %s2719_s18  ;;  %s28_s22 = sadd.s32 1, %s2715_s17 }
  0x10   : > { %4903 = sst [smem:[#allocation18_spill]] %s2790_s19  ;;  %s25_s23 = ssub.s32 %s2719_s18, %s2794_s21 }
  0x11   : > { %4904 = sst [smem:[#allocation19_spill]] %s2794_s21  ;;  %p35_p0 = scmp.ne.s32.totalorder %s2715_s17, %s2711_s16 }
  0x12   : > { %p26_p1 = scmp.eq.s32.totalorder %s25_s23, 0  ;;  %p36_p2 = scmp.eq.s32.totalorder %s2719_s18, 0 }
  0x13   : > { %p41_p3 = scmp.ne.s32.totalorder %s2711_s16, %s2707_s15  ;;  %p4803_p4 = scmp.eq.s32.totalorder %s2790_s19, 0 }
  0x14   : > { %s2806_s24 = scalar_select %p26_p1, %s2715_s17, %s28_s22  }
  0x15   : > { %p2808_p5 = por %p36_p2, %p35_p0  ;;  %p2814_p6 = por %p4803_p4, %p41_p3 }
  0x16   : > { %4905 = sst [smem:[#allocation20_spill]] %s2806_s24  ;;  %p128_p7 = scmp.eq.s32.totalorder %s2790_s19, 1 }
  0x17   : > { %s4907_s26 = scalar_select %p2814_p6, 1, 0 }
  0x18   : > { %p134_p8 = scmp.eq.s32.totalorder %s2319_s20, 1  ;;  %p2320_p9 = scmp.ge.s32.totalorder %s2719_s18, 1 }
  0x19   : > { %p141_p10 = scmp.lt.s32.totalorder %s2719_s18, 3  ;;  %p2821_p11 = por %p128_p7, %p35_p0 }
  0x1a   : > { %p2825_p12 = por %p134_p8, %p41_p3  ;;  %s4913_s3 = sld [smem:[#allocation229_spill]] }
  0x1b   : > { %s4908_s27 = scalar_select %p2821_p11, 1, 0 }
  0x1c   : > { %s4910_s28 = scalar_select %p2825_p12, 1, 0 }
  0x1d   : > { %4909 = sst [smem:[#allocation21_spill]] %s4908_s27  ;;  %p2829_p13 = pnand %p2320_p9, %p141_p10 }
  0x1e   : > { %4911 = sst [smem:[#allocation22_spill]] %s4910_s28  ;;  %p2530_p2 = scmp.lt.s32.totalorder %s2719_s18, 2 }
  0x1f   : > { %s4912_s29 = scalar_select %p2829_p13, 1, 0 }
  0x20   : > { %s160_s6 = sshll.u32 %s4913_s3, 4  ;;  %p2517_p1 = pneg %p2829_p13  ;;  %s161_s6 = int_to_ptr.vmem [resolvable:$true] %s160_s6 }
  0x21   : > { %s171_s8 = sand.u32 1, %s2715_s17   ;;  %p2849_p3 = pnand %p2530_p2, %p2808_p5 }
  0x22   : > { %p2842_p7 = pnand %p2517_p1, %p4803_p4  ;;  %s2323_s10 = sshll.u32 %s171_s8, 6 }
  0x23   : > { %s2608_s11 = scalar_lea.vmem %s161_s6, 16  ;;  %p2616_p12 = scmp.lt.s32.totalorder %s161_s6, %s161_s6 }
  0x24   : > { %p2609_p8 = scmp.ne.s32.totalorder %s161_s6, %s2608_s11  ;;  %p2610_p9 = pneg %p2842_p7 }
  0x25   : > { %p2617_p11 = scmp.lt.s32.totalorder %s2608_s11, %s2608_s11 }
  0x26   : > { %p2611_p10 = pnand %p2610_p9, %p2609_p8 }
  0x27   : > { %p2618_p1 = por %p2617_p11, %p2616_p12 }
  0x28   : > { %p2612_p0 = pneg %p2611_p10 }
  0x2a   : > { %p2619_p4 = pnand %p2618_p1, %p2612_p0 }
  0x2c   : > { %2622 = shalt.err (!%p2619_p4)
}
  0x2d   : > { %s2721_s12 = smov [#allocation9]   ;;  %s2449_s13 = sshll.u32 %s2719_s18, 10 }
  0x2e   : > { %2520 = dma.vmem_to_smem (!%p2842_p7), %s161_s6, 16, %s2721_s12, [#allocation8]  }
  0x2f   : > { %s175_s14 = scalar_lea.vmem [#allocation5], %s2323_s10  ;;  %s4916_s0 = sld [smem:[#allocation226_spill]] }
  0x30   : > { %s182_s20 = sshll.u32 %s175_s14, 4  ;;  %s2865_s30 = scalar_lea.sflag [#allocation6], %s171_s8  ;;  %s2863_s20 = int_to_ptr.vmem [resolvable:$true] %s182_s20 }
  0x31   : > { %p2625_p5 = pneg %p2849_p3 }
  0x35   : > { %s2861_s25 = scalar_lea.hbm %s4916_s0, %s2449_s13  ;;  %s2628_s10 = scalar_lea.hbm %s4916_s0, 2048 }
  0x36   : > { %s2623_s5 = scalar_lea.hbm %s2861_s25, 1024  ;;  %p2629_p0 = scmp.lt.s32.totalorder %s2861_s25, %s4916_s0 }
  0x37   : > { %p2624_p4 = scmp.ne.s32.totalorder %s2861_s25, %s2623_s5  ;;  %p2630_p2 = scmp.lt.s32.totalorder %s2628_s10, %s2623_s5 }
  0x39   : > { %p2626_p11 = pnand %p2625_p5, %p2624_p4  ;;  %p2631_p7 = por %p2630_p2, %p2629_p0 }
  0x3b   : > { %p2627_p12 = pneg %p2626_p11 }
  0x3d   : > { %p2632_p8 = pnand %p2631_p7, %p2627_p12 }
  0x3f   : > { %2635 = shalt.err (!%p2632_p8)
}
  0x40   : > { %s2636_s8 = scalar_lea.vmem %s2863_s20, 1024  ;;  %s2722_s13 = smov [#allocation5]  }
  0x41   : > { %p2637_p9 = scmp.ne.s32.totalorder %s2863_s20, %s2636_s8  ;;  %s2641_s14 = sshll.u32 %s2722_s13, 4  ;;  %s2642_s14 = int_to_ptr.vmem [resolvable:$false] %s2641_s14 }
  0x42   : > { %s2643_s22 = scalar_lea.vmem %s2642_s14, 2048  ;;  %p2644_p4 = scmp.lt.s32.totalorder %s2863_s20, %s2642_s14 }
  0x43   : > { %p2639_p10 = pnand %p2637_p9, %p2625_p5  ;;  %p2645_p11 = scmp.lt.s32.totalorder %s2643_s22, %s2636_s8 }
  0x45   : > { %p2640_p1 = pneg %p2639_p10  ;;  %p2646_p6 = por %p2645_p11, %p2644_p4 }
  0x47   : > { %p2647_p13 = pnand %p2646_p6, %p2640_p1 }
  0x49   : > { %2650 = shalt.err (!%p2647_p13)
}
  0x4a   : > { %s2723_s23 = smov 256   ;;  %s2724_s5 = smov 16  }
  0x4b   : > { %2524 = dma.hbm_to_vmem [thread:$0]  (!%p2849_p3), %s2861_s25, 1024, %s2863_s20, %s2865_s30, %s2723_s23, %s2723_s23, %s2724_s5  }
  0x4c   : > { %p4917_p5 = scmp.ne.s32.totalorder %s4912_s29, 0 }
  0x4e   : > { %194 = sbr.rel (%p4917_p5) target bundleno = 1399 (0x577), region = 36 }
  0x53   : > { %s2889_s6 = sand.u32 1, %s2711_s16   ;;  %p4919_p6 = scmp.ne.s32.totalorder %s4907_s26, 0 }
  0x54   : > { %4918 = sst [smem:[#allocation23_spill]] %s2889_s6  ;;  %s4806_s7 = sshll.u32 %s2889_s6, 6 }
  0x55   : > { %s197_s10 = scalar_lea.sflag [#allocation6], %s2889_s6  ;;  %s200_s11 = scalar_lea.vmem [#allocation5], %s4806_s7 }
  0x56   : > { %2694 = dma.done.wait (%p4919_p6), %s197_s10, 1024  }
  0x57   : > { %2696 = vsyncadd (%p4919_p6), %s197_s10, 4294966272  ;;  %p4920_p13 = scmp.eq.s32.totalorder %s2790_s19, 0 }
  0x59   : > { %2698 = dma.done.wait (%p4920_p13), [#allocation8], 16   ;;  %p4921_p3 = pmov %p4920_p13 }
  0x5b   : > { %2700 = vsyncadd (%p4921_p3), [#allocation8], 4294967280 }
  0x5c   : > { %209 = sfence }
  0x5d   : > { %v2903_v0 = vld [vmem:[%s200_s11 + $0x30] sm:$0xff]  ;;  %v2905_v1 = vld [vmem:[%s200_s11 + $0x38] sm:$0xff]  ;;  %v2907_v2 = vld [vmem:[%s200_s11 + $0x20] sm:$0xff]  ;;  %v2725_v16 = vmov 0.0   ;;  %vm2726_vm0 = vmmov 0   ;;  %s4922_s1 = sld [smem:[#allocation227_spill]] }
  0x5e   : > { %v247_v3 = vadd.f32 %v2905_v1, %v2903_v0  ;;  %v264_v4 = vmax.f32 %v2903_v0, %v2905_v1  ;;  %v2913_v5 = vld [vmem:[%s200_s11 + $0x28] sm:$0xff]  ;;  %v2915_v6 = vld [vmem:[%s200_s11 + $0x10] sm:$0xff]  ;;  %v2917_v7 = vld [vmem:[%s200_s11 + $0x18] sm:$0xff]  ;;  %2471 = vmatprep.subr.mxu0 %v2725_v16  ;;  %2482 = vmatprep.subr.mxu1 %v2725_v16  ;;  %vm4887_vm1 = vcmask 261120   ;;  %s4923_s2 = sld [smem:[#allocation228_spill]]  ;;  %vm418_vm2 = vcmask 15360  }
  0x5f   : > { %v244_v8 = vadd.f32 %v2913_v5, %v2907_v2  ;;  %v241_v9 = vadd.f32 %v2917_v7, %v2915_v6  ;;  %v2923_v10 = vld [vmem:[%s200_s11] sm:$0xff]  ;;  %v2925_v11 = vld [vmem:[%s200_s11 + $0x8] sm:$0xff]  ;;  %v261_v12 = vmax.f32 %v2907_v2, %v2913_v5  ;;  %v258_v14 = vmax.f32 %v2915_v6, %v2917_v7  ;;  %2479 = vmatprep.mubr.msk.f32.mxu0 %vm2726_vm0, %v2725_v16  ;;  %s4811_s22 = smov 51   ;;  %s2730_s23 = smov 50  }
  0x60   : > { %248 = vadd.xlane.f32.xlu0 %v247_v3  ;;  %265 = vmax.xlane.f32.xlu1 %v264_v4  ;;  %v238_v13 = vadd.f32 %v2925_v11, %v2923_v10  ;;  %v255_v15 = vmax.f32 %v2923_v10, %v2925_v11  ;;  %vm431_vm3 = vcmask 1041408   ;;  %vm707_vm4 = vcmask 1043458   ;;  %s4812_s5 = smov 49   ;;  %s4809_s10 = smov 48  }
  0x61   : > { %2490 = vmatprep.mubr.msk.f32.mxu1 %vm2726_vm0, %v2725_v16  ;;  %vm709_vm5 = vcmask 1045508   ;;  %vm711_vm6 = vcmask 416774   ;;  %vm708_vm7 = vmor %vm707_vm4, %vm431_vm3  ;;  %v2727_v40 = vmov 0   ;;  %s4807_s11 = smov 47   ;;  %s3083_s26 = sld [smem:[#allocation9 + $0x31]]  ;;  %vm833_vm11 = vcmask 416768  }
  0x62   : > { %vm710_vm8 = vmor %vm709_vm5, %vm708_vm7  ;;  %2587 = vset.pattern.permute.xlu1 %v2727_v40  ;;  %2586 = vset.pattern.permute.xlu0 %v2727_v40  ;;  %s3088_s29 = sld [smem:[#allocation9 + $0x38]]  ;;  %s4936_s17 = smov 47   ;;  %vm860_vm12 = vcmask 408576   ;;  %vm887_vm0 = vcmask 400384   ;;  %vm914_vm5 = vcmask 392192  }
  0x63   : > { %v267_v27 = vld [vmem:[%s4922_s1] sm:$0x3]  ;;  %vm712_vm9 = vmor %vm711_vm6, %vm710_vm8  ;;  %s3090_s9 = sld [smem:[#allocation9 + $0x3f]]  ;;  %s4935_s1 = smov 48  }
  0x64   : > { %245 = vadd.xlane.f32.xlu0 %v244_v8  ;;  %242 = vadd.xlane.f32.xlu1 %v241_v9  ;;  %v268_v30 = vld [vmem:[%s4923_s2] sm:$0xff]  ;;  %713 = vst.msk [vmem:[#allocation3] sm:$0xff] %vm712_vm9, %v2725_v16  ;;  %v269_v34 = vld [vmem:[%s4923_s2 + $0x8] sm:$0xff]  ;;  %v270_v35 = vld [vmem:[%s4923_s2 + $0x10] sm:$0xff]  ;;  %s3095_s20 = sld [smem:[#allocation9 + $0x46]]  ;;  %s4937_s16 = smov 51  }
  0x65   : > { %v271_v39 = vld [vmem:[%s4923_s2 + $0x18] sm:$0xff]  ;;  %s3097_s25 = sld [smem:[#allocation9 + $0x4d]]  ;;  %s4941_s15 = smov 49   ;;  %vm941_vm9 = vcmask 384000  }
  0x66   : > { %s3099_s30 = sld [smem:[#allocation9 + $0x54]] }
  0x67   : > { %s3101_s12 = sld [smem:[#allocation9 + $0x5b]] }
  0x68   : > { %262 = vmax.xlane.f32.xlu0 %v261_v12  ;;  %239 = vadd.xlane.f32.xlu1 %v238_v13  ;;  %s3106_s8 = sld [smem:[#allocation9 + $0x32]] }
  0x69   : > { %s3108_s13 = sld [smem:[#allocation9 + $0x39]] }
  0x6a   : > { %s3110_s14 = sld [smem:[#allocation9 + $0x40]] }
  0x6b   : > { %s3112_s7 = sld [smem:[#allocation9 + $0x47]] }
  0x6c   : > { %259 = vmax.xlane.f32.xlu0 %v258_v14  ;;  %256 = vmax.xlane.f32.xlu1 %v255_v15  ;;  %s3122_s0 = sld [smem:[#allocation9 + $0x5c]] }
  0x6d   : > { %s3128_s2 = sld [smem:[#allocation9 + $0x3a]] }
  0x6e   : > { %s3130_s3 = sld [smem:[#allocation9 + $0x41]] }
  0x6f   : > { %s3134_s24 = sld [smem:[#allocation9 + $0x4f]] }
  0x70   : > { %s3140_s21 = sld [smem:[#allocation9 + $0x56]] }
  0x71   : > { %s3142_s18 = sld [smem:[#allocation9 + $0x5d]] }
  0x72   : > { %s3144_s28 = sld [smem:[#allocation9 + $0x34]] }
  0x73   : > { %s3152_s27 = sld [smem:[#allocation9 + $0x42]] }
  0x74   : > { %s3154_s4 = sld [smem:[#allocation9 + $0x49]] }
  0x75   : > { %s3156_s6 = sld [smem:[#allocation9 + $0x50]] }
  0x76   : > { %s3164_s19 = sld [smem:[#allocation9 + $0x5e]] }
  0x77   : > { %4938 = sst [smem:[#allocation35_spill]] %s3142_s18 }
  0x78   : > { %4939 = sst [smem:[#allocation36_spill]] %s3144_s28 }
  0x79   : > { %4942 = sst [smem:[#allocation38_spill]] %s3152_s27  ;;  %s4827_s27 = smov 46  }
  0x7a   : > { %4943 = sst [smem:[#allocation39_spill]] %s3154_s4 }
  0x7b   : > { %4944 = sst [smem:[#allocation40_spill]] %s3156_s6 }
  0x7c   : > { %4946 = sst [smem:[#allocation42_spill]] %s3164_s19 }
  0x7d   : > { %s3168_s28 = sld [smem:[#allocation9 + $0x3c]] }
  0x7e   : > { %s3170_s18 = sld [smem:[#allocation9 + $0x43]] }
  0x7f   : > { %s3177_s6 = sld [smem:[#allocation9 + $0x51]] }
  0x80   : > { %s3179_s4 = sld [smem:[#allocation9 + $0x58]] }
  0x81   : > { %s3193_s19 = sld [smem:[#allocation9 + $0x16]] }
  0x83   : > { %4948 = sst [smem:[#allocation44_spill]] %s3168_s28 }
  0x84   : > { %4949 = sst [smem:[#allocation45_spill]] %s3170_s18 }
  0x85   : > { %4951 = sst [smem:[#allocation47_spill]] %s3177_s6 }
  0x86   : > { %4952 = sst [smem:[#allocation48_spill]] %s3179_s4 }
  0x87   : > { %s3187_s18 = sld [smem:[#allocation9 + $0x1]] }
  0x88   : > { %s3189_s28 = sld [smem:[#allocation9 + $0x8]] }
  0x89   : > { %4956 = sst [smem:[#allocation52_spill]] %s3193_s19 }
  0x8a   : > { %s3199_s4 = sld [smem:[#allocation9 + $0x24]] }
  0x8b   : > { %s3203_s6 = sld [smem:[#allocation9]] }
  0x8c   : > { %s3209_s19 = sld [smem:[#allocation9 + $0x7]] }
  0x8e   : > { %4954 = sst [smem:[#allocation50_spill]] %s3189_s28 }
  0x8f   : > { %s3213_s28 = sld [smem:[#allocation9 + $0x15]] }
  0x90   : > { %4958 = sst [smem:[#allocation54_spill]] %s3199_s4 }
  0x91   : > { %4960 = sst [smem:[#allocation56_spill]] %s3203_s6 }
  0x92   : > { %4961 = sst [smem:[#allocation57_spill]] %s3209_s19 }
  0x93   : > { %s3221_s6 = sld [smem:[#allocation9 + $0x23]] }
  0x94   : > { %s3239_s19 = sld [smem:[#allocation9 + $0x25]] }
  0x95   : > { %4963 = sst [smem:[#allocation59_spill]] %s3213_s28 }
  0x96   : > { %s3235_s28 = sld [smem:[#allocation9 + $0x17]] }
  0x97   : > { %s3251_s4 = sld [smem:[#allocation9 + $0x12]] }
  0x99   : > { %4966 = sst [smem:[#allocation61_spill]] %s3221_s6  ;;  %s4973_s6 = smov 45  }
  0x9a   : > { %4972 = sst [smem:[#allocation67_spill]] %s3239_s19 }
  0x9b   : > { %s3257_s19 = sld [smem:[#allocation9 + $0x19]] }
  0x9c   : > { %4970 = sst [smem:[#allocation65_spill]] %s3235_s28 }
  0x9d   : > { %4975 = sst [smem:[#allocation69_spill]] %s3251_s4 }
  0x9e   : > { %s3261_s28 = sld [smem:[#allocation9 + $0x27]] }
  0x9f   : > { %s3268_s4 = sld [smem:[#allocation9 + $0x3]] }
  0xa1   : > { %4976 = sst [smem:[#allocation70_spill]] %s3257_s19 }
  0xa2   : > { %s3270_s19 = sld [smem:[#allocation9 + $0xa]] }
  0xa4   : > { %4978 = sst [smem:[#allocation72_spill]] %s3261_s28 }
  0xa5   : > { %s3274_s28 = sld [smem:[#allocation9 + $0x18]] }
  0xa8   : > { %4979 = sst [smem:[#allocation73_spill]] %s3270_s19 }
  0xa9   : > { %s3283_s19 = sld [smem:[#allocation9 + $0x1f]] }
  0xe9   : > { %v249_v17 = vpop.xlane.xlu0 %248  ;;  %v266_v18 = vpop.xlane.xlu1 %265 }
  0xea   : > { %v254_v19 = vmul.f32 0.00390625, %v249_v17  ;;  %2483 = vmatpush3.msra.mxu1 %v266_v18 }
  0xeb   : > { %2484 = vmatprep.subr.mxu1 %v2725_v16 }
  0xec   : > { %2472 = vmatpush3.msra.mxu0 %v254_v19 }
  0xed   : > { %v246_v20 = vpop.xlane.xlu0 %245  ;;  %2473 = vmatprep.subr.mxu0 %v2725_v16  ;;  %v243_v21 = vpop.xlane.xlu1 %242 }
  0xee   : > { %v253_v22 = vmul.f32 0.00390625, %v246_v20  ;;  %v252_v23 = vmul.f32 0.00390625, %v243_v21 }
  0xf0   : > { %2474 = vmatpush3.msra.mxu0 %v253_v22 }
  0xf1   : > { %2475 = vmatprep.subr.mxu0 %v2725_v16  ;;  %v263_v24 = vpop.xlane.xlu0 %262  ;;  %v240_v25 = vpop.xlane.xlu1 %239 }
  0xf2   : > { %2476 = vmatpush3.msra.mxu0 %v252_v23  ;;  %2485 = vmatpush3.msra.mxu1 %v263_v24  ;;  %v251_v26 = vmul.f32 0.00390625, %v240_v25 }
  0xf3   : > { %2486 = vmatprep.subr.mxu1 %v2725_v16  ;;  %2477 = vmatprep.subr.mxu0 %v2725_v16 }
  0xf4   : > { %2478 = vmatpush3.msra.mxu0 %v251_v26 }
  0xf5   : > { %v260_v28 = vpop.xlane.xlu0 %259  ;;  %2480 = vmatmul.mubr.msk.f32.vlgmr.msra.gmra.mxu0 %vm4887_vm1, %v267_v27  ;;  %v257_v29 = vpop.xlane.xlu1 %256 }
  0xf6   : > { %2487 = vmatpush3.msra.mxu1 %v260_v28  ;;  %2495 = vmatprep.mubr.msk.f32.mxu0 %vm418_vm2, %v268_v30 }
  0xf7   : > { %2488 = vmatprep.subr.mxu1 %v2725_v16 }
  0xf8   : > { %2489 = vmatpush3.msra.mxu1 %v257_v29 }
  0xf9   : > { %2491 = vmatmul.mubr.msk.f32.vlgmr.msra.gmra.mxu1 %vm4887_vm1, %v267_v27 }
  0xfa   : > { %2503 = vmatprep.mubr.msk.f32.mxu1 %vm418_vm2, %v268_v30 }
 0x1b5   : > { %v342_v31 = vpop.f32.mrf.mxu0 }
 0x1b6   : > { %v346_v32 = vmax.f32 %v342_v31, 0.0 }
 0x1b7   : > { %v2481_v33 = vpop.f32.mrf.mxu0 }
 0x1b8   : > { %2501 = vmatprep.subr.msk.mxu1 %vm431_vm3, %v346_v32 }
 0x1b9   : > { %v413_v36 = vpop.f32.mrf.mxu1  ;;  %2502 = vmatpush3.msk.msra.mxu1 %vm431_vm3, %v346_v32 }
 0x1ba   : > { %v417_v37 = vmax.f32 %v413_v36, 0.0  ;;  %2504 = vmatmul.mubr.msk.f32.vlgmr.msra.gmra.mxu1 %vm418_vm2, %v269_v34 }
 0x1bb   : > { %v2492_v38 = vpop.f32.mrf.mxu1  ;;  %2506 = vmatprep.mubr.msk.f32.mxu1 %vm418_vm2, %v270_v35 }
 0x1bc   : > { %2493 = vmatprep.subr.msk.mxu0 %vm431_vm3, %v417_v37 }
 0x1bd   : > { %2494 = vmatpush3.msk.msra.mxu0 %vm431_vm3, %v417_v37  ;;  %v4832_v37 = vlaneseq }
 0x1be   : > { %2496 = vmatmul.mubr.msk.f32.vlgmr.msra.gmra.mxu0 %vm418_vm2, %v269_v34  ;;  %2507 = vmatmul.mubr.msk.f32.gmra.mxu1 %vm418_vm2, %v271_v39 }
 0x1bf   : > { %2498 = vmatprep.mubr.msk.f32.mxu0 %vm418_vm2, %v270_v35  ;;  %v2728_v35 = vmov 1966171168   ;;  %vm734_vm10 = vcmp.lt.s32.totalorder %v4832_v37, 256 }
 0x1c0   : > { %v718_v36 = vunpack.c.l.s4 %v2728_v35  ;;  %v3302_v35 = vstv %s3099_s30  ;;  %s4983_s30 = sld [smem:[#allocation38_spill]] }
 0x1c2   : > { %2499 = vmatmul.mubr.msk.f32.gmra.mxu0 %vm418_vm2, %v271_v39 }
 0x27a   : > { %v2505_v41 = vpop.f32.mrf.mxu1 }
 0x27c   : > { %v589_v42 = vpop.f32.mrf.mxu1 }
 0x27e   : > { %v2497_v43 = vpop.f32.mrf.mxu0  ;;  %v2508_v46 = vpop.f32.mrf.mxu1 }
 0x27f   : > { %v595_v44 = vadd.f32 %v2505_v41, %v2497_v43 }
 0x280   : > { %v501_v45 = vpop.f32.mrf.mxu0  ;;  %v599_v53 = vpop.f32.mrf.mxu1 }
 0x281   : > { %v2343_v47 = vmul.f32 -1.442695, %v595_v44  ;;  %v590_v48 = vadd.f32 %v589_v42, %v501_v45 }
 0x282   : > { %v2500_v49 = vpop.f32.mrf.mxu0 }
 0x283   : > { %2588 = vpow2.f32 %v2343_v47  ;;  %v2342_v50 = vmul.f32 -1.442695, %v590_v48  ;;  %v605_v51 = vadd.f32 %v2508_v46, %v2500_v49  ;;  %v719_v46 = vunpack.c.0.s8 %v718_v36 }
 0x284   : > { %v511_v52 = vpop.f32.mrf.mxu0  ;;  %v3006_v47 = vshrl.u32 %v4832_v37, 7  ;;  %v3305_v36 = vstv %s3101_s12  ;;  %s4985_s12 = sld [smem:[#allocation40_spill]] }
 0x285   : > { %2590 = vpow2.f32 %v2342_v50  ;;  %v2345_v54 = vmul.f32 -1.442695, %v605_v51  ;;  %v600_v55 = vadd.f32 %v599_v53, %v511_v52 }
 0x287   : > { %v2344_v56 = vmul.f32 -1.442695, %v600_v55  ;;  %2592 = vpow2.f32 %v2345_v54 }
 0x289   : > { %2594 = vpow2.f32 %v2344_v56  ;;  %v3009_v56 = vsub.s32 %v719_v46, %v3006_v47 }
 0x28b   : > { %4932 = vst [vmem:[#allocation32_spill] sm:$0xff] %v3009_v56 }
 0x290   : > { %v2589_v57 = vpop.eup %2588 }
 0x291   : > { %v621_v58 = vadd.f32 1.0, %v2589_v57 }
 0x292   : > { %v2591_v59 = vpop.eup %2590 }
 0x293   : > { %2596 = vrcp.f32 %v621_v58  ;;  %v620_v60 = vadd.f32 1.0, %v2591_v59 }
 0x294   : > { %v2593_v61 = vpop.eup %2592 }
 0x295   : > { %2598 = vrcp.f32 %v620_v60  ;;  %v623_v3 = vadd.f32 1.0, %v2593_v61 }
 0x296   : > { %v2595_v62 = vpop.eup %2594 }
 0x297   : > { %v622_v63 = vadd.f32 1.0, %v2595_v62 }
 0x299   : > { %2600 = vrcp.f32 %v622_v63 }
 0x29a   : > { %2602 = vrcp.f32 %v623_v3 }
 0x2a0   : > { %v2597_v4 = vpop.eup %2596 }
 0x2a1   : > { %639 = vperm.xlu1 %2587, %v2597_v4  }
 0x2a2   : > { %v2599_v8 = vpop.eup %2598 }
 0x2a3   : > { %634 = vperm.xlu0 %2586, %v2599_v8  }
 0x2a6   : > { %v2601_v9 = vpop.eup %2600 }
 0x2a7   : > { %644 = vperm.xlu1 %2587, %v2601_v9   ;;  %v2603_v12 = vpop.eup %2602  ;;  %v3017_v9 = vsub.s32 1, %v3006_v47 }
 0x2a9   : > { %4933 = vst [vmem:[#allocation33_spill] sm:$0xff] %v3017_v9 }
 0x2ab   : > { %649 = vperm.xlu1 %2587, %v2603_v12   ;;  %v3020_v12 = vsub.s32 0, %v3006_v47 }
 0x2ad   : > { %4934 = vst [vmem:[#allocation34_spill] sm:$0xff] %v3020_v12 }
 0x31c   : > { %v640_v13 = vpop.permute.xlu1 %639 }
 0x31d   : > { %v2972_v18 = vmul.f32 %v640_v13, %v2915_v6  ;;  %v2975_v19 = vmul.f32 %v640_v13, %v2917_v7 }
 0x31e   : > { %v635_v14 = vpop.permute.xlu0 %634 }
 0x31f   : > { %v2966_v15 = vmul.f32 %v635_v14, %v2923_v10  ;;  %v2969_v16 = vmul.f32 %v635_v14, %v2925_v11  ;;  %4926 = vst [vmem:[#allocation26_spill] sm:$0xff] %v2972_v18  ;;  %4927 = vst [vmem:[#allocation27_spill] sm:$0xff] %v2975_v19 }
 0x321   : > { %4924 = vst [vmem:[#allocation24_spill] sm:$0xff] %v2966_v15  ;;  %4925 = vst [vmem:[#allocation25_spill] sm:$0xff] %v2969_v16  ;;  %v668_v10 = vadd.f32 %v2972_v18, %v2966_v15  ;;  %v677_v11 = vadd.f32 %v2975_v19, %v2969_v16 }
 0x322   : > { %v645_v17 = vpop.permute.xlu1 %644 }
 0x323   : > { %v2978_v20 = vmul.f32 %v645_v17, %v2907_v2  ;;  %v2981_v21 = vmul.f32 %v645_v17, %v2913_v5 }
 0x325   : > { %4928 = vst [vmem:[#allocation28_spill] sm:$0xff] %v2978_v20  ;;  %4929 = vst [vmem:[#allocation29_spill] sm:$0xff] %v2981_v21  ;;  %v669_v23 = vadd.f32 %v668_v10, %v2978_v20  ;;  %v678_v6 = vadd.f32 %v677_v11, %v2981_v21  ;;  %v689_v5 = vmax.f32 %v2966_v15, %v2978_v20  ;;  %v823_v10 = vsub.s32 3, %v3006_v47 }
 0x326   : > { %v650_v22 = vpop.permute.xlu1 %649  ;;  %v698_v24 = vmax.f32 %v2969_v16, %v2981_v21  ;;  %v819_v11 = vsub.s32 2, %v3006_v47  ;;  %v3342_v47 = vstv %s3128_s2  ;;  %s4990_s2 = sld [smem:[#allocation45_spill]] }
 0x327   : > { %v2990_v7 = vmul.f32 %v650_v22, %v2903_v0  ;;  %v2993_v2 = vmul.f32 %v650_v22, %v2905_v1 }
 0x329   : > { %4930 = vst [vmem:[#allocation30_spill] sm:$0xff] %v2990_v7  ;;  %4931 = vst [vmem:[#allocation31_spill] sm:$0xff] %v2993_v2  ;;  %v670_v25 = vadd.f32 %v669_v23, %v2990_v7  ;;  %v679_v26 = vadd.f32 %v678_v6, %v2993_v2  ;;  %v690_v27 = vmax.f32 %v2972_v18, %v2990_v7 }
 0x32a   : > { %v699_v0 = vmax.f32 %v2975_v19, %v2993_v2 }
 0x32b   : > { %v671_v28 = vrot.slane %v670_v25, 4  ;;  %v680_v29 = vrot.slane %v679_v26, 4  ;;  %v691_v1 = vmax.f32 %v689_v5, %v690_v27  ;;  %v759_v27 = vand.u32 127, %v4832_v37 }
 0x32c   : > { %v700_v30 = vmax.f32 %v698_v24, %v699_v0 }
 0x32d   : > { %v672_v31 = vadd.f32 %v671_v28, %v670_v25  ;;  %v681_v32 = vadd.f32 %v680_v29, %v679_v26  ;;  %v692_v33 = vrot.slane %v691_v1, 4  ;;  %v760_v0 = vadd.s32 128, %v759_v27 }
 0x32e   : > { %v701_v34 = vrot.slane %v700_v30, 4  ;;  %v3278_v28 = vand.u32 15, %v759_v27  ;;  %v3281_v29 = vstv %s3083_s26  ;;  %s3310_s26 = sld [smem:[#allocation9 + $0x2d]] }
 0x32f   : > { %v673_v38 = vrot.slane %v672_v31, 2  ;;  %v682_v39 = vrot.slane %v681_v32, 2  ;;  %v693_v40 = vmax.f32 %v691_v1, %v692_v33  ;;  %v761_v1 = vadd.s32 256, %v759_v27 }
 0x330   : > { %v702_v41 = vmax.f32 %v700_v30, %v701_v34  ;;  %v3286_v30 = vstv %s3088_s29  ;;  %v3294_v33 = vand.u32 15, %v760_v0  ;;  %v3299_v34 = vstv %s3097_s25  ;;  %s4980_s29 = sld [smem:[#allocation35_spill]] }
 0x331   : > { %v674_v42 = vadd.f32 %v673_v38, %v672_v31  ;;  %v683_v43 = vadd.f32 %v682_v39, %v681_v32  ;;  %v694_v44 = vrot.slane %v693_v40, 2  ;;  %v3289_v31 = vstv %s3090_s9  ;;  %s3324_s9 = sld [smem:[#allocation9 + $0x5]] }
 0x332   : > { %v703_v45 = vrot.slane %v702_v41, 2  ;;  %v3292_v32 = vstv %s3095_s20  ;;  %v3308_v38 = vstv %s3106_s8  ;;  %v3313_v39 = vstv %s3108_s13  ;;  %s4981_s20 = sld [smem:[#allocation36_spill]] }
 0x333   : > { %v675_v48 = vrot.slane %v674_v42, 1  ;;  %v684_v49 = vrot.slane %v683_v43, 1  ;;  %v695_v50 = vmax.f32 %v693_v40, %v694_v44  ;;  %v3316_v40 = vstv %s3110_s14 }
 0x334   : > { %v704_v51 = vmax.f32 %v702_v41, %v703_v45  ;;  %v3319_v41 = vstv %s3112_s7  ;;  %v3334_v45 = vstv %s3122_s0  ;;  %s4984_s7 = sld [smem:[#allocation39_spill]]  ;;  %vm799_vm13 = vcmp.ge.s32.totalorder %v3278_v28, 3 }
 0x335   : > { %v676_v52 = vadd.f32 %v675_v48, %v674_v42  ;;  %v685_v53 = vadd.f32 %v684_v49, %v683_v43  ;;  %v696_v54 = vrot.slane %v695_v50, 1  ;;  %v3328_v43 = vand.u32 15, %v761_v1  ;;  %s4987_s0 = sld [smem:[#allocation42_spill]] }
 0x336   : > { %v705_v55 = vrot.slane %v704_v51, 1  ;;  %v3345_v48 = vstv %s3130_s3  ;;  %vm800_vm14 = vcmp.ge.s32.totalorder %v3294_v33, 3  ;;  %vm843_vm2 = vcmp.ge.s32.totalorder %v3278_v28, 2 }
 0x337   : > { %v687_v57 = vmul.f32 0.03125, %v676_v52  ;;  %v688_v58 = vmul.f32 0.03125, %v685_v53  ;;  %v697_v59 = vmax.f32 %v695_v50, %v696_v54  ;;  %v3351_v50 = vstv %s3134_s24  ;;  %s4992_s24 = sld [smem:[#allocation47_spill]] }
 0x338   : > { %v706_v60 = vmax.f32 %v704_v51, %v705_v55  ;;  %v3356_v53 = vstv %s3140_s21  ;;  %v3359_v54 = vstv %s4980_s29  ;;  %v3362_v55 = vstv %s4981_s20  ;;  %s4993_s21 = sld [smem:[#allocation48_spill]] }
 0x339   : > { %v716_v61 = vcombine.low %v687_v57, %v688_v58  ;;  %s3381_s29 = sld [smem:[#allocation9 + $0x21]]  ;;  %vm801_vm15 = vcmp.ge.s32.totalorder %v3328_v43, 3  ;;  %vm844_vm3 = vcmp.ge.s32.totalorder %v3294_v33, 2  ;;  %vm845_vm4 = vcmp.ge.s32.totalorder %v3328_v43, 2 }
 0x33a   : > { %v740_v62 = vcombine.low %v697_v59, %v706_v60  ;;  %v3373_v59 = vstv %s4983_s30  ;;  %v3376_v60 = vstv %s4984_s7  ;;  %s4995_s20 = sld [smem:[#allocation50_spill]]  ;;  %vm870_vm6 = vcmp.ge.s32.totalorder %v3278_v28, 1 }
 0x33b   : > { %v723_v63 = vrot.slane %v716_v61, %v3009_v56  ;;  %v3379_v61 = vstv %s4985_s12  ;;  %s4998_s7 = sld [smem:[#allocation52_spill]]  ;;  %vm871_vm7 = vcmp.ge.s32.totalorder %v3294_v33, 1  ;;  %vm4890_vm8 = vcmp.ge.s32.totalorder %v3328_v43, 1 }
 0x33c   : > { %v747_v3 = vrot.slane %v740_v62, %v3009_v56  ;;  %s3408_s12 = sld [smem:[#allocation9 + $0x2f]]  ;;  %vm928_vm1 = vcmp.lt.s32.totalorder %v3294_v33, 15 }
 0x33d   : > { %v730_v4 = vrot.slane %v723_v63, %v3009_v56  ;;  %v3389_v63 = vstv %s4987_s0 }
 0x33e   : > { %v754_v8 = vrot.slane %v747_v3, %v3009_v56 }
 0x33f   : > { %737 = vst.msk [vmem:[#allocation3 + $0x2] ss:$2 sm:$0x3] %vm734_vm10, %v730_v4 }
 0x340   : > { %757 = vst.msk [vmem:[#allocation3 + $0x3] ss:$2 sm:$0x3] %vm734_vm10, %v754_v8  ;;  %v3400_v8 = vstv %s4990_s2  ;;  %s3422_s2 = sld [smem:[#allocation9 + $0x6]]  ;;  %vm927_vm10 = vcmp.lt.s32.totalorder %v3278_v28, 15 }
 0x342   : > { %5000 = sst [smem:[#allocation36_spill]] %s3408_s12 }
 0x346   : > { %v798_v6 = vld [vmem:[#allocation3] ss:$2 sm:$0xf] }
 0x347   : > { %v1006_v13 = vld [vmem:[#allocation3 + $0x1] ss:$2 sm:$0xf]  ;;  %v3074_v5 = vrot.slane %v798_v6, %v819_v11  ;;  %v3077_v24 = vrot.slane %v798_v6, %v3020_v12  ;;  %v3085_v25 = vrot.slane %v798_v6, %v823_v10  ;;  %v816_v26 = vrot.slane %v798_v6, %v3017_v9 }
 0x348   : > { %v3023_v14 = vrot.slane %v1006_v13, %v3017_v9  ;;  %v3026_v17 = vrot.slane %v1006_v13, %v3020_v12  ;;  %v3034_v22 = vrot.slane %v1006_v13, %v823_v10  ;;  %v3036_v23 = vrot.slane %v1006_v13, %v819_v11 }
 0x349   : > { %v3411_v11 = vstv %s4993_s21  ;;  %v3420_v6 = vstv %s4995_s20  ;;  %s5010_s21 = sld [smem:[#allocation61_spill]] }
 0x34a   : > { %1026 = vrot.lane.b32.xlu0 %v3023_v14, %s4811_s22  ;;  %1024 = vrot.lane.b32.xlu1 %v3026_v17, %s4811_s22 }
 0x34e   : > { %1030 = vrot.lane.b32.xlu0 %v3034_v22, %s4811_s22  ;;  %1028 = vrot.lane.b32.xlu1 %v3036_v23, %s4811_s22 }
 0x34f   : > { %v3470_v21 = vstv %s5010_s21  ;;  %s3495_s21 = sld [smem:[#allocation9 + $0x29]] }
 0x350   : > { %5020 = vst [vmem:[#allocation76_spill] sm:$0xff] %v3470_v21 }
 0x352   : > { %1043 = vrot.lane.b32.xlu0 %v3023_v14, %s2730_s23  ;;  %1041 = vrot.lane.b32.xlu1 %v3026_v17, %s2730_s23 }
 0x356   : > { %1047 = vrot.lane.b32.xlu0 %v3034_v22, %s2730_s23  ;;  %1045 = vrot.lane.b32.xlu1 %v3036_v23, %s2730_s23 }
 0x35a   : > { %1060 = vrot.lane.b32.xlu0 %v3023_v14, %s4812_s5  ;;  %1058 = vrot.lane.b32.xlu1 %v3026_v17, %s4812_s5 }
 0x35e   : > { %1064 = vrot.lane.b32.xlu0 %v3034_v22, %s4812_s5  ;;  %1062 = vrot.lane.b32.xlu1 %v3036_v23, %s4812_s5 }
 0x362   : > { %1077 = vrot.lane.b32.xlu0 %v3023_v14, %s4809_s10  ;;  %1075 = vrot.lane.b32.xlu1 %v3026_v17, %s4809_s10 }
 0x366   : > { %1092 = vrot.lane.b32.xlu0 %v3026_v17, %s4807_s11  ;;  %1079 = vrot.lane.b32.xlu1 %v3036_v23, %s4809_s10 }
 0x36a   : > { %1096 = vrot.lane.b32.xlu0 %v3036_v23, %s4807_s11  ;;  %1094 = vrot.lane.b32.xlu1 %v3023_v14, %s4807_s11 }
 0x36e   : > { %1098 = vrot.lane.b32.xlu0 %v3034_v22, %s4807_s11  ;;  %1081 = vrot.lane.b32.xlu1 %v3034_v22, %s4809_s10  ;;  %s3118_s11 = sld [smem:[#allocation9 + $0x4e]] }
 0x36f   : > { %s3120_s10 = sld [smem:[#allocation9 + $0x55]] }
 0x372   : > { %856 = vrot.lane.b32.xlu0 %v3074_v5, %s2730_s23  ;;  %825 = vrot.lane.b32.xlu1 %v3077_v24, %s4811_s22 }
 0x374   : > { %v3322_v42 = vstv %s3118_s11  ;;  %s3339_s11 = sld [smem:[#allocation9 + $0xc]] }
 0x375   : > { %v3331_v44 = vstv %s3120_s10  ;;  %s3353_s10 = sld [smem:[#allocation9 + $0x13]] }
 0x376   : > { %858 = vrot.lane.b32.xlu0 %v3085_v25, %s2730_s23  ;;  %827 = vrot.lane.b32.xlu1 %v816_v26, %s4811_s22 }
 0x37a   : > { %881 = vrot.lane.b32.xlu0 %v816_v26, %s4812_s5  ;;  %829 = vrot.lane.b32.xlu1 %v3074_v5, %s4811_s22  ;;  %s3124_s22 = sld [smem:[#allocation9 + $0x33]] }
 0x37e   : > { %885 = vrot.lane.b32.xlu0 %v3085_v25, %s4812_s5  ;;  %852 = vrot.lane.b32.xlu1 %v3077_v24, %s2730_s23  ;;  %s3132_s5 = sld [smem:[#allocation9 + $0x48]] }
 0x380   : > { %v3337_v46 = vstv %s3124_s22  ;;  %s4989_s22 = sld [smem:[#allocation44_spill]] }
 0x382   : > { %908 = vrot.lane.b32.xlu0 %v816_v26, %s4935_s1  ;;  %854 = vrot.lane.b32.xlu1 %v816_v26, %s2730_s23  ;;  %s3146_s23 = sld [smem:[#allocation9 + $0x3b]] }
 0x384   : > { %v3348_v49 = vstv %s3132_s5  ;;  %s3367_s5 = sld [smem:[#allocation9 + $0x1a]] }
 0x386   : > { %933 = vrot.lane.b32.xlu0 %v3077_v24, %s4936_s17  ;;  %831 = vrot.lane.b32.xlu1 %v3085_v25, %s4937_s16  ;;  %s3158_s16 = sld [smem:[#allocation9 + $0x57]]  ;;  %v3397_v4 = vstv %s4989_s22 }
 0x387   : > { %s5004_s22 = sld [smem:[#allocation57_spill]] }
 0x388   : > { %4940 = sst [smem:[#allocation37_spill]] %s3146_s23 }
 0x389   : > { %s3166_s23 = sld [smem:[#allocation9 + $0x35]] }
 0x38a   : > { %937 = vrot.lane.b32.xlu0 %v3074_v5, %s4936_s17  ;;  %879 = vrot.lane.b32.xlu1 %v3077_v24, %s4941_s15  ;;  %s4982_s25 = sld [smem:[#allocation37_spill]] }
 0x38b   : > { %5005 = sst [smem:[#allocation37_spill]] %s3422_s2 }
 0x38c   : > { %4945 = sst [smem:[#allocation41_spill]] %s3158_s16 }
 0x38d   : > { %s3175_s16 = sld [smem:[#allocation9 + $0x4a]] }
 0x38e   : > { %939 = vrot.lane.b32.xlu0 %v3085_v25, %s4936_s17  ;;  %883 = vrot.lane.b32.xlu1 %v3074_v5, %s4941_s15  ;;  %s3181_s15 = sld [smem:[#allocation9 + $0x5f]] }
 0x38f   : > { %4947 = sst [smem:[#allocation43_spill]] %s3166_s23 }
 0x390   : > { %s3191_s23 = sld [smem:[#allocation9 + $0xf]]  ;;  %v3365_v57 = vstv %s4982_s25 }
 0x391   : > { %s4986_s8 = sld [smem:[#allocation41_spill]] }
 0x392   : > { %962 = vrot.lane.b32.xlu0 %v816_v26, %s4827_s27  ;;  %906 = vrot.lane.b32.xlu1 %v3077_v24, %s4935_s1  ;;  %s4988_s13 = sld [smem:[#allocation43_spill]] }
 0x393   : > { %4950 = sst [smem:[#allocation46_spill]] %s3175_s16  ;;  %s4829_s16 = smov 45  }
 0x394   : > { %4953 = sst [smem:[#allocation49_spill]] %s3181_s15 }
 0x395   : > { %s3197_s15 = sld [smem:[#allocation9 + $0x1d]] }
 0x396   : > { %966 = vrot.lane.b32.xlu0 %v3085_v25, %s4827_s27  ;;  %910 = vrot.lane.b32.xlu1 %v3074_v5, %s4935_s1  ;;  %4955 = sst [smem:[#allocation51_spill]] %s3191_s23 }
 0x397   : > { %s3201_s27 = sld [smem:[#allocation9 + $0x2b]]  ;;  %v3386_v62 = vstv %s4986_s8 }
 0x398   : > { %s3211_s23 = sld [smem:[#allocation9 + $0xe]]  ;;  %v3392_v3 = vstv %s4988_s13 }
 0x399   : > { %s4991_s3 = sld [smem:[#allocation46_spill]] }
 0x39a   : > { %989 = vrot.lane.b32.xlu0 %v816_v26, %s4829_s16  ;;  %935 = vrot.lane.b32.xlu1 %v816_v26, %s4936_s17  ;;  %s3215_s17 = sld [smem:[#allocation9 + $0x1c]]  ;;  %v3435_v26 = vstv %s4998_s7 }
 0x39b   : > { %4957 = sst [smem:[#allocation53_spill]] %s3197_s15  ;;  %s4965_s15 = smov 46  }
 0x39c   : > { %s4994_s14 = sld [smem:[#allocation49_spill]] }
 0x39d   : > { %4959 = sst [smem:[#allocation55_spill]] %s3201_s27 }
 0x39e   : > { %993 = vrot.lane.b32.xlu0 %v3085_v25, %s4829_s16  ;;  %912 = vrot.lane.b32.xlu1 %v3085_v25, %s4935_s1  ;;  %4962 = sst [smem:[#allocation58_spill]] %s3211_s23 }
 0x39f   : > { %s3223_s16 = sld [smem:[#allocation9 + $0x2a]]  ;;  %v3403_v13 = vstv %s4991_s3 }
 0x3a0   : > { %4964 = sst [smem:[#allocation60_spill]] %s3215_s17 }
 0x3a1   : > { %s3225_s27 = sld [smem:[#allocation9 + $0x2]] }
 0x3a2   : > { %1111 = vrot.lane.b32.xlu0 %v3023_v14, %s4965_s15  ;;  %960 = vrot.lane.b32.xlu1 %v3077_v24, %s4965_s15  ;;  %s3227_s1 = sld [smem:[#allocation9 + $0x9]] }
 0x3a3   : > { %s3233_s17 = sld [smem:[#allocation9 + $0x10]] }
 0x3a4   : > { %s3237_s23 = sld [smem:[#allocation9 + $0x1e]] }
 0x3a5   : > { %4967 = sst [smem:[#allocation62_spill]] %s3223_s16 }
 0x3a6   : > { %1115 = vrot.lane.b32.xlu0 %v3034_v22, %s4965_s15  ;;  %964 = vrot.lane.b32.xlu1 %v3074_v5, %s4965_s15  ;;  %s3249_s16 = sld [smem:[#allocation9 + $0xb]] }
 0x3a7   : > { %4968 = sst [smem:[#allocation63_spill]] %s3225_s27 }
 0x3a8   : > { %4969 = sst [smem:[#allocation64_spill]] %s3227_s1 }
 0x3a9   : > { %s3245_s1 = sld [smem:[#allocation9 + $0x2c]]  ;;  %v3484_v16 = vstv %s3233_s17 }
 0x3aa   : > { %4971 = sst [smem:[#allocation66_spill]] %s3237_s23  ;;  %1128 = vrot.lane.b32.xlu0 %v3023_v14, %s4973_s6  ;;  %987 = vrot.lane.b32.xlu1 %v3077_v24, %s4973_s6  ;;  %v3406_v14 = vstv %s4992_s24  ;;  %5028 = vst [vmem:[#allocation80_spill] sm:$0xff] %v3484_v16 }
 0x3ab   : > { %s3247_s27 = sld [smem:[#allocation9 + $0x4]] }
 0x3ac   : > { %4974 = sst [smem:[#allocation68_spill]] %s3249_s16 }
 0x3ad   : > { %s3259_s23 = sld [smem:[#allocation9 + $0x20]] }
 0x3ae   : > { %1132 = vrot.lane.b32.xlu0 %v3034_v22, %s4973_s6  ;;  %991 = vrot.lane.b32.xlu1 %v3074_v5, %s4973_s6  ;;  %s3264_s16 = sld [smem:[#allocation9 + $0x2e]]  ;;  %v3414_v22 = vstv %s4994_s14 }
 0x3af   : > { %s3394_s25 = sld [smem:[#allocation9 + $0x28]] }
 0x3b0   : > { %s4997_s30 = sld [smem:[#allocation51_spill]] }
 0x3b1   : > { %s5001_s8 = sld [smem:[#allocation54_spill]] }
 0x3b2   : > { %1109 = vrot.lane.b32.xlu1 %v3026_v17, %s4965_s15  ;;  %s5002_s0 = sld [smem:[#allocation55_spill]] }
 0x3b3   : > { %4977 = sst [smem:[#allocation71_spill]] %s3259_s23 }
 0x3b4   : > { %s3272_s23 = sld [smem:[#allocation9 + $0x11]] }
 0x3b5   : > { %4996 = sst [smem:[#allocation35_spill]] %s3394_s25 }
 0x3b6   : > { %1113 = vrot.lane.b32.xlu1 %v3036_v23, %s4965_s15  ;;  %s3296_s15 = sld [smem:[#allocation9 + $0x26]]  ;;  %v3432_v25 = vstv %s4997_s30 }
 0x3b7   : > { %s5003_s13 = sld [smem:[#allocation56_spill]]  ;;  %v3444_v0 = vstv %s5001_s8 }
 0x3b8   : > { %s5006_s3 = sld [smem:[#allocation58_spill]]  ;;  %v3447_v1 = vstv %s5002_s0 }
 0x3b9   : > { %s5007_s24 = sld [smem:[#allocation59_spill]] }
 0x3ba   : > { %1126 = vrot.lane.b32.xlu1 %v3026_v17, %s4973_s6  ;;  %s5008_s12 = sld [smem:[#allocation60_spill]] }
 0x3bb   : > { %s5011_s14 = sld [smem:[#allocation62_spill]] }
 0x3bc   : > { %v1027_v51 = vpop.permute.xlu0 %1026  ;;  %v1025_v52 = vpop.permute.xlu1 %1024  ;;  %s5012_s20 = sld [smem:[#allocation63_spill]] }
 0x3bd   : > { %v3370_v58 = vsel %vm833_vm11, %v1025_v52, %v1027_v51  ;;  %s5013_s2 = sld [smem:[#allocation64_spill]]  ;;  %v3456_v52 = vstv %s5004_s22 }
 0x3be   : > { %1130 = vrot.lane.b32.xlu1 %v3036_v23, %s4973_s6  ;;  %s4999_s6 = sld [smem:[#allocation53_spill]]  ;;  %v3417_v23 = vstv %s3187_s18 }
 0x3bf   : > { %s3437_s18 = sld [smem:[#allocation9 + $0xd]] }
 0x3c0   : > { %v1031_v17 = vpop.permute.xlu0 %1030  ;;  %v1029_v10 = vpop.permute.xlu1 %1028  ;;  %s3452_s30 = sld [smem:[#allocation9 + $0x14]]  ;;  %v3465_v37 = vstv %s5008_s12 }
 0x3c1   : > { %v3426_v5 = vsel %vm833_vm11, %v1027_v51, %v1029_v10  ;;  %v3429_v24 = vsel %vm833_vm11, %v1029_v10, %v1031_v17  ;;  %v3450_v51 = vstv %s5003_s13  ;;  %s5014_s7 = sld [smem:[#allocation65_spill]]  ;;  %v3459_v17 = vstv %s5006_s3  ;;  %5018 = vst [vmem:[#allocation75_spill] sm:$0xff] %v3465_v37 }
 0x3c2   : > { %s5016_s25 = sld [smem:[#allocation67_spill]]  ;;  %v3462_v10 = vstv %s5007_s24  ;;  %v3473_v20 = vstv %s5011_s14  ;;  %v3476_v19 = vstv %s5012_s20  ;;  %v3546_v37 = vstv %s3296_s15  ;;  %s2736_s20 = smov 112  }
 0x3c3   : > { %5017 = vst [vmem:[#allocation74_spill] sm:$0xff] %v3462_v10  ;;  %s5019_s8 = sld [smem:[#allocation68_spill]]  ;;  %5022 = vst [vmem:[#allocation77_spill] sm:$0xff] %v3473_v20  ;;  %v3479_v18 = vstv %s5013_s2  ;;  %v3528_v20 = vstv %s3268_s4 }
 0x3c4   : > { %v3441_v27 = vstv %s4999_s6  ;;  %s3467_s6 = sld [smem:[#allocation9 + $0x1b]]  ;;  %v1044_v2 = vpop.permute.xlu0 %1043  ;;  %v1042_v7 = vpop.permute.xlu1 %1041  ;;  %5024 = vst [vmem:[#allocation78_spill] sm:$0xff] %v3476_v19  ;;  %5026 = vst [vmem:[#allocation79_spill] sm:$0xff] %v3479_v18  ;;  %v3501_v18 = vstv %s3245_s1  ;;  %v3504_v19 = vstv %s3247_s27 }
 0x3c5   : > { %5009 = sst [smem:[#allocation38_spill]] %s3437_s18  ;;  %v3498_v56 = vsel %vm860_vm12, %v1042_v7, %v1044_v2  ;;  %5033 = vst [vmem:[#allocation84_spill] sm:$0xff] %v3501_v18  ;;  %5034 = vst [vmem:[#allocation85_spill] sm:$0xff] %v3504_v19 }
 0x3c6   : > { %s5015_s18 = sld [smem:[#allocation66_spill]]  ;;  %5041 = vst [vmem:[#allocation92_spill] sm:$0xff] %v3528_v20  ;;  %5048 = vst [vmem:[#allocation97_spill] sm:$0xff] %v3546_v37  ;;  %v3563_v37 = vstv %s3353_s10 }
 0x3c7   : > { %s5021_s0 = sld [smem:[#allocation69_spill]]  ;;  %v3487_v15 = vstv %s5014_s7  ;;  %5054 = vst [vmem:[#allocation101_spill] sm:$0xff] %v3563_v37  ;;  %s2738_s7 = smov 80  }
 0x3c8   : > { %s5023_s13 = sld [smem:[#allocation70_spill]]  ;;  %5029 = vst [vmem:[#allocation81_spill] sm:$0xff] %v3487_v15  ;;  %v3493_v12 = vstv %s5016_s25  ;;  %v1048_v19 = vpop.permute.xlu0 %1047  ;;  %v1046_v16 = vpop.permute.xlu1 %1045 }
 0x3c9   : > { %s5025_s22 = sld [smem:[#allocation71_spill]]  ;;  %5031 = vst [vmem:[#allocation83_spill] sm:$0xff] %v3493_v12  ;;  %v3507_v15 = vstv %s5019_s8  ;;  %v3550_v20 = vsel %vm860_vm12, %v1046_v16, %v1048_v19  ;;  %v1038_v19 = vsel %vm799_vm13, %v3370_v58, 0.0  ;;  %v1040_v58 = vsel %vm801_vm15, %v3429_v24, 0.0  ;;  %s5354_s8 = smov 48  }
 0x3ca   : > { %s5027_s3 = sld [smem:[#allocation72_spill]]  ;;  %5035 = vst [vmem:[#allocation86_spill] sm:$0xff] %v3507_v15  ;;  %v3525_v15 = vstv %s3264_s16  ;;  %v3632_v24 = vmul.f32 %v3302_v35, %v1038_v19 }
 0x3cb   : > { %s3481_s12 = sld [smem:[#allocation9 + $0x22]]  ;;  %5040 = vst [vmem:[#allocation91_spill] sm:$0xff] %v3525_v15 }
 0x3cc   : > { %v3490_v9 = vstv %s5015_s18  ;;  %s5032_s24 = sld [smem:[#allocation73_spill]]  ;;  %5071 = vst [vmem:[#allocation118_spill] sm:$0xff] %v3632_v24  ;;  %v3650_v24 = vmul.f32 %v3286_v30, %v1040_v58 }
 0x3cd   : > { %5030 = vst [vmem:[#allocation82_spill] sm:$0xff] %v3490_v9  ;;  %s3509_s17 = sld [smem:[#allocation9 + $0x30]]  ;;  %v3513_v12 = vstv %s5021_s0  ;;  %s2740_s0 = smov 32  }
 0x3ce   : > { %5036 = vst [vmem:[#allocation87_spill] sm:$0xff] %v3513_v12  ;;  %v3516_v9 = vstv %s5023_s13  ;;  %s5043_s1 = sld [smem:[#allocation35_spill]]  ;;  %v3534_v12 = vstv %s3272_s23  ;;  %5076 = vst [vmem:[#allocation123_spill] sm:$0xff] %v3650_v24 }
 0x3cf   : > { %5037 = vst [vmem:[#allocation88_spill] sm:$0xff] %v3516_v9  ;;  %v3519_v7 = vstv %s5025_s22  ;;  %5044 = vst [vmem:[#allocation94_spill] sm:$0xff] %v3534_v12  ;;  %v3537_v9 = vsel %vm860_vm12, %v1044_v2, %v1046_v16  ;;  %s5047_s27 = sld [smem:[#allocation36_spill]]  ;;  %v3556_v12 = vstv %s3324_s9  ;;  %v3559_v2 = vstv %s3339_s11 }
 0x3d0   : > { %5038 = vst [vmem:[#allocation89_spill] sm:$0xff] %v3519_v7  ;;  %v3522_v18 = vstv %s5027_s3  ;;  %v3540_v7 = vstv %s3274_s28  ;;  %s5049_s16 = sld [smem:[#allocation37_spill]]  ;;  %5052 = vst [vmem:[#allocation99_spill] sm:$0xff] %v3556_v12  ;;  %v1059_v12 = vpop.permute.xlu1 %1058 }
 0x3d1   : > { %5039 = vst [vmem:[#allocation90_spill] sm:$0xff] %v3522_v18  ;;  %5045 = vst [vmem:[#allocation95_spill] sm:$0xff] %v3540_v7  ;;  %v3543_v18 = vstv %s3283_s19  ;;  %s5050_s4 = sld [smem:[#allocation38_spill]]  ;;  %v3569_v7 = vstv %s3381_s29  ;;  %v3598_v37 = vstv %s3481_s12 }
 0x3d2   : > { %v3531_v21 = vstv %s5032_s24  ;;  %5046 = vst [vmem:[#allocation96_spill] sm:$0xff] %v3543_v18  ;;  %5053 = vst [vmem:[#allocation100_spill] sm:$0xff] %v3559_v2  ;;  %v3566_v18 = vstv %s3367_s5  ;;  %v1061_v2 = vpop.permute.xlu0 %1060  ;;  %s3586_s19 = sld [smem:[#allocation9 + $0x36]] }
 0x3d3   : > { %5042 = vst [vmem:[#allocation93_spill] sm:$0xff] %v3531_v21  ;;  %v3553_v21 = vstv %s3310_s26  ;;  %5055 = vst [vmem:[#allocation102_spill] sm:$0xff] %v3566_v18  ;;  %v3595_v18 = vstv %s3467_s6  ;;  %s3600_s28 = sld [smem:[#allocation9 + $0x3d]]  ;;  %s2739_s6 = smov 64  }
 0x3d4   : > { %5051 = vst [vmem:[#allocation98_spill] sm:$0xff] %v3553_v21  ;;  %5056 = vst [vmem:[#allocation103_spill] sm:$0xff] %v3569_v7  ;;  %v3572_v16 = vstv %s5043_s1  ;;  %v1039_v7 = vsel %vm800_vm14, %v3426_v5, 0.0  ;;  %v3615_v5 = vmul.f32 %v3281_v29, %v1038_v19  ;;  %s3626_s23 = sld [smem:[#allocation9 + $0x44]] }
 0x3d5   : > { %5057 = vst [vmem:[#allocation104_spill] sm:$0xff] %v3572_v16  ;;  %v3578_v21 = vstv %s5047_s27  ;;  %v3592_v16 = vstv %s3452_s30  ;;  %5062 = vst [vmem:[#allocation109_spill] sm:$0xff] %v3595_v18  ;;  %v3618_v18 = vmul.f32 %v3286_v30, %v1038_v19  ;;  %s3641_s15 = sld [smem:[#allocation9 + $0x4b]]  ;;  %s2737_s30 = smov 96  }
 0x3d6   : > { %5058 = vst [vmem:[#allocation105_spill] sm:$0xff] %v3578_v21  ;;  %v3581_v15 = vstv %s5049_s16  ;;  %5061 = vst [vmem:[#allocation108_spill] sm:$0xff] %v3592_v16  ;;  %v3612_v21 = vstv %s3509_s17  ;;  %v3624_v16 = vmul.f32 %v3292_v32, %v1038_v19  ;;  %s3677_s26 = sld [smem:[#allocation9 + $0x52]] }
 0x3d7   : > { %5059 = vst [vmem:[#allocation106_spill] sm:$0xff] %v3581_v15  ;;  %v3584_v10 = vstv %s5050_s4  ;;  %5063 = vst [vmem:[#allocation110_spill] sm:$0xff] %v3598_v37  ;;  %v3609_v15 = vstv %s3495_s21  ;;  %v3621_v37 = vmul.f32 %v3289_v31, %v1038_v19  ;;  %s3691_s9 = sld [smem:[#allocation9 + $0x59]] }
 0x3d8   : > { %5060 = vst [vmem:[#allocation107_spill] sm:$0xff] %v3584_v10  ;;  %v3606_v10 = vsel %vm887_vm0, %v1059_v12, %v1061_v2  ;;  %5064 = vst [vmem:[#allocation111_spill] sm:$0xff] %v3609_v15  ;;  %v3629_v12 = vmul.f32 %v3299_v34, %v1038_v19  ;;  %s3705_s11 = sld [smem:[#allocation9 + $0x60]] }
 0x3d9   : > { %5065 = vst [vmem:[#allocation112_spill] sm:$0xff] %v3612_v21  ;;  %5066 = vst [vmem:[#allocation113_spill] sm:$0xff] %v3615_v5  ;;  %v3635_v21 = vmul.f32 %v3305_v36, %v1038_v19  ;;  %v3638_v5 = vmul.f32 %v3281_v29, %v1039_v7  ;;  %s3942_s10 = sld [smem:[#allocation9 + $0x37]] }
 0x3da   : > { %5067 = vst [vmem:[#allocation114_spill] sm:$0xff] %v3618_v18  ;;  %5068 = vst [vmem:[#allocation115_spill] sm:$0xff] %v3621_v37  ;;  %v1065_v37 = vpop.permute.xlu0 %1064  ;;  %v1063_v18 = vpop.permute.xlu1 %1062  ;;  %s4455_s5 = sld [smem:[#allocation9 + $0x3e]] }
 0x3db   : > { %5069 = vst [vmem:[#allocation116_spill] sm:$0xff] %v3624_v16  ;;  %5070 = vst [vmem:[#allocation117_spill] sm:$0xff] %v3629_v12  ;;  %v3644_v16 = vmul.f32 %v3281_v29, %v1040_v58  ;;  %v3647_v12 = vmul.f32 %v3286_v30, %v1039_v7  ;;  %v1067_v19 = vsel %vm887_vm0, %v1061_v2, %v1063_v18  ;;  %v1055_v29 = vsel %vm843_vm2, %v3498_v56, 0.0  ;;  %s4461_s29 = sld [smem:[#allocation9 + $0x45]] }
 0x3dc   : > { %5072 = vst [vmem:[#allocation119_spill] sm:$0xff] %v3635_v21  ;;  %5073 = vst [vmem:[#allocation120_spill] sm:$0xff] %v3638_v5  ;;  %v3655_v5 = vmul.f32 %v3289_v31, %v1039_v7  ;;  %v3658_v21 = vmul.f32 %v3289_v31, %v1040_v58  ;;  %v3666_v30 = vmul.f32 %v3292_v32, %v1039_v7  ;;  %v3741_v24 = vstv %s3641_s15  ;;  %s4467_s25 = sld [smem:[#allocation9 + $0x4c]] }
 0x3dd   : > { %5074 = vst [vmem:[#allocation121_spill] sm:$0xff] %v3644_v16  ;;  %5075 = vst [vmem:[#allocation122_spill] sm:$0xff] %v3647_v12  ;;  %v1068_v12 = vsel %vm887_vm0, %v1063_v18, %v1065_v37  ;;  %v3669_v2 = vmul.f32 %v3292_v32, %v1040_v58  ;;  %v3672_v31 = vmul.f32 %v3299_v34, %v1039_v7  ;;  %s4473_s2 = sld [smem:[#allocation9 + $0x53]] }
 0x3de   : > { %5077 = vst [vmem:[#allocation124_spill] sm:$0xff] %v3655_v5  ;;  %5078 = vst [vmem:[#allocation125_spill] sm:$0xff] %v3658_v21  ;;  %v3675_v21 = vmul.f32 %v3299_v34, %v1040_v58  ;;  %v3680_v56 = vmul.f32 %v3302_v35, %v1039_v7  ;;  %v3683_v18 = vmul.f32 %v3302_v35, %v1040_v58  ;;  %v3700_v35 = vstv %s3586_s19  ;;  %s4479_s18 = sld [smem:[#allocation9 + $0x5a]] }
 0x3df   : > { %5079 = vst [vmem:[#allocation126_spill] sm:$0xff] %v3666_v30  ;;  %5080 = vst [vmem:[#allocation127_spill] sm:$0xff] %v3669_v2  ;;  %v3686_v37 = vmul.f32 %v3305_v36, %v1039_v7  ;;  %v3689_v32 = vmul.f32 %v3305_v36, %v1040_v58  ;;  %v1078_v2 = vpop.permute.xlu0 %1077  ;;  %v1076_v30 = vpop.permute.xlu1 %1075  ;;  %v3694_v34 = vmul.f32 %v3308_v38, %v1055_v29  ;;  %v3703_v7 = vstv %s3600_s28  ;;  %s4490_s14 = sld [smem:[#allocation9 + $0x61]] }
 0x3e0   : > { %5081 = vst [vmem:[#allocation128_spill] sm:$0xff] %v3672_v31  ;;  %5082 = vst [vmem:[#allocation129_spill] sm:$0xff] %v3675_v21  ;;  %v3708_v36 = vmul.f32 %v3313_v39, %v1055_v29  ;;  %v3711_v58 = vmul.f32 %v3316_v40, %v1055_v29  ;;  %v3738_v5 = vstv %s3626_s23  ;;  %s5355_s13 = sld [smem:[#allocation18_spill]]  ;;  %s2741_s23 = smov [#allocation10]  }
 0x3e1   : > { %5083 = vst [vmem:[#allocation130_spill] sm:$0xff] %v3680_v56  ;;  %5084 = vst [vmem:[#allocation131_spill] sm:$0xff] %v3683_v18  ;;  %v1056_v56 = vsel %vm844_vm3, %v3537_v9, 0.0  ;;  %v3717_v9 = vsel %vm914_vm5, %v1076_v30, %v1078_v2  ;;  %v3729_v18 = vmul.f32 %v3334_v45, %v1055_v29  ;;  %s5356_s22 = sld [smem:[#allocation23_spill]]  ;;  %s2655_s15 = sshll.u32 %s2741_s23, 4  ;;  %s2656_s15 = int_to_ptr.vmem [resolvable:$false] %s2655_s15 }
 0x3e2   : > { %5085 = vst [vmem:[#allocation132_spill] sm:$0xff] %v3686_v37  ;;  %5086 = vst [vmem:[#allocation133_spill] sm:$0xff] %v3689_v32  ;;  %v1057_v32 = vsel %vm845_vm4, %v3550_v20, 0.0  ;;  %v3726_v37 = vmul.f32 %v3331_v44, %v1055_v29  ;;  %v3732_v21 = vmul.f32 %v3308_v38, %v1056_v56  ;;  %v3735_v20 = vmul.f32 %v3313_v39, %v1056_v56  ;;  %s5365_s27 = sld [smem:[#allocation230_spill]] }
 0x3e3   : > { %5087 = vst [vmem:[#allocation134_spill] sm:$0xff] %v3694_v34  ;;  %5088 = vst [vmem:[#allocation135_spill] sm:$0xff] %v3700_v35  ;;  %v3720_v35 = vmul.f32 %v3319_v41, %v1055_v29  ;;  %v1093_v30 = vpop.permute.xlu0 %1092  ;;  %v1080_v31 = vpop.permute.xlu1 %1079  ;;  %v3744_v16 = vmul.f32 %v3308_v38, %v1057_v32  ;;  %v3765_v38 = vmul.f32 %v3322_v42, %v1056_v56  ;;  %s5367_s4 = sld [smem:[#allocation21_spill]] }
 0x3e4   : > { %5089 = vst [vmem:[#allocation136_spill] sm:$0xff] %v3703_v7  ;;  %5090 = vst [vmem:[#allocation137_spill] sm:$0xff] %v3708_v36  ;;  %v3723_v7 = vmul.f32 %v3322_v42, %v1055_v29  ;;  %v3750_v29 = vmul.f32 %v3316_v40, %v1056_v56 }
 0x3e5   : > { %5091 = vst [vmem:[#allocation138_spill] sm:$0xff] %v3711_v58  ;;  %5092 = vst [vmem:[#allocation139_spill] sm:$0xff] %v3720_v35 }
 0x3e6   : > { %5093 = vst [vmem:[#allocation140_spill] sm:$0xff] %v3723_v7  ;;  %5094 = vst [vmem:[#allocation141_spill] sm:$0xff] %v3726_v37  ;;  %v3747_v37 = vmul.f32 %v3313_v39, %v1057_v32  ;;  %v3770_v39 = vmul.f32 %v3322_v42, %v1057_v32  ;;  %v1073_v42 = vsel %vm871_vm7, %v1067_v19, 0.0  ;;  %s2450_s3 = sshll.u32 %s5355_s13, 10 }
 0x3e7   : > { %5095 = vst [vmem:[#allocation142_spill] sm:$0xff] %v3729_v18  ;;  %5096 = vst [vmem:[#allocation143_spill] sm:$0xff] %v3732_v21  ;;  %v3753_v21 = vsel %vm914_vm5, %v1078_v2, %v1080_v31  ;;  %v3776_v2 = vmul.f32 %v3331_v44, %v1057_v32  ;;  %s5358_s12 = sshll.u32 %s5356_s22, 6  ;;  %s2221_s19 = scalar_lea.sflag [#allocation7], %s5356_s22 }
 0x3e8   : > { %5097 = vst [vmem:[#allocation144_spill] sm:$0xff] %v3735_v20  ;;  %5098 = vst [vmem:[#allocation145_spill] sm:$0xff] %v3738_v5  ;;  %v3756_v20 = vmul.f32 %v3316_v40, %v1057_v32  ;;  %v3759_v5 = vmul.f32 %v3319_v41, %v1056_v56  ;;  %v3773_v40 = vmul.f32 %v3331_v44, %v1056_v56  ;;  %v1074_v44 = vsel %vm4890_vm8, %v1068_v12, 0.0  ;;  %s229_s24 = scalar_lea.vmem [#allocation10], %s5358_s12  ;;  %s4748_s16 = scalar_lea.hbm %s5365_s27, %s2450_s3 }
 0x3e9   : > { %5099 = vst [vmem:[#allocation146_spill] sm:$0xff] %v3741_v24  ;;  %5100 = vst [vmem:[#allocation147_spill] sm:$0xff] %v3744_v16  ;;  %v3762_v24 = vmul.f32 %v3319_v41, %v1057_v32  ;;  %v1072_v41 = vsel %vm870_vm6, %v3606_v10, 0.0  ;;  %v3799_v10 = vstv %s3705_s11  ;;  %vm929_vm8 = vcmp.lt.s32.totalorder %v3328_v43, 15  ;;  %s2234_s21 = sshll.u32 %s229_s24, 4  ;;  %p5371_p0 = scmp.ne.s32.totalorder %s5367_s4, 0  ;;  %s4750_s21 = int_to_ptr.vmem [resolvable:$true] %s2234_s21 }
 0x3ea   : > { %5101 = vst [vmem:[#allocation148_spill] sm:$0xff] %v3747_v37  ;;  %5102 = vst [vmem:[#allocation149_spill] sm:$0xff] %v3750_v29  ;;  %v3808_v19 = vmul.f32 %v3345_v48, %v1072_v41  ;;  %v3814_v12 = vmul.f32 %v3351_v50, %v1072_v41  ;;  %s2651_s28 = scalar_lea.vmem %s4750_s21, 1024  ;;  %p2658_p8 = scmp.lt.s32.totalorder %s4750_s21, %s2656_s15 }
 0x3eb   : > { %5103 = vst [vmem:[#allocation150_spill] sm:$0xff] %v3756_v20  ;;  %5104 = vst [vmem:[#allocation151_spill] sm:$0xff] %v3759_v5  ;;  %v1095_v5 = vpop.permute.xlu1 %1094  ;;  %v3790_v20 = vstv %s3677_s26  ;;  %p2652_p12 = scmp.ne.s32.totalorder %s4750_s21, %s2651_s28  ;;  %s2657_s26 = scalar_lea.vmem %s2656_s15, 2048 }
 0x3ec   : > { %5105 = vst [vmem:[#allocation152_spill] sm:$0xff] %v3762_v24  ;;  %5106 = vst [vmem:[#allocation153_spill] sm:$0xff] %v3765_v38  ;;  %v3782_v38 = vmul.f32 %v3334_v45, %v1056_v56  ;;  %v3785_v24 = vmul.f32 %v3334_v45, %v1057_v32  ;;  %v3802_v56 = vmul.f32 %v3337_v46, %v1072_v41  ;;  %p2659_p9 = scmp.lt.s32.totalorder %s2657_s26, %s2651_s28 }
 0x3ed   : > { %5107 = vst [vmem:[#allocation154_spill] sm:$0xff] %v3770_v39  ;;  %5108 = vst [vmem:[#allocation155_spill] sm:$0xff] %v3773_v40  ;;  %v1097_v39 = vpop.permute.xlu0 %1096  ;;  %v3796_v40 = vstv %s3691_s9  ;;  %v3805_v45 = vmul.f32 %v3342_v47, %v1072_v41  ;;  %v3811_v32 = vmul.f32 %v3348_v49, %v1072_v41  ;;  %p2653_p2 = pnand %p2652_p12, %p5371_p0 }
 0x3ee   : > { %5109 = vst [vmem:[#allocation156_spill] sm:$0xff] %v3776_v2  ;;  %5110 = vst [vmem:[#allocation157_spill] sm:$0xff] %v3782_v38  ;;  %v1100_v2 = vsel %vm941_vm9, %v1093_v30, %v1095_v5  ;;  %v3817_v30 = vmul.f32 %v3356_v53, %v1072_v41  ;;  %p2660_p10 = por %p2659_p9, %p2658_p8 }
 0x3ef   : > { %5111 = vst [vmem:[#allocation158_spill] sm:$0xff] %v3785_v24  ;;  %5112 = vst [vmem:[#allocation159_spill] sm:$0xff] %v3790_v20  ;;  %v3827_v20 = vmul.f32 %v3337_v46, %v1074_v44  ;;  %v3830_v24 = vmul.f32 %v3342_v47, %v1073_v42  ;;  %p2654_p7 = pneg %p2653_p2 }
 0x3f0   : > { %5113 = vst [vmem:[#allocation160_spill] sm:$0xff] %v3796_v40  ;;  %5114 = vst [vmem:[#allocation161_spill] sm:$0xff] %v3799_v10  ;;  %v3820_v10 = vmul.f32 %v3359_v54, %v1072_v41  ;;  %v3823_v40 = vmul.f32 %v3337_v46, %v1073_v42  ;;  %v1082_v41 = vpop.permute.xlu1 %1081  ;;  %v3845_v46 = vmul.f32 %v3348_v49, %v1074_v44 }
 0x3f1   : > { %5115 = vst [vmem:[#allocation162_spill] sm:$0xff] %v3802_v56  ;;  %5116 = vst [vmem:[#allocation163_spill] sm:$0xff] %v3805_v45  ;;  %p2661_p1 = pnand %p2660_p10, %p2654_p7 }
 0x3f2   : > { %5117 = vst [vmem:[#allocation164_spill] sm:$0xff] %v3808_v19  ;;  %5118 = vst [vmem:[#allocation165_spill] sm:$0xff] %v3811_v32  ;;  %v3833_v32 = vmul.f32 %v3342_v47, %v1074_v44  ;;  %v3851_v47 = vmul.f32 %v3351_v50, %v1074_v44 }
 0x3f3   : > { %5119 = vst [vmem:[#allocation166_spill] sm:$0xff] %v3814_v12  ;;  %5120 = vst [vmem:[#allocation167_spill] sm:$0xff] %v3817_v30  ;;  %v3836_v12 = vmul.f32 %v3345_v48, %v1073_v42  ;;  %v1099_v30 = vpop.permute.xlu0 %1098 }
 0x3f4   : > { %5121 = vst [vmem:[#allocation168_spill] sm:$0xff] %v3820_v10  ;;  %5122 = vst [vmem:[#allocation169_spill] sm:$0xff] %v3823_v40  ;;  %v3839_v10 = vmul.f32 %v3345_v48, %v1074_v44  ;;  %v3842_v40 = vmul.f32 %v3348_v49, %v1073_v42  ;;  %v1085_v48 = vsel %vm914_vm5, %v1080_v31, %v1082_v41 }
 0x3f5   : > { %5123 = vst [vmem:[#allocation170_spill] sm:$0xff] %v3827_v20  ;;  %5124 = vst [vmem:[#allocation171_spill] sm:$0xff] %v3830_v24  ;;  %v3848_v20 = vmul.f32 %v3351_v50, %v1073_v42  ;;  %v3865_v49 = vmul.f32 %v3359_v54, %v1074_v44  ;;  %v3869_v50 = vmul.f32 %v3362_v55, %v3717_v9 }
 0x3f6   : > { %5125 = vst [vmem:[#allocation172_spill] sm:$0xff] %v3833_v32  ;;  %5126 = vst [vmem:[#allocation173_spill] sm:$0xff] %v3836_v12  ;;  %v3854_v32 = vmul.f32 %v3356_v53, %v1073_v42  ;;  %v1101_v12 = vsel %vm941_vm9, %v1095_v5, %v1097_v39  ;;  %v3877_v5 = vmul.f32 %v3373_v59, %v3717_v9 }
 0x3f7   : > { %5127 = vst [vmem:[#allocation174_spill] sm:$0xff] %v3839_v10  ;;  %5128 = vst [vmem:[#allocation175_spill] sm:$0xff] %v3842_v40  ;;  %v3859_v10 = vmul.f32 %v3356_v53, %v1074_v44  ;;  %v3862_v40 = vmul.f32 %v3359_v54, %v1073_v42  ;;  %v3881_v53 = vmul.f32 %v3376_v60, %v3717_v9  ;;  %v3887_v31 = vpop.permute.xlu0 %856  ;;  %v826_v42 = vpop.permute.xlu1 %825 }
 0x3f8   : > { %5129 = vst [vmem:[#allocation176_spill] sm:$0xff] %v3845_v46  ;;  %5130 = vst [vmem:[#allocation177_spill] sm:$0xff] %v3848_v20  ;;  %v3885_v54 = vmul.f32 %v3379_v61, %v3717_v9  ;;  %v3891_v44 = vmul.f32 %v3386_v62, %v3717_v9  ;;  %v3895_v41 = vmul.f32 %v3389_v63, %v3717_v9 }
 0x3f9   : > { %5131 = vst [vmem:[#allocation178_spill] sm:$0xff] %v3851_v47  ;;  %5132 = vst [vmem:[#allocation179_spill] sm:$0xff] %v3854_v32  ;;  %v3873_v32 = vmul.f32 %v3365_v57, %v3717_v9  ;;  %v3907_v47 = vmul.f32 %v3365_v57, %v3753_v21  ;;  %v3911_v20 = vmul.f32 %v3373_v59, %v3753_v21 }
 0x3fa   : > { %5133 = vst [vmem:[#allocation180_spill] sm:$0xff] %v3859_v10  ;;  %5134 = vst [vmem:[#allocation181_spill] sm:$0xff] %v3862_v40  ;;  %v1107_v40 = vsel %vm928_vm1, %v1101_v12, 0.0  ;;  %v3903_v10 = vmul.f32 %v3362_v55, %v3753_v21  ;;  %v3915_v9 = vmul.f32 %v3376_v60, %v3753_v21  ;;  %v3923_v12 = vmul.f32 %v3386_v62, %v3753_v21 }
 0x3fb   : > { %5135 = vst [vmem:[#allocation182_spill] sm:$0xff] %v3865_v49  ;;  %5136 = vst [vmem:[#allocation183_spill] sm:$0xff] %v3869_v50  ;;  %v1106_v49 = vsel %vm927_vm10, %v1100_v2, 0.0  ;;  %v3919_v2 = vmul.f32 %v3379_v61, %v3753_v21  ;;  %v3927_v46 = vmul.f32 %v3389_v63, %v3753_v21  ;;  %v3934_v24 = vmul.f32 %v3392_v3, %v1107_v40 }
 0x3fc   : > { %5137 = vst [vmem:[#allocation184_spill] sm:$0xff] %v3873_v32  ;;  %5138 = vst [vmem:[#allocation185_spill] sm:$0xff] %v3877_v5  ;;  %v3945_v21 = vmul.f32 %v3400_v8, %v1106_v49 }
 0x3fd   : > { %5139 = vst [vmem:[#allocation186_spill] sm:$0xff] %v3881_v53  ;;  %5140 = vst [vmem:[#allocation187_spill] sm:$0xff] %v3885_v54 }
 0x3fe   : > { %5141 = vst [vmem:[#allocation188_spill] sm:$0xff] %v3891_v44  ;;  %5142 = vst [vmem:[#allocation189_spill] sm:$0xff] %v3895_v41 }
 0x3ff   : > { %5143 = vst [vmem:[#allocation190_spill] sm:$0xff] %v3903_v10  ;;  %5144 = vst [vmem:[#allocation191_spill] sm:$0xff] %v3907_v47  ;;  %v1102_v47 = vsel %vm941_vm9, %v1097_v39, %v1099_v30  ;;  %v859_v10 = vpop.permute.xlu0 %858  ;;  %v3948_v39 = vmul.f32 %v3400_v8, %v1107_v40  ;;  %v3951_v30 = vmul.f32 %v3403_v13, %v1106_v49 }
 0x400   : > { %5145 = vst [vmem:[#allocation192_spill] sm:$0xff] %v3911_v20  ;;  %5146 = vst [vmem:[#allocation193_spill] sm:$0xff] %v3915_v9  ;;  %v3931_v20 = vmul.f32 %v3392_v3, %v1106_v49  ;;  %v3937_v9 = vmul.f32 %v3397_v4, %v1106_v49  ;;  %v1108_v41 = vsel %vm929_vm8, %v1102_v47, 0.0  ;;  %v863_v44 = vsel %vm860_vm12, %v3887_v31, %v859_v10 }
 0x401   : > { %5147 = vst [vmem:[#allocation194_spill] sm:$0xff] %v3919_v2  ;;  %5148 = vst [vmem:[#allocation195_spill] sm:$0xff] %v3923_v12  ;;  %v3940_v2 = vmul.f32 %v3397_v4, %v1107_v40  ;;  %v828_v12 = vpop.permute.xlu1 %827  ;;  %v3982_v47 = vmul.f32 %v3365_v57, %v1085_v48  ;;  %v3985_v10 = vmul.f32 %v3373_v59, %v1085_v48  ;;  %v869_v57 = vsel %vm845_vm4, %v863_v44, 0.0 }
 0x402   : > { %5149 = vst [vmem:[#allocation196_spill] sm:$0xff] %v3927_v46  ;;  %5150 = vst [vmem:[#allocation197_spill] sm:$0xff] %v3931_v20  ;;  %v3954_v46 = vmul.f32 %v3403_v13, %v1107_v40  ;;  %v4004_v59 = vmul.f32 %v3403_v13, %v1108_v41  ;;  %v4021_v44 = vmul.f32 %v3379_v61, %v1085_v48 }
 0x403   : > { %5151 = vst [vmem:[#allocation198_spill] sm:$0xff] %v3934_v24  ;;  %5152 = vst [vmem:[#allocation199_spill] sm:$0xff] %v3937_v9  ;;  %v3957_v24 = vmul.f32 %v3406_v14, %v1106_v49  ;;  %v3988_v54 = vpop.permute.xlu0 %881  ;;  %v4040_v61 = vmul.f32 %v3420_v6, %v869_v57 }
 0x404   : > { %5153 = vst [vmem:[#allocation200_spill] sm:$0xff] %v3940_v2  ;;  %5154 = vst [vmem:[#allocation201_spill] sm:$0xff] %v3945_v21  ;;  %v3960_v2 = vmul.f32 %v3406_v14, %v1107_v40 }
 0x405   : > { %5155 = vst [vmem:[#allocation202_spill] sm:$0xff] %v3948_v39  ;;  %5156 = vst [vmem:[#allocation203_spill] sm:$0xff] %v3951_v30  ;;  %v3967_v39 = vmul.f32 %v3411_v11, %v1106_v49  ;;  %v3970_v30 = vmul.f32 %v3411_v11, %v1107_v40 }
 0x406   : > { %5157 = vst [vmem:[#allocation204_spill] sm:$0xff] %v3954_v46  ;;  %5158 = vst [vmem:[#allocation205_spill] sm:$0xff] %v3957_v24  ;;  %v3973_v46 = vmul.f32 %v3414_v22, %v1106_v49  ;;  %v3976_v24 = vmul.f32 %v3414_v22, %v1107_v40  ;;  %v3993_v49 = vmul.f32 %v3392_v3, %v1108_v41 }
 0x407   : > { %5159 = vst [vmem:[#allocation206_spill] sm:$0xff] %v3960_v2  ;;  %5160 = vst [vmem:[#allocation207_spill] sm:$0xff] %v3967_v39  ;;  %v3979_v2 = vmul.f32 %v3362_v55, %v1085_v48  ;;  %v834_v39 = vsel %vm833_vm11, %v826_v42, %v828_v12  ;;  %v3996_v40 = vmul.f32 %v3397_v4, %v1108_v41 }
 0x408   : > { %5161 = vst [vmem:[#allocation208_spill] sm:$0xff] %v3970_v30  ;;  %5162 = vst [vmem:[#allocation209_spill] sm:$0xff] %v3973_v46  ;;  %v3990_v30 = vpop.permute.xlu1 %829  ;;  %v3999_v55 = vmul.f32 %v3400_v8, %v1108_v41  ;;  %v4007_v42 = vmul.f32 %v3406_v14, %v1108_v41  ;;  %v4015_v4 = vmul.f32 %v3414_v22, %v1108_v41  ;;  %v840_v13 = vsel %vm799_vm13, %v834_v39, 0.0  ;;  %v4034_v22 = vpop.permute.xlu0 %885 }
 0x409   : > { %5163 = vst [vmem:[#allocation210_spill] sm:$0xff] %v3976_v24  ;;  %5164 = vst [vmem:[#allocation211_spill] sm:$0xff] %v3979_v2  ;;  %v4010_v24 = vmul.f32 %v3411_v11, %v1108_v41  ;;  %v835_v3 = vsel %vm833_vm11, %v828_v12, %v3990_v30  ;;  %v4018_v8 = vmul.f32 %v3376_v60, %v1085_v48  ;;  %v4037_v60 = vstv %s3942_s10 }
 0x40a   : > { %5165 = vst [vmem:[#allocation212_spill] sm:$0xff] %v3982_v47  ;;  %5166 = vst [vmem:[#allocation213_spill] sm:$0xff] %v3985_v10  ;;  %v4026_v14 = vmul.f32 %v3386_v62, %v1085_v48  ;;  %v4029_v11 = vmul.f32 %v3389_v63, %v1085_v48  ;;  %v4032_v12 = vmul.f32 %v3417_v23, %v869_v57  ;;  %v841_v63 = vsel %vm800_vm14, %v835_v3, 0.0  ;;  %v5181_v3 = vld [vmem:[#allocation76_spill] sm:$0xff] }
 0x40b   : > { %5167 = vst [vmem:[#allocation214_spill] sm:$0xff] %v3993_v49  ;;  %5168 = vst [vmem:[#allocation215_spill] sm:$0xff] %v3996_v40  ;;  %v4046_v62 = vmul.f32 %v3435_v26, %v869_v57  ;;  %v4051_v48 = vmul.f32 %v3441_v27, %v869_v57  ;;  %v4054_v39 = vmul.f32 %v3444_v0, %v869_v57  ;;  %vm954_vm13 = vcmp.lt.s32.totalorder %v3278_v28, 14 }
 0x40c   : > { %5169 = vst [vmem:[#allocation216_spill] sm:$0xff] %v3999_v55  ;;  %5170 = vst [vmem:[#allocation217_spill] sm:$0xff] %v4004_v59  ;;  %v853_v41 = vpop.permute.xlu1 %852  ;;  %v5180_v55 = vld [vmem:[#allocation75_spill] sm:$0xff]  ;;  %v1146_v47 = vmul.f32 %v3450_v51, %v841_v63  ;;  %v1290_v49 = vmul.f32 %v3456_v52, %v841_v63  ;;  %v1439_v2 = vmul.f32 %v3459_v17, %v841_v63  ;;  %vm956_vm14 = vcmp.lt.s32.totalorder %v3328_v43, 14 }
 0x40d   : > { %5171 = vst [vmem:[#allocation218_spill] sm:$0xff] %v4007_v42  ;;  %5172 = vst [vmem:[#allocation219_spill] sm:$0xff] %v4010_v24  ;;  %v1145_v24 = vmul.f32 %v3450_v51, %v840_v13  ;;  %v5179_v42 = vld [vmem:[#allocation74_spill] sm:$0xff]  ;;  %v1736_v40 = vmul.f32 %v5180_v55, %v840_v13  ;;  %v1737_v38 = vmul.f32 %v5180_v55, %v841_v63 }
 0x40e   : > { %5173 = vst [vmem:[#allocation220_spill] sm:$0xff] %v4015_v4  ;;  %5174 = vst [vmem:[#allocation221_spill] sm:$0xff] %v4018_v8  ;;  %v4043_v4 = vmul.f32 %v3432_v25, %v869_v57  ;;  %v1587_v59 = vmul.f32 %v5179_v42, %v840_v13  ;;  %v5182_v8 = vld [vmem:[#allocation77_spill] sm:$0xff]  ;;  %v1588_v21 = vmul.f32 %v5179_v42, %v841_v63 }
 0x40f   : > { %5175 = vst [vmem:[#allocation222_spill] sm:$0xff] %v4021_v44  ;;  %5176 = vst [vmem:[#allocation223_spill] sm:$0xff] %v4026_v14  ;;  %v1438_v14 = vmul.f32 %v3459_v17, %v840_v13  ;;  %v1885_v44 = vmul.f32 %v5181_v3, %v840_v13  ;;  %v2033_v10 = vmul.f32 %v5182_v8, %v840_v13 }
 0x410   : > { %5177 = vst [vmem:[#allocation224_spill] sm:$0xff] %v4029_v11  ;;  %5178 = vst [vmem:[#allocation225_spill] sm:$0xff] %v4037_v60  ;;  %v4057_v60 = vmul.f32 %v3447_v1, %v869_v57  ;;  %v1289_v11 = vmul.f32 %v3456_v52, %v840_v13  ;;  %v4068_v57 = vpop.permute.xlu0 %908  ;;  %v855_v46 = vpop.permute.xlu1 %854  ;;  %v1886_v13 = vmul.f32 %v5181_v3, %v841_v63 }
 0x411   : > { %v861_v53 = vsel %vm860_vm12, %v853_v41, %v855_v46  ;;  %v862_v5 = vsel %vm860_vm12, %v855_v46, %v3887_v31  ;;  %vm968_vm12 = vcmask 375808  }
 0x412   : > { %v867_v19 = vsel %vm843_vm2, %v861_v53, 0.0  ;;  %v868_v9 = vsel %vm844_vm3, %v862_v5, 0.0  ;;  %v2034_v5 = vmul.f32 %v5182_v8, %v841_v63  ;;  %v5184_v63 = vld [vmem:[#allocation79_spill] sm:$0xff]  ;;  %vm982_vm2 = vcmp.lt.s32.totalorder %v3294_v33, 13 }
 0x413   : > { %v1153_v20 = vmul.f32 %v3417_v23, %v867_v19  ;;  %v1154_v32 = vmul.f32 %v3417_v23, %v868_v9  ;;  %v1297_v50 = vmul.f32 %v3420_v6, %v867_v19  ;;  %v1298_v41 = vmul.f32 %v3420_v6, %v868_v9 }
 0x414   : > { %v1446_v46 = vmul.f32 %v3432_v25, %v867_v19  ;;  %v1447_v31 = vmul.f32 %v3432_v25, %v868_v9  ;;  %v1595_v45 = vmul.f32 %v3435_v26, %v867_v19  ;;  %v1596_v56 = vmul.f32 %v3435_v26, %v868_v9  ;;  %v4089_v53 = vpop.permute.xlu0 %933  ;;  %v832_v29 = vpop.permute.xlu1 %831 }
 0x415   : > { %v1156_v37 = vadd.f32 %v1153_v20, %v1145_v24  ;;  %v4092_v16 = vadd.f32 %v1154_v32, %v1146_v47  ;;  %v1300_v23 = vadd.f32 %v1297_v50, %v1289_v11  ;;  %v4094_v18 = vadd.f32 %v1298_v41, %v1290_v49  ;;  %v5186_v41 = vld [vmem:[#allocation81_spill] sm:$0xff] }
 0x416   : > { %v1449_v6 = vadd.f32 %v1446_v46, %v1438_v14  ;;  %v4096_v7 = vadd.f32 %v1447_v31, %v1439_v2  ;;  %v1598_v35 = vadd.f32 %v1595_v45, %v1587_v59  ;;  %v1744_v25 = vmul.f32 %v3441_v27, %v867_v19  ;;  %v5187_v46 = vld [vmem:[#allocation82_spill] sm:$0xff] }
 0x417   : > { %v1745_v58 = vmul.f32 %v3441_v27, %v868_v9  ;;  %v1893_v26 = vmul.f32 %v3444_v0, %v867_v19  ;;  %v1894_v36 = vmul.f32 %v3444_v0, %v868_v9  ;;  %v4102_v34 = vadd.f32 %v1596_v56, %v1588_v21 }
 0x418   : > { %v2041_v24 = vmul.f32 %v3447_v1, %v867_v19  ;;  %v2042_v20 = vmul.f32 %v3447_v1, %v868_v9  ;;  %v836_v32 = vsel %vm833_vm11, %v3990_v30, %v832_v29  ;;  %v4108_v50 = vpop.permute.xlu0 %937  ;;  %v880_v45 = vpop.permute.xlu1 %879  ;;  %v1747_v2 = vadd.f32 %v1744_v25, %v1736_v40  ;;  %v5189_v25 = vld [vmem:[#allocation84_spill] sm:$0xff] }
 0x419   : > { %v4110_v47 = vadd.f32 %v1745_v58, %v1737_v38  ;;  %v1896_v27 = vadd.f32 %v1893_v26, %v1885_v44  ;;  %v4112_v49 = vadd.f32 %v1894_v36, %v1886_v13  ;;  %v842_v56 = vsel %vm801_vm15, %v836_v32, 0.0  ;;  %v5185_v13 = vld [vmem:[#allocation80_spill] sm:$0xff] }
 0x41a   : > { %v2044_v59 = vadd.f32 %v2041_v24, %v2033_v10  ;;  %v4114_v0 = vadd.f32 %v2042_v20, %v2034_v5  ;;  %v888_v1 = vsel %vm887_vm0, %v880_v45, %v3988_v54  ;;  %v1147_v29 = vmul.f32 %v3450_v51, %v842_v56 }
 0x41b   : > { %v1291_v19 = vmul.f32 %v3456_v52, %v842_v56  ;;  %v1440_v9 = vmul.f32 %v3459_v17, %v842_v56  ;;  %v1589_v58 = vmul.f32 %v5179_v42, %v842_v56  ;;  %v1738_v36 = vmul.f32 %v5180_v55, %v842_v56 }
 0x41c   : > { %v1887_v38 = vmul.f32 %v5181_v3, %v842_v56  ;;  %v2035_v21 = vmul.f32 %v5182_v8, %v842_v56  ;;  %v894_v30 = vsel %vm870_vm6, %v888_v1, 0.0  ;;  %v884_v10 = vpop.permute.xlu1 %883  ;;  %v1158_v40 = vadd.f32 %v4032_v12, %v1147_v29  ;;  %v940_v44 = vpop.permute.xlu0 %939  ;;  %v5183_v8 = vld [vmem:[#allocation78_spill] sm:$0xff]  ;;  %v5190_v29 = vld [vmem:[#allocation85_spill] sm:$0xff] }
 0x41d   : > { %v1302_v51 = vadd.f32 %v4040_v61, %v1291_v19  ;;  %v1451_v52 = vadd.f32 %v4043_v4, %v1440_v9  ;;  %v1600_v17 = vadd.f32 %v4046_v62, %v1589_v58  ;;  %v1749_v42 = vadd.f32 %v4051_v48, %v1738_v36  ;;  %v5188_v62 = vld [vmem:[#allocation83_spill] sm:$0xff]  ;;  %v5198_v36 = vld [vmem:[#allocation90_spill] sm:$0xff] }
 0x41e   : > { %v1898_v55 = vadd.f32 %v4054_v39, %v1887_v38  ;;  %v4136_v14 = vadd.f32 %v4057_v60, %v2035_v21  ;;  %v1161_v11 = vmul.f32 %v5183_v8, %v894_v30  ;;  %v1305_v3 = vmul.f32 %v5184_v63, %v894_v30  ;;  %v5200_v21 = vld [vmem:[#allocation91_spill] sm:$0xff] }
 0x41f   : > { %v1454_v12 = vmul.f32 %v5185_v13, %v894_v30  ;;  %v1603_v61 = vmul.f32 %v5186_v41, %v894_v30  ;;  %v1752_v4 = vmul.f32 %v5187_v46, %v894_v30  ;;  %v1901_v5 = vmul.f32 %v5188_v62, %v894_v30 }
 0x420   : > { %v1164_v31 = vadd.f32 %v1161_v11, %v1156_v37  ;;  %v2049_v48 = vmul.f32 %v5189_v25, %v894_v30  ;;  %v944_v39 = vsel %vm941_vm9, %v4108_v50, %v940_v44  ;;  %v907_v60 = vpop.permute.xlu1 %906  ;;  %v1308_v26 = vadd.f32 %v1305_v3, %v1300_v23  ;;  %v5191_v23 = vld [vmem:[#allocation86_spill] sm:$0xff] }
 0x421   : > { %v4147_v24 = vadd.f32 %v1454_v12, %v1449_v6  ;;  %v4149_v20 = vadd.f32 %v1603_v61, %v1598_v35  ;;  %v4151_v32 = vadd.f32 %v1752_v4, %v1747_v2  ;;  %v4153_v45 = vadd.f32 %v1901_v5, %v1896_v27  ;;  %v5192_v35 = vld [vmem:[#allocation87_spill] sm:$0xff]  ;;  %v5194_v2 = vld [vmem:[#allocation88_spill] sm:$0xff] }
 0x422   : > { %v4155_v56 = vadd.f32 %v2049_v48, %v2044_v59  ;;  %v950_v37 = vsel %vm929_vm8, %v944_v39, 0.0  ;;  %v889_v1 = vsel %vm887_vm0, %v3988_v54, %v884_v10  ;;  %v5196_v59 = vld [vmem:[#allocation89_spill] sm:$0xff]  ;;  %v890_v30 = vsel %vm887_vm0, %v884_v10, %v4034_v22 }
 0x423   : > { %v4162_v19 = vmul.f32 %v5190_v29, %v950_v37  ;;  %v4165_v6 = vmul.f32 %v5191_v23, %v950_v37  ;;  %v4168_v9 = vmul.f32 %v5192_v35, %v950_v37  ;;  %v4171_v27 = vmul.f32 %v5194_v2, %v950_v37 }
 0x424   : > { %v4174_v58 = vmul.f32 %v5196_v59, %v950_v37  ;;  %v4177_v38 = vmul.f32 %v5198_v36, %v950_v37  ;;  %v4180_v54 = vmul.f32 %v5200_v21, %v950_v37  ;;  %v4184_v44 = vpop.permute.xlu1 %910  ;;  %v895_v11 = vsel %vm871_vm7, %v889_v1, 0.0 }
 0x425   : > { %5193 = vst [vmem:[#allocation74_spill] sm:$0xff] %v4168_v9  ;;  %5195 = vst [vmem:[#allocation75_spill] sm:$0xff] %v4171_v27  ;;  %vm5202_vm11 = vcmp.ge.s32.totalorder %v3328_v43, 1  ;;  %v915_v12 = vsel %vm914_vm5, %v907_v60, %v4068_v57  ;;  %v916_v61 = vsel %vm914_vm5, %v4068_v57, %v4184_v44  ;;  %v1162_v4 = vmul.f32 %v5183_v8, %v895_v11  ;;  %v5209_v27 = vld [vmem:[#allocation96_spill] sm:$0xff]  ;;  %v4246_v9 = vpop.permute.xlu0 %962 }
 0x426   : > { %5197 = vst [vmem:[#allocation76_spill] sm:$0xff] %v4174_v58  ;;  %5199 = vst [vmem:[#allocation77_spill] sm:$0xff] %v4177_v38  ;;  %v896_v3 = vsel %vm5202_vm11, %v890_v30, 0.0  ;;  %v1306_v22 = vmul.f32 %v5184_v63, %v895_v11  ;;  %v1455_v48 = vmul.f32 %v5185_v13, %v895_v11  ;;  %v1604_v37 = vmul.f32 %v5186_v41, %v895_v11 }
 0x427   : > { %5201 = vst [vmem:[#allocation78_spill] sm:$0xff] %v4180_v54  ;;  %v1163_v5 = vmul.f32 %v5183_v8, %v896_v3  ;;  %v1307_v10 = vmul.f32 %v5184_v63, %v896_v3  ;;  %v1456_v39 = vmul.f32 %v5185_v13, %v896_v3  ;;  %v1605_v60 = vmul.f32 %v5186_v41, %v896_v3 }
 0x428   : > { %v1165_v1 = vadd.f32 %v1162_v4, %v4092_v16  ;;  %v1309_v57 = vadd.f32 %v1306_v22, %v4094_v18  ;;  %v936_v8 = vpop.permute.xlu1 %935  ;;  %v1458_v63 = vadd.f32 %v1455_v48, %v4096_v7  ;;  %v1607_v13 = vadd.f32 %v1604_v37, %v4102_v34 }
 0x429   : > { %v4204_v30 = vadd.f32 %v1163_v5, %v1158_v40  ;;  %v4207_v15 = vadd.f32 %v1307_v10, %v1302_v51  ;;  %v4210_v54 = vadd.f32 %v1456_v39, %v1451_v52  ;;  %v4213_v38 = vadd.f32 %v1605_v60, %v1600_v17  ;;  %v5203_v5 = vld [vmem:[#allocation92_spill] sm:$0xff]  ;;  %v5204_v52 = vld [vmem:[#allocation93_spill] sm:$0xff]  ;;  %v5208_v60 = vld [vmem:[#allocation95_spill] sm:$0xff] }
 0x42a   : > { %v1753_v41 = vmul.f32 %v5187_v46, %v895_v11  ;;  %v1754_v16 = vmul.f32 %v5187_v46, %v896_v3  ;;  %v1902_v40 = vmul.f32 %v5188_v62, %v895_v11  ;;  %v1903_v18 = vmul.f32 %v5188_v62, %v896_v3 }
 0x42b   : > { %v2050_v51 = vmul.f32 %v5189_v25, %v895_v11  ;;  %v2051_v4 = vmul.f32 %v5189_v25, %v896_v3  ;;  %v1169_v7 = vmul.f32 %v5203_v5, %v915_v12  ;;  %v1313_v22 = vmul.f32 %v5204_v52, %v915_v12  ;;  %v5207_v3 = vld [vmem:[#allocation94_spill] sm:$0xff] }
 0x42c   : > { %v1756_v34 = vadd.f32 %v1753_v41, %v4110_v47  ;;  %v4224_v17 = vadd.f32 %v1754_v16, %v1749_v42  ;;  %v1905_v10 = vadd.f32 %v1902_v40, %v4112_v49  ;;  %v4227_v48 = vadd.f32 %v1903_v18, %v1898_v55  ;;  %v913_v46 = vpop.permute.xlu1 %912  ;;  %v5210_v42 = vld [vmem:[#allocation97_spill] sm:$0xff]  ;;  %v5211_v16 = vld [vmem:[#allocation98_spill] sm:$0xff] }
 0x42d   : > { %v2053_v39 = vadd.f32 %v2050_v51, %v4114_v0  ;;  %v4231_v62 = vadd.f32 %v2051_v4, %v4136_v14  ;;  %v1172_v11 = vadd.f32 %v1169_v7, %v1164_v31  ;;  %v1316_v25 = vadd.f32 %v1313_v22, %v1308_v26 }
 0x42e   : > { %5205 = vst [vmem:[#allocation79_spill] sm:$0xff] %v4227_v48  ;;  %v1462_v37 = vmul.f32 %v5207_v3, %v915_v12  ;;  %v1611_v58 = vmul.f32 %v5208_v60, %v915_v12  ;;  %v1760_v47 = vmul.f32 %v5209_v27, %v915_v12  ;;  %v1909_v41 = vmul.f32 %v5210_v42, %v915_v12 }
 0x42f   : > { %5206 = vst [vmem:[#allocation80_spill] sm:$0xff] %v4231_v62  ;;  %v2057_v49 = vmul.f32 %v5211_v16, %v915_v12  ;;  %v1170_v55 = vmul.f32 %v5203_v5, %v916_v61  ;;  %v1314_v40 = vmul.f32 %v5204_v52, %v916_v61  ;;  %v1463_v0 = vmul.f32 %v5207_v3, %v916_v61 }
 0x430   : > { %v1465_v14 = vadd.f32 %v1462_v37, %v4147_v24  ;;  %v1614_v31 = vadd.f32 %v1611_v58, %v4149_v20  ;;  %v1763_v26 = vadd.f32 %v1760_v47, %v4151_v32  ;;  %v1912_v18 = vadd.f32 %v1909_v41, %v4153_v45  ;;  %v961_v51 = vpop.permute.xlu1 %960 }
 0x431   : > { %v2060_v4 = vadd.f32 %v2057_v49, %v4155_v56  ;;  %v1173_v7 = vadd.f32 %v1170_v55, %v1165_v1  ;;  %v1317_v22 = vadd.f32 %v1314_v40, %v1309_v57  ;;  %v1466_v12 = vadd.f32 %v1463_v0, %v1458_v63 }
 0x432   : > { %v1612_v62 = vmul.f32 %v5208_v60, %v916_v61  ;;  %v1761_v48 = vmul.f32 %v5209_v27, %v916_v61  ;;  %v1910_v24 = vmul.f32 %v5210_v42, %v916_v61  ;;  %v2058_v20 = vmul.f32 %v5211_v16, %v916_v61 }
 0x433   : > { %v942_v32 = vsel %vm941_vm9, %v4089_v53, %v936_v8  ;;  %v943_v45 = vsel %vm941_vm9, %v936_v8, %v4108_v50  ;;  %v917_v56 = vsel %vm914_vm5, %v4184_v44, %v913_v46  ;;  %v969_v58 = vsel %vm968_vm12, %v961_v51, %v4246_v9 }
 0x434   : > { %v1615_v1 = vadd.f32 %v1612_v62, %v1607_v13  ;;  %v1764_v57 = vadd.f32 %v1761_v48, %v1756_v34  ;;  %v1913_v63 = vadd.f32 %v1910_v24, %v1905_v10  ;;  %v2061_v37 = vadd.f32 %v2058_v20, %v2053_v39  ;;  %v965_v10 = vpop.permute.xlu1 %964 }
 0x435   : > { %v948_v61 = vsel %vm927_vm10, %v942_v32, 0.0  ;;  %v949_v53 = vsel %vm928_vm1, %v943_v45, 0.0  ;;  %v1171_v50 = vmul.f32 %v5203_v5, %v917_v56  ;;  %v1315_v8 = vmul.f32 %v5204_v52, %v917_v56 }
 0x436   : > { %v1177_v44 = vmul.f32 %v5190_v29, %v948_v61  ;;  %v1178_v46 = vmul.f32 %v5190_v29, %v949_v53  ;;  %v1321_v13 = vmul.f32 %v5191_v23, %v948_v61  ;;  %v1322_v34 = vmul.f32 %v5191_v23, %v949_v53 }
 0x437   : > { %v1470_v48 = vmul.f32 %v5192_v35, %v948_v61  ;;  %v1471_v39 = vmul.f32 %v5192_v35, %v949_v53  ;;  %v1619_v62 = vmul.f32 %v5194_v2, %v948_v61  ;;  %v1620_v47 = vmul.f32 %v5194_v2, %v949_v53 }
 0x438   : > { %v1180_v5 = vadd.f32 %v1177_v44, %v1172_v11  ;;  %v4275_v41 = vadd.f32 %v1178_v46, %v1173_v7  ;;  %v1324_v52 = vadd.f32 %v1321_v13, %v1316_v25  ;;  %v4277_v49 = vadd.f32 %v1322_v34, %v1317_v22  ;;  %v5218_v44 = vld [vmem:[#allocation75_spill] sm:$0xff]  ;;  %v5219_v46 = vld [vmem:[#allocation76_spill] sm:$0xff]  ;;  %v5220_v13 = vld [vmem:[#allocation77_spill] sm:$0xff] }
 0x439   : > { %v1473_v29 = vadd.f32 %v1470_v48, %v1465_v14  ;;  %v4279_v55 = vadd.f32 %v1471_v39, %v1466_v12  ;;  %v1622_v40 = vadd.f32 %v1619_v62, %v1614_v31  ;;  %v4281_v23 = vadd.f32 %v1620_v47, %v1615_v1  ;;  %v967_v1 = vpop.permute.xlu0 %966 }
 0x43a   : > { %v1768_v0 = vmul.f32 %v5196_v59, %v948_v61  ;;  %v1769_v35 = vmul.f32 %v5196_v59, %v949_v53  ;;  %v1917_v51 = vmul.f32 %v5198_v36, %v948_v61  ;;  %v1918_v2 = vmul.f32 %v5198_v36, %v949_v53  ;;  %v988_v36 = vpop.permute.xlu1 %987 }
 0x43b   : > { %vm955_vm1 = vcmp.lt.s32.totalorder %v3294_v33, 14  ;;  %vm995_vm15 = vcmask 367616   ;;  %v2065_v11 = vmul.f32 %v5200_v21, %v948_v61  ;;  %v2066_v25 = vmul.f32 %v5200_v21, %v949_v53  ;;  %v5214_v61 = vld [vmem:[#allocation99_spill] sm:$0xff] }
 0x43c   : > { %v1174_v14 = vadd.f32 %v1171_v50, %v4204_v30  ;;  %v1318_v31 = vadd.f32 %v1315_v8, %v4207_v15  ;;  %v1771_v7 = vadd.f32 %v1768_v0, %v1763_v26  ;;  %v4293_v22 = vadd.f32 %v1769_v35, %v1764_v57  ;;  %v5222_v35 = vld [vmem:[#allocation102_spill] sm:$0xff] }
 0x43d   : > { %v1920_v59 = vadd.f32 %v1917_v51, %v1912_v18  ;;  %v4295_v12 = vadd.f32 %v1918_v2, %v1913_v63  ;;  %v2068_v24 = vadd.f32 %v2065_v11, %v2060_v4  ;;  %v4297_v20 = vadd.f32 %v2066_v25, %v2061_v37  ;;  %v5212_v63 = vld [vmem:[#allocation79_spill] sm:$0xff]  ;;  %v5213_v37 = vld [vmem:[#allocation80_spill] sm:$0xff]  ;;  %v990_v0 = vpop.permute.xlu0 %989 }
 0x43e   : > { %v1182_v32 = vadd.f32 %v4162_v19, %v1174_v14  ;;  %v1326_v45 = vadd.f32 %v4165_v6, %v1318_v31  ;;  %v1464_v21 = vmul.f32 %v5207_v3, %v917_v56  ;;  %v1613_v30 = vmul.f32 %v5208_v60, %v917_v56  ;;  %v992_v34 = vpop.permute.xlu1 %991  ;;  %v5223_v2 = vld [vmem:[#allocation103_spill] sm:$0xff]  ;;  %v5224_v25 = vld [vmem:[#allocation104_spill] sm:$0xff]  ;;  %v5225_v31 = vld [vmem:[#allocation105_spill] sm:$0xff] }
 0x43f   : > { %v1762_v15 = vmul.f32 %v5209_v27, %v917_v56  ;;  %v1911_v26 = vmul.f32 %v5210_v42, %v917_v56  ;;  %v2059_v18 = vmul.f32 %v5211_v16, %v917_v56  ;;  %v975_v4 = vsel %vm954_vm13, %v969_v58, 0.0  ;;  %v5215_v56 = vld [vmem:[#allocation100_spill] sm:$0xff]  ;;  %v5216_v58 = vld [vmem:[#allocation101_spill] sm:$0xff] }
 0x440   : > { %v970_v57 = vsel %vm968_vm12, %v4246_v9, %v965_v10  ;;  %v971_v19 = vsel %vm968_vm12, %v965_v10, %v967_v1  ;;  %v1467_v6 = vadd.f32 %v1464_v21, %v4210_v54  ;;  %v1616_v3 = vadd.f32 %v1613_v30, %v4213_v38  ;;  %v5217_v9 = vld [vmem:[#allocation74_spill] sm:$0xff] }
 0x441   : > { %v1765_v60 = vadd.f32 %v1762_v15, %v4224_v17  ;;  %v1914_v27 = vadd.f32 %v1911_v26, %v5212_v63  ;;  %v2062_v42 = vadd.f32 %v2059_v18, %v5213_v37  ;;  %v1185_v16 = vmul.f32 %v5214_v61, %v975_v4  ;;  %v5221_v10 = vld [vmem:[#allocation78_spill] sm:$0xff] }
 0x442   : > { %v1329_v53 = vmul.f32 %v5215_v56, %v975_v4  ;;  %v1478_v50 = vmul.f32 %v5216_v58, %v975_v4  ;;  %vm981_vm0 = vcmp.lt.s32.totalorder %v3278_v28, 13  ;;  %v1475_v8 = vadd.f32 %v5217_v9, %v1467_v6 }
 0x443   : > { %v1624_v54 = vadd.f32 %v5218_v44, %v1616_v3  ;;  %v1773_v38 = vadd.f32 %v5219_v46, %v1765_v60  ;;  %v1922_v17 = vadd.f32 %v5220_v13, %v1914_v27  ;;  %v2070_v48 = vadd.f32 %v5221_v10, %v2062_v42  ;;  %v5226_v46 = vld [vmem:[#allocation106_spill] sm:$0xff]  ;;  %v5227_v10 = vld [vmem:[#allocation107_spill] sm:$0xff] }
 0x444   : > { %v1188_v39 = vadd.f32 %v1185_v16, %v1180_v5  ;;  %v1332_v62 = vadd.f32 %v1329_v53, %v1324_v52  ;;  %v1481_v47 = vadd.f32 %v1478_v50, %v1473_v29  ;;  %v1627_v51 = vmul.f32 %v5222_v35, %v975_v4  ;;  %v994_v16 = vpop.permute.xlu0 %993 }
 0x445   : > { %v1776_v11 = vmul.f32 %v5223_v2, %v975_v4  ;;  %v1925_v14 = vmul.f32 %v5224_v25, %v975_v4  ;;  %v2073_v1 = vmul.f32 %v5225_v31, %v975_v4  ;;  %v976_v21 = vsel %vm955_vm1, %v970_v57, 0.0 }
 0x446   : > { %v977_v30 = vsel %vm956_vm14, %v971_v19, 0.0  ;;  %v996_v15 = vsel %vm995_vm15, %v988_v36, %v990_v0  ;;  %v997_v5 = vsel %vm995_vm15, %v990_v0, %v992_v34  ;;  %v1630_v52 = vadd.f32 %v1627_v51, %v1622_v40 }
 0x447   : > { %v1779_v29 = vadd.f32 %v1776_v11, %v1771_v7  ;;  %v1928_v26 = vadd.f32 %v1925_v14, %v1920_v59  ;;  %v2076_v18 = vadd.f32 %v2073_v1, %v2068_v24  ;;  %v1186_v6 = vmul.f32 %v5214_v61, %v976_v21  ;;  %v5231_v11 = vld [vmem:[#allocation111_spill] sm:$0xff]  ;;  %v5232_v14 = vld [vmem:[#allocation112_spill] sm:$0xff] }
 0x448   : > { %v1187_v4 = vmul.f32 %v5214_v61, %v977_v30  ;;  %v1330_v3 = vmul.f32 %v5215_v56, %v976_v21  ;;  %v1331_v57 = vmul.f32 %v5215_v56, %v977_v30  ;;  %vm983_vm3 = vcmp.lt.s32.totalorder %v3328_v43, 13 }
 0x449   : > { %v1479_v36 = vmul.f32 %v5216_v58, %v976_v21  ;;  %v1480_v19 = vmul.f32 %v5216_v58, %v977_v30  ;;  %v1628_v60 = vmul.f32 %v5222_v35, %v976_v21  ;;  %v1629_v40 = vmul.f32 %v5222_v35, %v977_v30 }
 0x44a   : > { %v1189_v7 = vadd.f32 %v1186_v6, %v4275_v41  ;;  %v1190_v59 = vadd.f32 %v1187_v4, %v1182_v32  ;;  %v1333_v24 = vadd.f32 %v1330_v3, %v4277_v49  ;;  %v1334_v63 = vadd.f32 %v1331_v57, %v1326_v45  ;;  %v5234_v4 = vld [vmem:[#allocation114_spill] sm:$0xff] }
 0x44b   : > { %v1482_v27 = vadd.f32 %v1479_v36, %v4279_v55  ;;  %v1483_v37 = vadd.f32 %v1480_v19, %v1475_v8  ;;  %v1631_v42 = vadd.f32 %v1628_v60, %v4281_v23  ;;  %v4349_v61 = vadd.f32 %v1629_v40, %v1624_v54  ;;  %v5235_v19 = vld [vmem:[#allocation115_spill] sm:$0xff]  ;;  %v5237_v40 = vld [vmem:[#allocation117_spill] sm:$0xff] }
 0x44c   : > { %v1777_v56 = vmul.f32 %v5223_v2, %v976_v21  ;;  %v1778_v53 = vmul.f32 %v5223_v2, %v977_v30  ;;  %v1926_v58 = vmul.f32 %v5224_v25, %v976_v21  ;;  %v1927_v41 = vmul.f32 %v5224_v25, %v977_v30 }
 0x44d   : > { %v2074_v32 = vmul.f32 %v5225_v31, %v976_v21  ;;  %v2075_v49 = vmul.f32 %v5225_v31, %v977_v30  ;;  %v1002_v55 = vsel %vm981_vm0, %v996_v15, 0.0  ;;  %v998_v23 = vsel %vm995_vm15, %v992_v34, %v994_v16  ;;  %v5228_v34 = vld [vmem:[#allocation108_spill] sm:$0xff]  ;;  %v5233_v15 = vld [vmem:[#allocation113_spill] sm:$0xff] }
 0x44e   : > { %v4361_v45 = vadd.f32 %v1777_v56, %v4293_v22  ;;  %v4363_v50 = vadd.f32 %v1778_v53, %v1773_v38  ;;  %v4366_v9 = vadd.f32 %v1926_v58, %v4295_v12  ;;  %v4368_v8 = vadd.f32 %v1927_v41, %v1922_v17  ;;  %v5229_v22 = vld [vmem:[#allocation109_spill] sm:$0xff]  ;;  %v5230_v38 = vld [vmem:[#allocation110_spill] sm:$0xff]  ;;  %v5241_v53 = vld [vmem:[#allocation119_spill] sm:$0xff] }
 0x44f   : > { %v4371_v44 = vadd.f32 %v2074_v32, %v4297_v20  ;;  %v4373_v54 = vadd.f32 %v2075_v49, %v2070_v48  ;;  %v1193_v13 = vmul.f32 %v5226_v46, %v1002_v55  ;;  %v1337_v0 = vmul.f32 %v5227_v10, %v1002_v55  ;;  %v5238_v56 = vld [vmem:[#allocation118_spill] sm:$0xff]  ;;  %v5243_v49 = vld [vmem:[#allocation139_spill] sm:$0xff] }
 0x450   : > { %v1486_v35 = vmul.f32 %v5228_v34, %v1002_v55  ;;  %v1635_v51 = vmul.f32 %v5229_v22, %v1002_v55  ;;  %v1784_v2 = vmul.f32 %v5230_v38, %v1002_v55  ;;  %v1933_v12 = vmul.f32 %v5231_v11, %v1002_v55 }
 0x451   : > { %v1196_v25 = vadd.f32 %v1193_v13, %v1188_v39  ;;  %v1340_v17 = vadd.f32 %v1337_v0, %v1332_v62  ;;  %v2081_v31 = vmul.f32 %v5232_v14, %v1002_v55  ;;  %v1003_v20 = vsel %vm982_vm2, %v997_v5, 0.0  ;;  %v5236_v62 = vld [vmem:[#allocation116_spill] sm:$0xff]  ;;  %v5245_v0 = vld [vmem:[#allocation141_spill] sm:$0xff] }
 0x452   : > { %v1489_v48 = vadd.f32 %v1486_v35, %v1481_v47  ;;  %v1638_v1 = vadd.f32 %v1635_v51, %v1630_v52  ;;  %v1787_v21 = vadd.f32 %v1784_v2, %v1779_v29  ;;  %v1936_v30 = vadd.f32 %v1933_v12, %v1928_v26  ;;  %v5239_v47 = vld [vmem:[#allocation134_spill] sm:$0xff]  ;;  %v5240_v29 = vld [vmem:[#allocation137_spill] sm:$0xff] }
 0x453   : > { %v1204_v6 = vadd.f32 %v5233_v15, %v1196_v25  ;;  %v1348_v3 = vadd.f32 %v5234_v4, %v1340_v17  ;;  %v2084_v57 = vadd.f32 %v2081_v31, %v2076_v18  ;;  %v1004_v36 = vsel %vm983_vm3, %v998_v23, 0.0  ;;  %v5242_v18 = vld [vmem:[#allocation138_spill] sm:$0xff]  ;;  %v5244_v23 = vld [vmem:[#allocation140_spill] sm:$0xff] }
 0x454   : > { %v1497_v39 = vadd.f32 %v5235_v19, %v1489_v48  ;;  %v1646_v60 = vadd.f32 %v5236_v62, %v1638_v1  ;;  %v1795_v16 = vadd.f32 %v5237_v40, %v1787_v21  ;;  %v1944_v5 = vadd.f32 %v5238_v56, %v1936_v30  ;;  %v5246_v51 = vld [vmem:[#allocation142_spill] sm:$0xff]  ;;  %v5247_v15 = vld [vmem:[#allocation120_spill] sm:$0xff]  ;;  %v5251_v56 = vld [vmem:[#allocation123_spill] sm:$0xff] }
 0x455   : > { %v1212_v52 = vadd.f32 %v5239_v47, %v1204_v6  ;;  %v1356_v26 = vadd.f32 %v5240_v29, %v1348_v3  ;;  %v2092_v58 = vadd.f32 %v5241_v53, %v2084_v57  ;;  %v1194_v41 = vmul.f32 %v5226_v46, %v1003_v20  ;;  %v5250_v40 = vld [vmem:[#allocation122_spill] sm:$0xff]  ;;  %v5253_v29 = vld [vmem:[#allocation125_spill] sm:$0xff] }
 0x456   : > { %v4397_v32 = vadd.f32 %v5242_v18, %v1497_v39  ;;  %v4400_v55 = vadd.f32 %v5243_v49, %v1646_v60  ;;  %v4403_v13 = vadd.f32 %v5244_v23, %v1795_v16  ;;  %v4406_v35 = vadd.f32 %v5245_v0, %v1944_v5  ;;  %v5248_v39 = vld [vmem:[#allocation121_spill] sm:$0xff]  ;;  %v5249_v60 = vld [vmem:[#allocation143_spill] sm:$0xff]  ;;  %v5254_v53 = vld [vmem:[#allocation126_spill] sm:$0xff] }
 0x457   : > { %v4409_v2 = vadd.f32 %v5246_v51, %v2092_v58  ;;  %v1195_v12 = vmul.f32 %v5226_v46, %v1004_v36  ;;  %v1197_v25 = vadd.f32 %v1194_v41, %v1189_v7  ;;  %v1338_v17 = vmul.f32 %v5227_v10, %v1003_v20  ;;  %v5257_v58 = vld [vmem:[#allocation127_spill] sm:$0xff]  ;;  %v5258_v49 = vld [vmem:[#allocation148_spill] sm:$0xff]  ;;  %v5260_v51 = vld [vmem:[#allocation150_spill] sm:$0xff] }
 0x458   : > { %v1339_v31 = vmul.f32 %v5227_v10, %v1004_v36  ;;  %v1487_v48 = vmul.f32 %v5228_v34, %v1003_v20  ;;  %v1488_v1 = vmul.f32 %v5228_v34, %v1004_v36  ;;  %v1636_v21 = vmul.f32 %v5229_v22, %v1003_v20 }
 0x459   : > { %v1198_v30 = vadd.f32 %v1195_v12, %v1190_v59  ;;  %v1205_v6 = vadd.f32 %v5247_v15, %v1197_v25  ;;  %v1341_v4 = vadd.f32 %v1338_v17, %v1333_v24  ;;  %v1637_v3 = vmul.f32 %v5229_v22, %v1004_v36  ;;  %v5252_v59 = vld [vmem:[#allocation124_spill] sm:$0xff]  ;;  %v5261_v25 = vld [vmem:[#allocation151_spill] sm:$0xff] }
 0x45a   : > { %v1342_v57 = vadd.f32 %v1339_v31, %v1334_v63  ;;  %v1490_v19 = vadd.f32 %v1487_v48, %v1482_v27  ;;  %v1491_v46 = vadd.f32 %v1488_v1, %v1483_v37  ;;  %v1639_v7 = vadd.f32 %v1636_v21, %v1631_v42  ;;  %v5255_v63 = vld [vmem:[#allocation147_spill] sm:$0xff]  ;;  %v5256_v37 = vld [vmem:[#allocation144_spill] sm:$0xff] }
 0x45b   : > { %v1206_v62 = vadd.f32 %v5248_v39, %v1198_v30  ;;  %v1213_v10 = vadd.f32 %v5249_v60, %v1205_v6  ;;  %v1349_v16 = vadd.f32 %v5250_v40, %v1341_v4  ;;  %v1640_v34 = vadd.f32 %v1637_v3, %v4349_v61  ;;  %v5259_v61 = vld [vmem:[#allocation149_spill] sm:$0xff]  ;;  %v5262_v31 = vld [vmem:[#allocation152_spill] sm:$0xff]  ;;  %v5263_v3 = vld [vmem:[#allocation162_spill] sm:$0xff] }
 0x45c   : > { %v1350_v5 = vadd.f32 %v5251_v56, %v1342_v57  ;;  %v1498_v47 = vadd.f32 %v5252_v59, %v1490_v19  ;;  %v1499_v24 = vadd.f32 %v5253_v29, %v1491_v46  ;;  %v1647_v22 = vadd.f32 %v5254_v53, %v1639_v7  ;;  %v5264_v46 = vld [vmem:[#allocation128_spill] sm:$0xff]  ;;  %v5265_v39 = vld [vmem:[#allocation163_spill] sm:$0xff]  ;;  %v5268_v60 = vld [vmem:[#allocation153_spill] sm:$0xff] }
 0x45d   : > { %v1214_v27 = vadd.f32 %v5255_v63, %v1206_v62  ;;  %v4429_v42 = vadd.f32 %v5256_v37, %v1349_v16  ;;  %v1648_v41 = vadd.f32 %v5257_v58, %v1640_v34  ;;  %v1785_v18 = vmul.f32 %v5230_v38, %v1003_v20  ;;  %v5267_v62 = vld [vmem:[#allocation129_spill] sm:$0xff]  ;;  %v5269_v16 = vld [vmem:[#allocation130_spill] sm:$0xff]  ;;  %v5270_v34 = vld [vmem:[#allocation184_spill] sm:$0xff] }
 0x45e   : > { %v4434_v23 = vadd.f32 %v5258_v49, %v1350_v5  ;;  %v4437_v0 = vadd.f32 %v5259_v61, %v1498_v47  ;;  %v4440_v12 = vadd.f32 %v5260_v51, %v1499_v24  ;;  %v4443_v17 = vadd.f32 %v5261_v25, %v1647_v22  ;;  %v5271_v56 = vld [vmem:[#allocation131_spill] sm:$0xff]  ;;  %v5272_v5 = vld [vmem:[#allocation132_spill] sm:$0xff]  ;;  %v5273_v59 = vld [vmem:[#allocation133_spill] sm:$0xff]  ;;  %v1110_v49 = vpop.permute.xlu1 %1109 }
 0x45f   : > { %v4446_v48 = vadd.f32 %v5262_v31, %v1648_v41  ;;  %v1786_v1 = vmul.f32 %v5230_v38, %v1004_v36  ;;  %v1788_v21 = vadd.f32 %v1785_v18, %v4361_v45  ;;  %v1934_v30 = vmul.f32 %v5231_v11, %v1003_v20  ;;  %v5274_v47 = vld [vmem:[#allocation197_spill] sm:$0xff]  ;;  %v5275_v24 = vld [vmem:[#allocation154_spill] sm:$0xff]  ;;  %v5276_v22 = vld [vmem:[#allocation155_spill] sm:$0xff] }
 0x460   : > { %v1935_v15 = vmul.f32 %v5231_v11, %v1004_v36  ;;  %v2082_v6 = vmul.f32 %v5232_v14, %v1003_v20  ;;  %v2083_v4 = vmul.f32 %v5232_v14, %v1004_v36  ;;  %v1220_v57 = vadd.f32 %v5263_v3, %v1212_v52  ;;  %v5266_v36 = vld [vmem:[#allocation183_spill] sm:$0xff]  ;;  %v5278_v41 = vld [vmem:[#allocation164_spill] sm:$0xff]  ;;  %v5280_v25 = vld [vmem:[#allocation157_spill] sm:$0xff] }
 0x461   : > { %v1789_v19 = vadd.f32 %v1786_v1, %v4363_v50  ;;  %v1796_v7 = vadd.f32 %v5264_v46, %v1788_v21  ;;  %v1937_v38 = vadd.f32 %v1934_v30, %v4366_v9  ;;  %v1364_v45 = vadd.f32 %v5265_v39, %v1356_v26  ;;  %v5277_v37 = vld [vmem:[#allocation199_spill] sm:$0xff]  ;;  %v5279_v61 = vld [vmem:[#allocation156_spill] sm:$0xff]  ;;  %v5281_v1 = vld [vmem:[#allocation158_spill] sm:$0xff] }
 0x462   : > { %v1938_v11 = vadd.f32 %v1935_v15, %v4368_v8  ;;  %v2085_v20 = vadd.f32 %v2082_v6, %v4371_v44  ;;  %v2086_v14 = vadd.f32 %v2083_v4, %v4373_v54  ;;  %v1228_v52 = vadd.f32 %v5266_v36, %v1220_v57  ;;  %v5282_v30 = vld [vmem:[#allocation165_spill] sm:$0xff]  ;;  %v4503_v6 = vpop.permute.xlu0 %1111  ;;  %v5287_v39 = vld [vmem:[#allocation186_spill] sm:$0xff] }
 0x463   : > { %v1797_v50 = vadd.f32 %v5267_v62, %v1789_v19  ;;  %v1804_v40 = vadd.f32 %v5268_v60, %v1796_v7  ;;  %v1945_v9 = vadd.f32 %v5269_v16, %v1937_v38  ;;  %v1372_v26 = vadd.f32 %v5270_v34, %v1364_v45  ;;  %v5283_v4 = vld [vmem:[#allocation185_spill] sm:$0xff]  ;;  %v5285_v19 = vld [vmem:[#allocation167_spill] sm:$0xff]  ;;  %v5286_v7 = vld [vmem:[#allocation168_spill] sm:$0xff] }
 0x464   : > { %v1946_v8 = vadd.f32 %v5271_v56, %v1938_v11  ;;  %v2093_v44 = vadd.f32 %v5272_v5, %v2085_v20  ;;  %v2094_v54 = vadd.f32 %v5273_v59, %v2086_v14  ;;  %v1236_v29 = vadd.f32 %v5274_v47, %v1228_v52  ;;  %v5289_v14 = vld [vmem:[#allocation170_spill] sm:$0xff]  ;;  %v5290_v52 = vld [vmem:[#allocation201_spill] sm:$0xff]  ;;  %v5296_v56 = vld [vmem:[#allocation211_spill] sm:$0xff] }
 0x465   : > { %v1805_v53 = vadd.f32 %v5275_v24, %v1797_v50  ;;  %v4483_v63 = vadd.f32 %v5276_v22, %v1945_v9  ;;  %v4486_v58 = vadd.f32 %v5277_v37, %v1372_v26  ;;  %v1513_v18 = vadd.f32 %v5278_v41, %v4397_v32  ;;  %v5284_v32 = vld [vmem:[#allocation166_spill] sm:$0xff]  ;;  %v5292_v50 = vld [vmem:[#allocation188_spill] sm:$0xff]  ;;  %v5293_v60 = vld [vmem:[#allocation189_spill] sm:$0xff] }
 0x466   : > { %v4493_v51 = vadd.f32 %v5279_v61, %v1946_v8  ;;  %v4496_v31 = vadd.f32 %v5280_v25, %v2093_v44  ;;  %v4499_v21 = vadd.f32 %v5281_v1, %v2094_v54  ;;  %v1662_v15 = vadd.f32 %v5282_v30, %v4400_v55  ;;  %v5288_v55 = vld [vmem:[#allocation169_spill] sm:$0xff]  ;;  %v5294_v9 = vld [vmem:[#allocation203_spill] sm:$0xff]  ;;  %v5295_v26 = vld [vmem:[#allocation190_spill] sm:$0xff] }
 0x467   : > { %v1521_v3 = vadd.f32 %v5283_v4, %v1513_v18  ;;  %v1811_v57 = vadd.f32 %v5284_v32, %v4403_v13  ;;  %v1960_v46 = vadd.f32 %v5285_v19, %v4406_v35  ;;  %v2108_v38 = vadd.f32 %v5286_v7, %v4409_v2  ;;  %v5291_v35 = vld [vmem:[#allocation187_spill] sm:$0xff]  ;;  %v5297_v5 = vld [vmem:[#allocation205_spill] sm:$0xff]  ;;  %v5302_v25 = vld [vmem:[#allocation136_spill] sm:$0xff] }
 0x468   : > { %v1670_v45 = vadd.f32 %v5287_v39, %v1662_v15  ;;  %v1117_v11 = vsel %vm968_vm12, %v1110_v49, %v4503_v6  ;;  %v1221_v20 = vadd.f32 %v5288_v55, %v1213_v10  ;;  %v1222_v36 = vadd.f32 %v5289_v14, %v1214_v27  ;;  %v5298_v59 = vld [vmem:[#allocation207_spill] sm:$0xff]  ;;  %v5299_v47 = vld [vmem:[#allocation209_spill] sm:$0xff]  ;;  %v5303_v30 = vld [vmem:[#allocation198_spill] sm:$0xff] }
 0x469   : > { %v4518_v13 = vadd.f32 %v5290_v52, %v1521_v3  ;;  %v1819_v62 = vadd.f32 %v5291_v35, %v1811_v57  ;;  %v1968_v2 = vadd.f32 %v5292_v50, %v1960_v46  ;;  %v2116_v16 = vadd.f32 %v5293_v60, %v2108_v38  ;;  %v5301_v37 = vld [vmem:[#allocation135_spill] sm:$0xff]  ;;  %v5304_v57 = vld [vmem:[#allocation145_spill] sm:$0xff]  ;;  %v5305_v46 = vld [vmem:[#allocation146_spill] sm:$0xff] }
 0x46a   : > { %v4524_v34 = vadd.f32 %v5294_v9, %v1670_v45  ;;  %v1123_v10 = vsel %vm954_vm13, %v1117_v11, 0.0  ;;  %v1229_v27 = vadd.f32 %v5295_v26, %v1221_v20  ;;  %v1230_v8 = vadd.f32 %v5296_v56, %v1222_v36  ;;  %v5306_v38 = vld [vmem:[#allocation159_spill] sm:$0xff]  ;;  %v5307_v45 = vld [vmem:[#allocation160_spill] sm:$0xff]  ;;  %v5308_v55 = vld [vmem:[#allocation161_spill] sm:$0xff] }
 0x46b   : > { %v4531_v44 = vadd.f32 %v5297_v5, %v1819_v62  ;;  %v4534_v54 = vadd.f32 %v5298_v59, %v1968_v2  ;;  %v4537_v24 = vadd.f32 %v5299_v47, %v2116_v16  ;;  %v4540_v22 = vstv %s4455_s5  ;;  %v5310_v14 = vld [vmem:[#allocation214_spill] sm:$0xff]  ;;  %v5311_v52 = vld [vmem:[#allocation171_spill] sm:$0xff]  ;;  %v5312_v62 = vld [vmem:[#allocation172_spill] sm:$0xff] }
 0x46c   : > { %v1241_v41 = vmul.f32 %v5301_v37, %v1123_v10  ;;  %v4544_v18 = vstv %s4461_s29  ;;  %v4547_v49 = vstv %s4467_s25  ;;  %v4550_v61 = vstv %s4473_s2  ;;  %v5313_v50 = vld [vmem:[#allocation173_spill] sm:$0xff]  ;;  %v5314_v60 = vld [vmem:[#allocation174_spill] sm:$0xff]  ;;  %v5315_v9 = vld [vmem:[#allocation175_spill] sm:$0xff] }
 0x46d   : > { %5300 = vst [vmem:[#allocation81_spill] sm:$0xff] %v4537_v24  ;;  %v1385_v1 = vmul.f32 %v5302_v25, %v1123_v10  ;;  %v4554_v15 = vadd.f32 %v5303_v30, %v1229_v27  ;;  %v4557_v4 = vstv %s4479_s18  ;;  %v4560_v3 = vstv %s4490_s14  ;;  %v5316_v27 = vld [vmem:[#allocation191_spill] sm:$0xff]  ;;  %v5317_v56 = vld [vmem:[#allocation176_spill] sm:$0xff]  ;;  %v5318_v5 = vld [vmem:[#allocation177_spill] sm:$0xff] }
 0x46e   : > { %v4562_v32 = vadd.f32 %v1241_v41, %v1236_v29  ;;  %v1534_v19 = vmul.f32 %v5304_v57, %v1123_v10  ;;  %v1683_v7 = vmul.f32 %v5305_v46, %v1123_v10  ;;  %v1832_v39 = vmul.f32 %v5306_v38, %v1123_v10  ;;  %v5320_v41 = vld [vmem:[#allocation212_spill] sm:$0xff] }
 0x46f   : > { %v1981_v11 = vmul.f32 %v5307_v45, %v1123_v10  ;;  %v4569_v20 = vmul.f32 %v5308_v55, %v1123_v10  ;;  %v1238_v36 = vadd.f32 %v5310_v14, %v1230_v8  ;;  %v1365_v35 = vadd.f32 %v5311_v52, %v4429_v42  ;;  %v5319_v42 = vld [vmem:[#allocation178_spill] sm:$0xff]  ;;  %v5321_v30 = vld [vmem:[#allocation192_spill] sm:$0xff] }
 0x470   : > { %v1366_v29 = vadd.f32 %v5312_v62, %v4434_v23  ;;  %v1514_v2 = vadd.f32 %v5313_v50, %v4437_v0  ;;  %v1515_v16 = vadd.f32 %v5314_v60, %v4440_v12  ;;  %v1663_v26 = vadd.f32 %v5315_v9, %v4443_v17  ;;  %v5322_v0 = vld [vmem:[#allocation213_spill] sm:$0xff]  ;;  %v1114_v50 = vpop.permute.xlu1 %1113  ;;  %v5324_v60 = vld [vmem:[#allocation200_spill] sm:$0xff] }
 0x471   : > { %5309 = vst [vmem:[#allocation82_spill] sm:$0xff] %v4569_v20  ;;  %v1373_v10 = vadd.f32 %v5316_v27, %v1365_v35  ;;  %v1664_v8 = vadd.f32 %v5317_v56, %v4446_v48  ;;  %v1812_v59 = vadd.f32 %v5318_v5, %v1804_v40  ;;  %v1813_v47 = vadd.f32 %v5319_v42, %v1805_v53  ;;  %v5323_v62 = vld [vmem:[#allocation193_spill] sm:$0xff]  ;;  %v5326_v27 = vld [vmem:[#allocation194_spill] sm:$0xff]  ;;  %v1116_v40 = vpop.permute.xlu0 %1115  ;;  %v5328_v5 = vld [vmem:[#allocation215_spill] sm:$0xff] }
 0x472   : > { %v1374_v23 = vadd.f32 %v5320_v41, %v1366_v29  ;;  %v1522_v14 = vadd.f32 %v5321_v30, %v1514_v2  ;;  %v1523_v52 = vadd.f32 %v5322_v0, %v1515_v16  ;;  %v1671_v12 = vadd.f32 %v5323_v62, %v1663_v26  ;;  %v5325_v9 = vld [vmem:[#allocation221_spill] sm:$0xff]  ;;  %v5327_v48 = vld [vmem:[#allocation222_spill] sm:$0xff]  ;;  %v5330_v41 = vld [vmem:[#allocation216_spill] sm:$0xff] }
 0x473   : > { %v1381_v17 = vadd.f32 %v5324_v60, %v1373_v10  ;;  %v1672_v35 = vadd.f32 %v5325_v9, %v1664_v8  ;;  %v1820_v20 = vadd.f32 %v5326_v27, %v1812_v59  ;;  %v1821_v56 = vadd.f32 %v5327_v48, %v1813_v47  ;;  %v5329_v42 = vld [vmem:[#allocation202_spill] sm:$0xff]  ;;  %v5331_v30 = vld [vmem:[#allocation204_spill] sm:$0xff]  ;;  %v5332_v0 = vld [vmem:[#allocation217_spill] sm:$0xff] }
 0x474   : > { %v1382_v53 = vadd.f32 %v5328_v5, %v1374_v23  ;;  %v1530_v29 = vadd.f32 %v5329_v42, %v1522_v14  ;;  %v1531_v2 = vadd.f32 %v5330_v41, %v1523_v52  ;;  %v1679_v16 = vadd.f32 %v5331_v30, %v1671_v12  ;;  %v5333_v62 = vld [vmem:[#allocation206_spill] sm:$0xff]  ;;  %v5335_v8 = vld [vmem:[#allocation179_spill] sm:$0xff]  ;;  %v5336_v47 = vld [vmem:[#allocation180_spill] sm:$0xff] }
 0x475   : > { %v1680_v26 = vadd.f32 %v5332_v0, %v1672_v35  ;;  %v1828_v24 = vadd.f32 %v5333_v62, %v1820_v20  ;;  %v5334_v10 = vld [vmem:[#allocation218_spill] sm:$0xff]  ;;  %v1961_v59 = vadd.f32 %v5335_v8, %v4483_v63  ;;  %v1962_v9 = vadd.f32 %v5336_v47, %v4493_v51  ;;  %v5337_v23 = vld [vmem:[#allocation181_spill] sm:$0xff]  ;;  %v5339_v20 = vld [vmem:[#allocation195_spill] sm:$0xff]  ;;  %v1127_v0 = vpop.permute.xlu1 %1126 }
 0x476   : > { %v1829_v60 = vadd.f32 %v5334_v10, %v1821_v56  ;;  %v2109_v27 = vadd.f32 %v5337_v23, %v4496_v31  ;;  %v5338_v14 = vld [vmem:[#allocation182_spill] sm:$0xff]  ;;  %v1118_v12 = vsel %vm968_vm12, %v4503_v6, %v1114_v50  ;;  %v1388_v35 = vadd.f32 %v1385_v1, %v4486_v58  ;;  %v5340_v5 = vld [vmem:[#allocation223_spill] sm:$0xff]  ;;  %v5341_v42 = vld [vmem:[#allocation196_spill] sm:$0xff] }
 0x477   : > { %v2110_v52 = vadd.f32 %v5338_v14, %v4499_v21  ;;  %v1969_v48 = vadd.f32 %v5339_v20, %v1961_v59  ;;  %v1119_v56 = vsel %vm968_vm12, %v1114_v50, %v1116_v40  ;;  %v1124_v63 = vsel %vm955_vm1, %v1118_v12, 0.0  ;;  %v5342_v31 = vld [vmem:[#allocation224_spill] sm:$0xff]  ;;  %v1129_v40 = vpop.permute.xlu0 %1128  ;;  %v5344_v10 = vld [vmem:[#allocation219_spill] sm:$0xff]  ;;  %v5345_v59 = vld [vmem:[#allocation210_spill] sm:$0xff] }
 0x478   : > { %v1970_v51 = vadd.f32 %v5340_v5, %v1962_v9  ;;  %v2117_v41 = vadd.f32 %v5341_v42, %v2109_v27  ;;  %v1125_v21 = vsel %vm956_vm14, %v1119_v56, 0.0  ;;  %v1537_v6 = vadd.f32 %v1534_v19, %v4518_v13  ;;  %v5343_v1 = vld [vmem:[#allocation208_spill] sm:$0xff] }
 0x479   : > { %v2118_v30 = vadd.f32 %v5342_v31, %v2110_v52  ;;  %v1686_v58 = vadd.f32 %v1683_v7, %v4524_v34  ;;  %v1977_v62 = vadd.f32 %v5343_v1, %v1969_v48  ;;  %v1242_v50 = vmul.f32 %v5301_v37, %v1124_v63  ;;  %v5346_v9 = vld [vmem:[#allocation220_spill] sm:$0xff]  ;;  %v1131_v42 = vpop.permute.xlu1 %1130 }
 0x47a   : > { %v1978_v8 = vadd.f32 %v5344_v10, %v1970_v51  ;;  %v4628_v47 = vadd.f32 %v5345_v59, %v2117_v41  ;;  %v1243_v27 = vmul.f32 %v5301_v37, %v1125_v21  ;;  %v1835_v14 = vadd.f32 %v1832_v39, %v4531_v44 }
 0x47b   : > { %v4631_v23 = vadd.f32 %v5346_v9, %v2118_v30  ;;  %v1984_v13 = vadd.f32 %v1981_v11, %v4534_v54  ;;  %v1386_v34 = vmul.f32 %v5302_v25, %v1124_v63  ;;  %v1134_v19 = vsel %vm995_vm15, %v1127_v0, %v1129_v40 }
 0x47c   : > { %v1245_v7 = vadd.f32 %v1242_v50, %v4554_v15  ;;  %v1246_v52 = vadd.f32 %v1243_v27, %v1238_v36  ;;  %v1387_v12 = vmul.f32 %v5302_v25, %v1125_v21  ;;  %v1535_v20 = vmul.f32 %v5304_v57, %v1124_v63 }
 0x47d   : > { %v1389_v48 = vadd.f32 %v1386_v34, %v1381_v17  ;;  %v1536_v56 = vmul.f32 %v5304_v57, %v1125_v21  ;;  %v1684_v37 = vmul.f32 %v5305_v46, %v1124_v63  ;;  %v1685_v44 = vmul.f32 %v5305_v46, %v1125_v21 }
 0x47e   : > { %v1390_v39 = vadd.f32 %v1387_v12, %v1382_v53  ;;  %v1538_v54 = vadd.f32 %v1535_v20, %v1530_v29  ;;  %v1833_v11 = vmul.f32 %v5306_v38, %v1124_v63  ;;  %v1834_v5 = vmul.f32 %v5306_v38, %v1125_v21  ;;  %v5347_v53 = vld [vmem:[#allocation225_spill] sm:$0xff] }
 0x47f   : > { %v1539_v51 = vadd.f32 %v1536_v56, %v1531_v2  ;;  %v1687_v15 = vadd.f32 %v1684_v37, %v1679_v16  ;;  %v1688_v36 = vadd.f32 %v1685_v44, %v1680_v26  ;;  %v1982_v25 = vmul.f32 %v5307_v45, %v1124_v63  ;;  %v1133_v26 = vpop.permute.xlu0 %1132 }
 0x480   : > { %v1836_v41 = vadd.f32 %v1833_v11, %v1828_v24  ;;  %v1837_v17 = vadd.f32 %v1834_v5, %v1829_v60  ;;  %v1983_v57 = vmul.f32 %v5307_v45, %v1125_v21  ;;  %v4650_v31 = vsel %vm981_vm0, %v1134_v19, 0.0  ;;  %v5351_v11 = vld [vmem:[#allocation32_spill] sm:$0xff] }
 0x481   : > { %v1985_v46 = vadd.f32 %v1982_v25, %v1977_v62  ;;  %v1249_v29 = vmul.f32 %v5347_v53, %v4650_v31  ;;  %v1393_v38 = vmul.f32 %v4540_v22, %v4650_v31  ;;  %v1542_v2 = vmul.f32 %v4544_v18, %v4650_v31 }
 0x482   : > { %v1691_v24 = vmul.f32 %v4547_v49, %v4650_v31  ;;  %v1840_v45 = vmul.f32 %v4550_v61, %v4650_v31  ;;  %v1989_v28 = vmul.f32 %v4557_v4, %v4650_v31  ;;  %v1135_v16 = vsel %vm995_vm15, %v1129_v40, %v1131_v42 }
 0x483   : > { %v1986_v60 = vadd.f32 %v1983_v57, %v1978_v8  ;;  %v2130_v30 = vmul.f32 %v5308_v55, %v1124_v63  ;;  %v2131_v0 = vmul.f32 %v5308_v55, %v1125_v21  ;;  %v1252_v1 = vadd.f32 %v1249_v29, %v4562_v32 }
 0x484   : > { %v1396_v62 = vadd.f32 %v1393_v38, %v1388_v35  ;;  %v1545_v50 = vadd.f32 %v1542_v2, %v1537_v6  ;;  %v1694_v10 = vadd.f32 %v1691_v24, %v1686_v58  ;;  %v1136_v59 = vsel %vm995_vm15, %v1131_v42, %v1133_v26 }
 0x485   : > { %v1843_v9 = vadd.f32 %v1840_v45, %v1835_v14  ;;  %v1992_v27 = vadd.f32 %v1989_v28, %v1984_v13  ;;  %v1141_v34 = vsel %vm982_vm2, %v1135_v16, 0.0  ;;  %v1142_v40 = vsel %vm983_vm3, %v1136_v59, 0.0 }
 0x486   : > { %v1250_v8 = vmul.f32 %v5347_v53, %v1141_v34  ;;  %v1251_v63 = vmul.f32 %v5347_v53, %v1142_v40  ;;  %v1394_v55 = vmul.f32 %v4540_v22, %v1141_v34  ;;  %v1395_v32 = vmul.f32 %v4540_v22, %v1142_v40 }
 0x487   : > { %v5348_v35 = vlaneseq  ;;  %v1543_v6 = vmul.f32 %v4544_v18, %v1141_v34  ;;  %v1544_v33 = vmul.f32 %v4544_v18, %v1142_v40  ;;  %v1692_v43 = vmul.f32 %v4547_v49, %v1141_v34 }
 0x488   : > { %v1693_v58 = vmul.f32 %v4547_v49, %v1142_v40  ;;  %v1253_v14 = vadd.f32 %v1250_v8, %v1245_v7  ;;  %v1254_v13 = vadd.f32 %v1251_v63, %v1246_v52  ;;  %v1397_v19 = vadd.f32 %v1394_v55, %v1389_v48 }
 0x489   : > { %vm4678_vm4 = vcmp.lt.s32.totalorder %v5348_v35, 352  ;;  %v1398_v12 = vadd.f32 %v1395_v32, %v1390_v39  ;;  %v1546_v20 = vadd.f32 %v1543_v6, %v1538_v54  ;;  %v1547_v56 = vadd.f32 %v1544_v33, %v1539_v51 }
 0x48a   : > { %v1695_v22 = vadd.f32 %v1692_v43, %v1687_v15  ;;  %v1696_v37 = vadd.f32 %v1693_v58, %v1688_v36  ;;  %v1258_v44 = vcombine.low %v1252_v1, %v1253_v14  ;;  %v1272_v5 = vrot.slane %v1254_v13, %v5351_v11 }
 0x48b   : > { %v1402_v25 = vcombine.low %v1396_v62, %v1397_v19  ;;  %v1416_v42 = vrot.slane %v1398_v12, %v5351_v11  ;;  %v1551_v57 = vcombine.low %v1545_v50, %v1546_v20  ;;  %v1565_v18 = vrot.slane %v1547_v56, %v5351_v11  ;;  %v5352_v50 = vld [vmem:[#allocation81_spill] sm:$0xff] }
 0x48c   : > { %v1700_v53 = vcombine.low %v1694_v10, %v1695_v22  ;;  %v1714_v49 = vrot.slane %v1696_v37, %v5351_v11  ;;  %v1265_v7 = vrot.slane %v1258_v44, %v5351_v11  ;;  %v1841_v48 = vmul.f32 %v4550_v61, %v1141_v34  ;;  %v5353_v10 = vld [vmem:[#allocation82_spill] sm:$0xff] }
 0x48d   : > { %v1409_v52 = vrot.slane %v1402_v25, %v5351_v11  ;;  %v1842_v39 = vmul.f32 %v4550_v61, %v1142_v40  ;;  %v1558_v54 = vrot.slane %v1551_v57, %v5351_v11  ;;  %v1990_v15 = vmul.f32 %v4557_v4, %v1141_v34 }
 0x48e   : > { %v1707_v51 = vrot.slane %v1700_v53, %v5351_v11  ;;  %v1991_v36 = vmul.f32 %v4557_v4, %v1142_v40  ;;  %v1273_v29 = vcombine.low %v1265_v7, %v1272_v5  ;;  %v1844_v2 = vadd.f32 %v1841_v48, %v1836_v41 }
 0x48f   : > { %v1417_v38 = vcombine.low %v1409_v52, %v1416_v42  ;;  %v1845_v24 = vadd.f32 %v1842_v39, %v1837_v17  ;;  %v1566_v45 = vcombine.low %v1558_v54, %v1565_v18  ;;  %v1993_v16 = vadd.f32 %v1990_v15, %v1985_v46 }
 0x490   : > { %v1715_v28 = vcombine.low %v1707_v51, %v1714_v49  ;;  %v1994_v26 = vadd.f32 %v1991_v36, %v1986_v60  ;;  %v2137_v1 = vmul.f32 %v4560_v3, %v4650_v31  ;;  %v1280_v61 = vrot.slane %v1273_v29, %v5351_v11 }
 0x491   : > { %v1849_v62 = vcombine.low %v1843_v9, %v1844_v2  ;;  %v2132_v59 = vadd.f32 %v5353_v10, %v5352_v50  ;;  %v2133_v8 = vadd.f32 %v2130_v30, %v4628_v47  ;;  %v2134_v4 = vadd.f32 %v2131_v0, %v4631_v23  ;;  %v5360_v50 = vld [vmem:[#allocation33_spill] sm:$0xff] }
 0x492   : > { %v1998_v63 = vcombine.low %v1992_v27, %v1993_v16  ;;  %1284 = vst.msk [vmem:[#allocation4] sm:$0x7] %vm4678_vm4, %v1280_v61  ;;  %v1863_v17 = vrot.slane %v1845_v24, %v5351_v11  ;;  %v2138_v31 = vmul.f32 %v4560_v3, %v1141_v34  ;;  %v2139_v46 = vmul.f32 %v4560_v3, %v1142_v40  ;;  %v5359_v61 = vld [vmem:[#allocation34_spill] sm:$0xff] }
 0x493   : > { %v1856_v41 = vrot.slane %v1849_v62, %v5351_v11  ;;  %v2012_v9 = vrot.slane %v1994_v26, %v5351_v11  ;;  %v2140_v55 = vadd.f32 %v2137_v1, %v2132_v59  ;;  %v1424_v32 = vrot.slane %v1417_v38, %v5351_v11  ;;  %v5361_v59 = vld [vmem:[#allocation24_spill] sm:$0xff] }
 0x494   : > { %v2005_v60 = vrot.slane %v1998_v63, %v5351_v11  ;;  %v2141_v30 = vadd.f32 %v2138_v31, %v2133_v8  ;;  %v2142_v23 = vadd.f32 %v2139_v46, %v2134_v4  ;;  %v1573_v3 = vrot.slane %v1566_v45, %v5351_v11  ;;  %v5362_v4 = vld [vmem:[#allocation25_spill] sm:$0xff]  ;;  %v5364_v31 = vld [vmem:[#allocation27_spill] sm:$0xff] }
 0x495   : > { %v1864_v47 = vcombine.low %v1856_v41, %v1863_v17  ;;  %v1722_v43 = vrot.slane %v1715_v28, %v5351_v11  ;;  %vm1432_vm6 = vcmask 916480   ;;  %vm1581_vm7 = vcmask 785408   ;;  %v5363_v41 = vld [vmem:[#allocation26_spill] sm:$0xff] }
 0x496   : > { %v2013_v0 = vcombine.low %v2005_v60, %v2012_v9  ;;  %v2146_v27 = vcombine.low %v2140_v55, %v2141_v30  ;;  %v2160_v6 = vrot.slane %v2142_v23, %v5351_v11  ;;  %vm1730_vm8 = vcmask 654336   ;;  %v5366_v60 = vld [vmem:[#allocation28_spill] sm:$0xff]  ;;  %v5368_v55 = vld [vmem:[#allocation29_spill] sm:$0xff]  ;;  %v5369_v30 = vld [vmem:[#allocation30_spill] sm:$0xff] }
 0x497   : > { %v1871_v14 = vrot.slane %v1864_v47, %v5351_v11  ;;  %vm1879_vm9 = vcmask 523264   ;;  %vm5357_vm10 = vcmask 261120  }
 0x498   : > { %v2153_v35 = vrot.slane %v2146_v27, %v5351_v11  ;;  %v2020_v19 = vrot.slane %v2013_v0, %v5351_v11  ;;  %v5370_v0 = vld [vmem:[#allocation31_spill] sm:$0xff] }
 0x499   : > { %v1285_v33 = vld [vmem:[#allocation4] sm:$0x3] }
 0x49a   : > { %v2161_v34 = vcombine.low %v2153_v35, %v2160_v6  ;;  %1426 = vst.msk [vmem:[#allocation4] sm:$0x7] %vm4678_vm4, %v1424_v32 }
 0x49c   : > { %v2168_v20 = vrot.slane %v2161_v34, %v5351_v11 }
 0x4a1   : > { %v1427_v40 = vld [vmem:[#allocation4] sm:$0x7] }
 0x4a2   : > { %1429 = vrot.lane.b32.xlu1 %v1427_v40, %s2736_s20  ;;  %1575 = vst.msk [vmem:[#allocation4] sm:$0x7] %vm4678_vm4, %v1573_v3 }
 0x4a9   : > { %v1576_v58 = vld [vmem:[#allocation4] sm:$0x7] }
 0x4aa   : > { %1578 = vrot.lane.b32.xlu0 %v1576_v58, %s2737_s30  ;;  %1724 = vst.msk [vmem:[#allocation4] sm:$0x7] %vm4678_vm4, %v1722_v43 }
 0x4b1   : > { %v1725_v13 = vld [vmem:[#allocation4] sm:$0x7] }
 0x4b2   : > { %1727 = vrot.lane.b32.xlu1 %v1725_v13, %s2738_s7  ;;  %1873 = vst.msk [vmem:[#allocation4] sm:$0x7] %vm4678_vm4, %v1871_v14 }
 0x4b9   : > { %v1874_v12 = vld [vmem:[#allocation4] sm:$0x7] }
 0x4ba   : > { %1876 = vrot.lane.b32.xlu0 %v1874_v12, %s2739_s6  ;;  %2022 = vst.msk [vmem:[#allocation4] sm:$0x7] %vm4678_vm4, %v2020_v19 }
 0x4c1   : > { %v2023_v56 = vld [vmem:[#allocation4] sm:$0x7] }
 0x4c2   : > { %2025 = vrot.lane.b32.xlu1 %v2023_v56, %s5354_s8  ;;  %2170 = vst.msk [vmem:[#allocation4] sm:$0x7] %vm4678_vm4, %v2168_v20 }
 0x4c9   : > { %v2171_v22 = vld [vmem:[#allocation4] sm:$0x7] }
 0x4ca   : > { %2173 = vrot.lane.b32.xlu0 %v2171_v22, %s2740_s0 }
 0x514   : > { %v1430_v37 = vpop.permute.xlu1 %1429 }
 0x515   : > { %v1431_v5 = vrot.slane %v1430_v37, 1 }
 0x517   : > { %v1433_v18 = vsel %vm1432_vm6, %v1430_v37, %v1431_v5 }
 0x518   : > { %v1435_v52 = vadd.f32 %v1433_v18, %v1285_v33 }
 0x51c   : > { %v1579_v44 = vpop.permute.xlu0 %1578 }
 0x51d   : > { %v1580_v42 = vrot.slane %v1579_v44, 1 }
 0x51f   : > { %v1582_v49 = vsel %vm1581_vm7, %v1579_v44, %v1580_v42 }
 0x520   : > { %v1584_v39 = vadd.f32 %v1582_v49, %v1435_v52 }
 0x524   : > { %v1728_v25 = vpop.permute.xlu1 %1727 }
 0x525   : > { %v1729_v53 = vrot.slane %v1728_v25, 1 }
 0x527   : > { %v1731_v21 = vsel %vm1730_vm8, %v1728_v25, %v1729_v53 }
 0x528   : > { %v1733_v51 = vadd.f32 %v1731_v21, %v1584_v39 }
 0x52c   : > { %v1877_v57 = vpop.permute.xlu0 %1876 }
 0x52d   : > { %v1878_v7 = vrot.slane %v1877_v57, 1 }
 0x52f   : > { %v1880_v54 = vsel %vm1879_vm9, %v1877_v57, %v1878_v7 }
 0x530   : > { %v1882_v36 = vadd.f32 %v1880_v54, %v1733_v51 }
 0x534   : > { %v2026_v11 = vpop.permute.xlu1 %2025 }
 0x535   : > { %v2027_v48 = vrot.slane %v2026_v11, 1 }
 0x537   : > { %v2028_v15 = vsel %vm914_vm5, %v2026_v11, %v2027_v48 }
 0x538   : > { %v2030_v2 = vadd.f32 %v2028_v15, %v1882_v36 }
 0x53c   : > { %v2174_v29 = vpop.permute.xlu0 %2173 }
 0x53d   : > { %v2175_v38 = vrot.slane %v2174_v29, 1 }
 0x53f   : > { %v2176_v24 = vsel %vm5357_vm10, %v2174_v29, %v2175_v38 }
 0x540   : > { %v2178_v45 = vadd.f32 %v2176_v24, %v2030_v2 }
 0x542   : > { %v2443_v28 = vmul.f32 -1.442695, %v2178_v45 }
 0x544   : > { %2604 = vpow2.f32 %v2443_v28 }
 0x551   : > { %v2605_v16 = vpop.eup %2604 }
 0x552   : > { %v2182_v26 = vadd.f32 1.0, %v2605_v16 }
 0x554   : > { %2606 = vrcp.f32 %v2182_v26 }
 0x561   : > { %v2607_v1 = vpop.eup %2606 }
 0x562   : > { %v2197_v62 = vrot.slane %v2607_v1, %v5359_v61  ;;  %v2201_v10 = vrot.slane %v2607_v1, %v5360_v50 }
 0x564   : > { %v2204_v8 = vmul.f32 %v2197_v62, %v5361_v59  ;;  %v2205_v63 = vmul.f32 %v2201_v10, %v5362_v4  ;;  %v2206_v17 = vmul.f32 %v2197_v62, %v5363_v41  ;;  %v2207_v46 = vmul.f32 %v2201_v10, %v5364_v31 }
 0x565   : > { %v2208_v9 = vmul.f32 %v2197_v62, %v5366_v60  ;;  %v2209_v47 = vmul.f32 %v2201_v10, %v5368_v55  ;;  %v2210_v23 = vmul.f32 %v2197_v62, %v5369_v30  ;;  %v2211_v27 = vmul.f32 %v2201_v10, %v5370_v0 }
 0x566   : > { %2212 = vst [vmem:[%s229_s24] sm:$0xff] %v2204_v8  ;;  %2213 = vst [vmem:[%s229_s24 + $0x8] sm:$0xff] %v2205_v63 }
 0x567   : > { %2214 = vst [vmem:[%s229_s24 + $0x10] sm:$0xff] %v2206_v17  ;;  %2215 = vst [vmem:[%s229_s24 + $0x18] sm:$0xff] %v2207_v46 }
 0x568   : > { %2216 = vst [vmem:[%s229_s24 + $0x20] sm:$0xff] %v2208_v9  ;;  %2217 = vst [vmem:[%s229_s24 + $0x28] sm:$0xff] %v2209_v47 }
 0x569   : > { %2218 = vst [vmem:[%s229_s24 + $0x30] sm:$0xff] %v2210_v23  ;;  %2219 = vst [vmem:[%s229_s24 + $0x38] sm:$0xff] %v2211_v27 }
 0x56a   : > { %2664 = shalt.err (!%p2661_p1)
}
 0x56b   : > { %s2665_s9 = scalar_lea.hbm %s4748_s16, 1024  ;;  %s2669_s5 = scalar_lea.hbm %s5365_s27, 2048 }
 0x56c   : > { %p2666_p4 = scmp.ne.s32.totalorder %s4748_s16, %s2665_s9  ;;  %p2670_p6 = scmp.lt.s32.totalorder %s4748_s16, %s5365_s27 }
 0x56d   : > { %p2671_p13 = scmp.lt.s32.totalorder %s2669_s5, %s2665_s9 }
 0x56e   : > { %p2667_p11 = pnand %p2666_p4, %p5371_p0 }
 0x56f   : > { %p2672_p3 = por %p2671_p13, %p2670_p6 }
 0x570   : > { %p2668_p5 = pneg %p2667_p11 }
 0x572   : > { %p2673_p12 = pnand %p2672_p3, %p2668_p5 }
 0x574   : > { %2676 = shalt.err (!%p2673_p12)
}
 0x575   : > { %s2742_s2 = smov 256   ;;  %s2743_s18 = smov 16  }
 0x576   : > { %2515 = dma.vmem_to_hbm [thread:$0]  (%p5371_p0), %s4750_s21, 1024, %s4748_s16, %s2221_s19, %s2742_s2, %s2742_s2, %s2743_s18  }
 0x577 PF: > { %s5372_s14 = sld [smem:[#allocation14_spill]] }
 0x578   : > { %s5373_s20 = sld [smem:[#allocation22_spill]] }
 0x579   : > { %s5374_s30 = sld [smem:[#allocation17_spill]] }
 0x57d   : > { %s2249_s7 = sand.u32 1, %s5372_s14  }
 0x57e   : > { %p5375_p2 = scmp.ne.s32.totalorder %s5373_s20, 0  ;;  %s2250_s6 = scalar_lea.sflag [#allocation7], %s2249_s7 }
 0x57f   : > { %p5376_p7 = scmp.ge.s32.totalorder %s5374_s30, 2 }
 0x581   : > { %p2526_p8 = pnand %p5376_p7, %p5375_p2 }
 0x583   : > { %p2527_p9 = pneg %p2526_p8 }
 0x585   : > { %2702 = dma.done.wait (%p2527_p9), %s2250_s6, 1024  }
 0x586   : > { %2704 = vsyncadd (%p2527_p9), %s2250_s6, 4294966272  ;;  %s5377_s18 = sld [smem:[#allocation19_spill]] }
 0x587   : > { %s5378_s15 = sld [smem:[#allocation15_spill]] }
 0x588   : > { %s5379_s16 = sld [smem:[#allocation16_spill]] }
 0x589   : > { %s5380_s17 = sld [smem:[#allocation20_spill]] }
 0x58c   : > { %p18_p10 = scmp.ge.s32.totalorder %s5377_s18, 4  }
 0x58e   :  { %20 = sbr.rel (!%p18_p10) target bundleno = 12 (0xc), region = 89 }
 0x593   :  { %2255 = vsyncpa [#allocation6], 1 }
 0x594   :  { %2257 = vsyncpa [#allocation6 + $0x1], 1 }
 0x595   :  { %2258 = vsyncpa [#allocation7], 1 }
 0x596   :  { %2260 = vsyncpa [#allocation7 + $0x1], 1 }
 0x597   :  { %2261 = vsyncpa [#allocation8], 1 }
 0x598   :  { %2263 = vsyncpa [#allocation8 + $0x1], 1 }

</bundles_post_ra>
